<compile_context>
chip_gen: v6e
topology: v6e:2x2x1
jax: 0.10.0
libtpu: 0.0.40
codegen_flags: <defaults>
</compile_context>

<pallas_src>
import jax
import jax.numpy as jnp
import numpy as np
from jax.experimental import pallas as pl
from jax.experimental.pallas import tpu as pltpu

H = W = 16
C_IN = 32            # block_args.input_filters
C_OUT = 32           # block_args.output_filters (== C_IN -> identity branch)
EXPAND_RATIO = 4
C_MID = 8            # _make_divisible(C_IN // expand_ratio, 2)
NES_IN = C_IN // 2   # split_ratio = 2
NES_OUT = C_OUT // 2
C_SQ = 4             # max(1, int(C_IN * se_ratio * 0.5)) with se_ratio = 0.25
K = 3
BN_EPS = 1e-3

NPACK = 4                    # batch items packed into the lane dim
LANES = C_IN * NPACK         # 128 -> one full vreg lane width
HALF = NES_IN * NPACK        # 64
MIDL = C_MID * NPACK         # 32
SQL = C_SQ * NPACK           # 16
PADL = 8                     # left halo offset in scratch (8 -> sublane-aligned store)
PW = W + 2 * PADL            # padded scratch width (32)


# ----------------------------- kernel helpers -----------------------------

def _swish(x):
    return x * jax.nn.sigmoid(x)


def _dw3x3(pad_ref, w):
    """Depthwise 3x3 'same' conv reading the padded VMEM scratch.
    Data occupies pad_ref[1:H+1, PADL:PADL+W, :]; the surrounding ring is zero."""
    acc = jnp.zeros((H, W, LANES), jnp.float32)
    for di in range(K):
        for dj in range(K):
            c0 = PADL - 1 + dj
            tap = pad_ref[di:di + H, c0:c0 + W, :]
            acc = acc + tap * w[di, dj, :]
    return acc


# ----------------------------- fused Pallas kernel --------------------------

def fused_kernel(x_ref, dw1_ref, b1_ref, pw_ref, b2_ref, ew_ref, b3_ref,
                 dw2_ref, b4_ref, srw_ref, srb_ref, sew_ref, seb_ref,
                 out_ref, pad_ref):
    # Zero the halo scratch (cheap; keeps the padding ring zero for both convs,
    # and stays correct even if grid steps are split across cores).
    pad_ref[...] = jnp.zeros_like(pad_ref)

    x = x_ref[0]                                            # (H, W, 128)

    # ---- dwconv1 (bn1 scale folded into weights) + bias + swish ----
    pad_ref[1:1 + H, PADL:PADL + W, :] = x                  # aligned interior store
    y = _swish(_dw3x3(pad_ref, dw1_ref[...]) + b1_ref[0])   # (H, W, 128)

    # ---- NES split-add (lanes are channel-major: c*NPACK + batch) ----
    nes = y[:, :, :HALF] + y[:, :, HALF:]                   # (H, W, 64)
    t = nes.reshape(H * W, HALF)

    # ---- 1x1 project (bn2 folded) + 1x1 expand (bn3 folded) + swish ----
    z = jnp.dot(t, pw_ref[...], preferred_element_type=jnp.float32) + b2_ref[0]
    e = jnp.dot(z, ew_ref[...], preferred_element_type=jnp.float32) + b3_ref[0]
    e = _swish(e)                                           # (HW, 64)

    # torch.cat([x, x], dim=1): second channel half duplicates the first
    cat = jnp.concatenate([e, e], axis=-1).reshape(H, W, LANES)

    # ---- dwconv2 (bn4 scale folded) + bias ----
    pad_ref[1:1 + H, PADL:PADL + W, :] = cat                # reuse halo scratch
    y4 = (_dw3x3(pad_ref, dw2_ref[...]) + b4_ref[0]).reshape(H * W, LANES)

    # ---- squeeze-excite ----
    pooled = jnp.mean(y4, axis=0, keepdims=True)            # (1, 128)
    s = _swish(jnp.dot(pooled, srw_ref[...],
                       preferred_element_type=jnp.float32) + srb_ref[0])
    g = jax.nn.sigmoid(jnp.dot(s, sew_ref[...],
                               preferred_element_type=jnp.float32) + seb_ref[0])

    # TODO(synk): drop_connect not implemented (forward uses drop_connect_rate=None)
    out_ref[0] = (y4 * g).reshape(H, W, LANES) + x          # identity skip


# ----------------------------- layout packing -------------------------------

def to_packed(x_nchw):
    """(N, C, H, W) -> (N/NPACK, H, W, C*NPACK), lane index = c*NPACK + batch."""
    n = x_nchw.shape[0]
    g = n // NPACK
    xk = x_nchw.reshape(g, NPACK, C_IN, H, W)
    xk = jnp.transpose(xk, (0, 3, 4, 2, 1))                 # (G, H, W, C, NPACK)
    return xk.reshape(g, H, W, LANES)


def from_packed(yk, n):
    g = n // NPACK
    y = yk.reshape(g, H, W, C_OUT, NPACK)
    y = jnp.transpose(y, (0, 4, 3, 1, 2))                   # (G, NPACK, C, H, W)
    return y.reshape(n, C_OUT, H, W)


def pack_params(p):
    """Fold BN scales into weights, expand to the lane-packed layout."""
    eye = jnp.eye(NPACK, dtype=jnp.float32)

    def rep(v):                 # per-channel vector -> interleaved lane vector
        return jnp.repeat(v.reshape(-1), NPACK).reshape(1, -1)

    def repw(w, s):             # depthwise (K, K, C): fold scale, repeat lanes
        return jnp.repeat(w * s.reshape(-1), NPACK, axis=-1)

    def kron(w, s=None):        # 1x1 (Cin, Cout): fold out-scale, block-diag per batch
        if s is not None:
            w = w * s.reshape(1, -1)
        return jnp.kron(w, eye)

    return dict(
        dw1=repw(p["dw1_w"], p["bn1_s"]), b1=rep(p["bn1_b"]),
        pw=kron(p["proj_w"], p["bn2_s"]), b2=rep(p["bn2_b"]),
        ew=kron(p["exp_w"], p["bn3_s"]), b3=rep(p["bn3_b"]),
        dw2=repw(p["dw2_w"], p["bn4_s"]), b4=rep(p["bn4_b"]),
        srw=kron(p["se_r_w"]), srb=rep(p["se_r_b"]),
        sew=kron(p["se_e_w"]), seb=rep(p["se_e_b"]),
    )


# ----------------------------- wrapper --------------------------------------

def _full_spec(shape):
    nd = len(shape)
    return pl.BlockSpec(shape, lambda g, _nd=nd: (0,) * _nd)


def nesi2r_block(x_nchw, params):
    """x_nchw: (N, C_IN, H, W) -> (N, C_OUT, H, W), float32."""
    N = x_nchw.shape[0]
    G = -(-N // NPACK)
    Np = G * NPACK
    x32 = x_nchw.astype(jnp.float32)
    if Np != N:
        x32 = jnp.concatenate(
            [x32, jnp.zeros((Np - N, C_IN, H, W), jnp.float32)], axis=0)
    xk = to_packed(x32)
    kp = pack_params(params)

    fused = pl.pallas_call(
        fused_kernel,
        out_shape=jax.ShapeDtypeStruct((G, H, W, LANES), jnp.float32),
        grid=(G,),
        in_specs=[
            pl.BlockSpec((1, H, W, LANES), lambda g: (g, 0, 0, 0)),
            _full_spec((K, K, LANES)), _full_spec((1, LANES)),
            _full_spec((HALF, MIDL)), _full_spec((1, MIDL)),
            _full_spec((MIDL, HALF)), _full_spec((1, HALF)),
            _full_spec((K, K, LANES)), _full_spec((1, LANES)),
            _full_spec((LANES, SQL)), _full_spec((1, SQL)),
            _full_spec((SQL, LANES)), _full_spec((1, LANES)),
        ],
        out_specs=pl.BlockSpec((1, H, W, LANES), lambda g: (g, 0, 0, 0)),
        scratch_shapes=[pltpu.VMEM((H + 2, PW, LANES), jnp.float32)],
        compiler_params=pltpu.CompilerParams(
            dimension_semantics=("parallel",)),
    )
    yk = fused(xk, kp["dw1"], kp["b1"], kp["pw"], kp["b2"], kp["ew"], kp["b3"],
               kp["dw2"], kp["b4"], kp["srw"], kp["srb"], kp["sew"], kp["seb"])
    return from_packed(yk, Np)[:N]


# ----------------------------- params & reference --------------------------

def make_params(key):
    ks = jax.random.split(key, 20)

    def nrm(k, shape, scale=0.2):
        return scale * jax.random.normal(k, shape, jnp.float32)

    def folded_bn(k, c):
        k1, k2, k3, k4 = jax.random.split(k, 4)
        gamma = 1.0 + 0.1 * jax.random.normal(k1, (c,), jnp.float32)
        beta = 0.1 * jax.random.normal(k2, (c,), jnp.float32)
        mean = 0.1 * jax.random.normal(k3, (c,), jnp.float32)
        var = 0.5 + jnp.abs(0.1 * jax.random.normal(k4, (c,), jnp.float32))
        scale = gamma / jnp.sqrt(var + BN_EPS)
        bias = beta - mean * scale
        return scale.reshape(1, c), bias.reshape(1, c)

    bn1_s, bn1_b = folded_bn(ks[0], C_IN)
    bn2_s, bn2_b = folded_bn(ks[1], C_MID)
    bn3_s, bn3_b = folded_bn(ks[2], NES_OUT)
    bn4_s, bn4_b = folded_bn(ks[3], C_OUT)

    return {
        # depthwise weights stored as (kh, kw, C); 1x1 convs as (Cin, Cout)
        "dw1_w": nrm(ks[4], (K, K, C_IN)),
        "bn1_s": bn1_s, "bn1_b": bn1_b,
        "proj_w": nrm(ks[5], (NES_IN, C_MID)),
        "bn2_s": bn2_s, "bn2_b": bn2_b,
        "exp_w": nrm(ks[6], (C_MID, NES_OUT)),
        "bn3_s": bn3_s, "bn3_b": bn3_b,
        "dw2_w": nrm(ks[7], (K, K, C_OUT)),
        "bn4_s": bn4_s, "bn4_b": bn4_b,
        "se_r_w": nrm(ks[8], (C_OUT, C_SQ)),
        "se_r_b": nrm(ks[9], (1, C_SQ), 0.05),
        "se_e_w": nrm(ks[10], (C_SQ, C_OUT)),
        "se_e_b": nrm(ks[11], (1, C_OUT), 0.05),
    }


def reference(x_nchw, p):
    """Pure-JAX (XLA conv) reference with identical semantics, for validation."""
    x = jnp.transpose(x_nchw, (0, 2, 3, 1)).astype(jnp.float32)

    def dw(xh, w):
        c = xh.shape[-1]
        return jax.lax.conv_general_dilated(
            xh, w.reshape(K, K, 1, c), (1, 1), "SAME",
            dimension_numbers=("NHWC", "HWIO", "NHWC"), feature_group_count=c)

    def bn(v, s, b):
        return v * s[0] + b[0]

    y = _swish(bn(dw(x, p["dw1_w"]), p["bn1_s"], p["bn1_b"]))
    nes = y[..., :NES_IN] + y[..., NES_IN:]
    z = bn(jnp.einsum("nhwc,cd->nhwd", nes, p["proj_w"]), p["bn2_s"], p["bn2_b"])
    e = _swish(bn(jnp.einsum("nhwc,cd->nhwd", z, p["exp_w"]), p["bn3_s"], p["bn3_b"]))
    cat = jnp.concatenate([e, e], axis=-1)
    y4 = bn(dw(cat, p["dw2_w"]), p["bn4_s"], p["bn4_b"])
    pooled = jnp.mean(y4, axis=(1, 2))                               # (N, C_OUT)
    s = _swish(pooled @ p["se_r_w"] + p["se_r_b"][0])
    g = jax.nn.sigmoid(s @ p["se_e_w"] + p["se_e_b"][0])
    out = y4 * g[:, None, None, :] + x
    return jnp.transpose(out, (0, 3, 1, 2))


if __name__ == "__main__":
    key = jax.random.PRNGKey(0)
    kx, kp = jax.random.split(key)
    N = 8                                                            # 2 grid steps x 4 packed
    x = jax.random.normal(kx, (N, C_IN, H, W), jnp.float32)          # NCHW like PyTorch
    params = make_params(kp)

    out = jax.block_until_ready(jax.jit(nesi2r_block)(x, params))
    ref = jax.block_until_ready(reference(x, params))

    assert out.shape == (N, C_OUT, H, W), out.shape
    np.testing.assert_allclose(np.asarray(out), np.asarray(ref), rtol=5e-4, atol=5e-4)
    print("KERNEL_OK")
</pallas_src>

<mosaic_0001>
module attributes {stable_mosaic.version = 11 : i64} {
  func.func @fused_kernel(%arg0: i32, %arg1: memref<1x16x16x128xf32, #tpu.memory_space<vmem>>, %arg2: memref<3x3x128xf32, #tpu.memory_space<vmem>>, %arg3: memref<1x128xf32, #tpu.memory_space<vmem>>, %arg4: memref<64x32xf32, #tpu.memory_space<vmem>>, %arg5: memref<1x32xf32, #tpu.memory_space<vmem>>, %arg6: memref<32x64xf32, #tpu.memory_space<vmem>>, %arg7: memref<1x64xf32, #tpu.memory_space<vmem>>, %arg8: memref<3x3x128xf32, #tpu.memory_space<vmem>>, %arg9: memref<1x128xf32, #tpu.memory_space<vmem>>, %arg10: memref<128x16xf32, #tpu.memory_space<vmem>>, %arg11: memref<1x16xf32, #tpu.memory_space<vmem>>, %arg12: memref<16x128xf32, #tpu.memory_space<vmem>>, %arg13: memref<1x128xf32, #tpu.memory_space<vmem>>, %arg14: memref<1x16x16x128xf32, #tpu.memory_space<vmem>>, %arg15: memref<18x32x128xf32, #tpu.memory_space<vmem>>) attributes {dimension_semantics = [#tpu.dimension_semantics<parallel>], iteration_bounds = array<i64: 2>, scalar_prefetch = 0 : i64, scratch_operands = 1 : i64, tpu.core_type = #tpu.core_type<tc>, window_params = [{transform_indices = @transform_0, window_bounds = array<i64: 1, 16, 16, 128>}, {pipeline_mode = #tpu.pipeline_mode<synchronous>, transform_indices = @transform_1, window_bounds = array<i64: 3, 3, 128>}, {pipeline_mode = #tpu.pipeline_mode<synchronous>, transform_indices = @transform_2, window_bounds = array<i64: 1, 128>}, {pipeline_mode = #tpu.pipeline_mode<synchronous>, transform_indices = @transform_3, window_bounds = array<i64: 64, 32>}, {pipeline_mode = #tpu.pipeline_mode<synchronous>, transform_indices = @transform_4, window_bounds = array<i64: 1, 32>}, {pipeline_mode = #tpu.pipeline_mode<synchronous>, transform_indices = @transform_5, window_bounds = array<i64: 32, 64>}, {pipeline_mode = #tpu.pipeline_mode<synchronous>, transform_indices = @transform_6, window_bounds = array<i64: 1, 64>}, {pipeline_mode = #tpu.pipeline_mode<synchronous>, transform_indices = @transform_7, window_bounds = array<i64: 3, 3, 128>}, {pipeline_mode = #tpu.pipeline_mode<synchronous>, transform_indices = @transform_8, window_bounds = array<i64: 1, 128>}, {pipeline_mode = #tpu.pipeline_mode<synchronous>, transform_indices = @transform_9, window_bounds = array<i64: 128, 16>}, {pipeline_mode = #tpu.pipeline_mode<synchronous>, transform_indices = @transform_10, window_bounds = array<i64: 1, 16>}, {pipeline_mode = #tpu.pipeline_mode<synchronous>, transform_indices = @transform_11, window_bounds = array<i64: 16, 128>}, {pipeline_mode = #tpu.pipeline_mode<synchronous>, transform_indices = @transform_12, window_bounds = array<i64: 1, 128>}, {transform_indices = @transform_13, window_bounds = array<i64: 1, 16, 16, 128>}]} {
    %cst = arith.constant 0.000000e+00 : f32
    %0 = vector.broadcast %cst : f32 to vector<18x32x128xf32>
    %c0 = arith.constant 0 : index
    %c0_0 = arith.constant 0 : index
    %c0_1 = arith.constant 0 : index
    %1 = vector.load %arg15[%c0, %c0_0, %c0_1] : memref<18x32x128xf32, #tpu.memory_space<vmem>>, vector<18x32x128xf32>
    tpu.vector_store %arg15[%c0, %c0_0, %c0_1], %0 {strides = array<i32>} : memref<18x32x128xf32, #tpu.memory_space<vmem>>, vector<18x32x128xf32>,
    %c0_2 = arith.constant 0 : index
    %c0_3 = arith.constant 0 : index
    %c0_4 = arith.constant 0 : index
    %c0_5 = arith.constant 0 : index
    %2 = vector.load %arg1[%c0_2, %c0_3, %c0_4, %c0_5] : memref<1x16x16x128xf32, #tpu.memory_space<vmem>>, vector<1x16x16x128xf32>
    %3 = vector.shape_cast %2 : vector<1x16x16x128xf32> to vector<16x16x128xf32>
    %c1 = arith.constant 1 : index
    %c8 = arith.constant 8 : index
    %c0_6 = arith.constant 0 : index
    %4 = vector.load %arg15[%c1, %c8, %c0_6] : memref<18x32x128xf32, #tpu.memory_space<vmem>>, vector<16x16x128xf32>
    tpu.vector_store %arg15[%c1, %c8, %c0_6], %3 {strides = array<i32>} : memref<18x32x128xf32, #tpu.memory_space<vmem>>, vector<16x16x128xf32>,
    %c0_7 = arith.constant 0 : index
    %c0_8 = arith.constant 0 : index
    %c0_9 = arith.constant 0 : index
    %5 = vector.load %arg2[%c0_7, %c0_8, %c0_9] : memref<3x3x128xf32, #tpu.memory_space<vmem>>, vector<3x3x128xf32>
    %cst_10 = arith.constant 0.000000e+00 : f32
    %6 = vector.broadcast %cst_10 : f32 to vector<16x16x128xf32>
    %c0_11 = arith.constant 0 : index
    %c7 = arith.constant 7 : index
    %c0_12 = arith.constant 0 : index
    %7 = vector.load %arg15[%c0_11, %c7, %c0_12] : memref<18x32x128xf32, #tpu.memory_space<vmem>>, vector<16x16x128xf32>
    %8 = vector.extract_strided_slice %5 {offsets = [0, 0, 0], sizes = [1, 1, 128], strides = [1, 1, 1]} : vector<3x3x128xf32> to vector<1x1x128xf32>
    %9 = vector.shape_cast %8 : vector<1x1x128xf32> to vector<128xf32>
    %10 = vector.shape_cast %9 : vector<128xf32> to vector<1x1x128xf32>
    %11 = vector.broadcast %10 : vector<1x1x128xf32> to vector<16x16x128xf32>
    %12 = arith.mulf %7, %11 : vector<16x16x128xf32>
    %13 = arith.addf %6, %12 : vector<16x16x128xf32>
    %c0_13 = arith.constant 0 : index
    %c8_14 = arith.constant 8 : index
    %c0_15 = arith.constant 0 : index
    %14 = vector.load %arg15[%c0_13, %c8_14, %c0_15] : memref<18x32x128xf32, #tpu.memory_space<vmem>>, vector<16x16x128xf32>
    %15 = vector.extract_strided_slice %5 {offsets = [0, 1, 0], sizes = [1, 1, 128], strides = [1, 1, 1]} : vector<3x3x128xf32> to vector<1x1x128xf32>
    %16 = vector.shape_cast %15 : vector<1x1x128xf32> to vector<128xf32>
    %17 = vector.shape_cast %16 : vector<128xf32> to vector<1x1x128xf32>
    %18 = vector.broadcast %17 : vector<1x1x128xf32> to vector<16x16x128xf32>
    %19 = arith.mulf %14, %18 : vector<16x16x128xf32>
    %20 = arith.addf %13, %19 : vector<16x16x128xf32>
    %c0_16 = arith.constant 0 : index
    %c9 = arith.constant 9 : index
    %c0_17 = arith.constant 0 : index
    %21 = vector.load %arg15[%c0_16, %c9, %c0_17] : memref<18x32x128xf32, #tpu.memory_space<vmem>>, vector<16x16x128xf32>
    %22 = vector.extract_strided_slice %5 {offsets = [0, 2, 0], sizes = [1, 1, 128], strides = [1, 1, 1]} : vector<3x3x128xf32> to vector<1x1x128xf32>
    %23 = vector.shape_cast %22 : vector<1x1x128xf32> to vector<128xf32>
    %24 = vector.shape_cast %23 : vector<128xf32> to vector<1x1x128xf32>
    %25 = vector.broadcast %24 : vector<1x1x128xf32> to vector<16x16x128xf32>
    %26 = arith.mulf %21, %25 : vector<16x16x128xf32>
    %27 = arith.addf %20, %26 : vector<16x16x128xf32>
    %c1_18 = arith.constant 1 : index
    %c7_19 = arith.constant 7 : index
    %c0_20 = arith.constant 0 : index
    %28 = vector.load %arg15[%c1_18, %c7_19, %c0_20] : memref<18x32x128xf32, #tpu.memory_space<vmem>>, vector<16x16x128xf32>
    %29 = vector.extract_strided_slice %5 {offsets = [1, 0, 0], sizes = [1, 1, 128], strides = [1, 1, 1]} : vector<3x3x128xf32> to vector<1x1x128xf32>
    %30 = vector.shape_cast %29 : vector<1x1x128xf32> to vector<128xf32>
    %31 = vector.shape_cast %30 : vector<128xf32> to vector<1x1x128xf32>
    %32 = vector.broadcast %31 : vector<1x1x128xf32> to vector<16x16x128xf32>
    %33 = arith.mulf %28, %32 : vector<16x16x128xf32>
    %34 = arith.addf %27, %33 : vector<16x16x128xf32>
    %c1_21 = arith.constant 1 : index
    %c8_22 = arith.constant 8 : index
    %c0_23 = arith.constant 0 : index
    %35 = vector.load %arg15[%c1_21, %c8_22, %c0_23] : memref<18x32x128xf32, #tpu.memory_space<vmem>>, vector<16x16x128xf32>
    %36 = vector.extract_strided_slice %5 {offsets = [1, 1, 0], sizes = [1, 1, 128], strides = [1, 1, 1]} : vector<3x3x128xf32> to vector<1x1x128xf32>
    %37 = vector.shape_cast %36 : vector<1x1x128xf32> to vector<128xf32>
    %38 = vector.shape_cast %37 : vector<128xf32> to vector<1x1x128xf32>
    %39 = vector.broadcast %38 : vector<1x1x128xf32> to vector<16x16x128xf32>
    %40 = arith.mulf %35, %39 : vector<16x16x128xf32>
    %41 = arith.addf %34, %40 : vector<16x16x128xf32>
    %c1_24 = arith.constant 1 : index
    %c9_25 = arith.constant 9 : index
    %c0_26 = arith.constant 0 : index
    %42 = vector.load %arg15[%c1_24, %c9_25, %c0_26] : memref<18x32x128xf32, #tpu.memory_space<vmem>>, vector<16x16x128xf32>
    %43 = vector.extract_strided_slice %5 {offsets = [1, 2, 0], sizes = [1, 1, 128], strides = [1, 1, 1]} : vector<3x3x128xf32> to vector<1x1x128xf32>
    %44 = vector.shape_cast %43 : vector<1x1x128xf32> to vector<128xf32>
    %45 = vector.shape_cast %44 : vector<128xf32> to vector<1x1x128xf32>
    %46 = vector.broadcast %45 : vector<1x1x128xf32> to vector<16x16x128xf32>
    %47 = arith.mulf %42, %46 : vector<16x16x128xf32>
    %48 = arith.addf %41, %47 : vector<16x16x128xf32>
    %c2 = arith.constant 2 : index
    %c7_27 = arith.constant 7 : index
    %c0_28 = arith.constant 0 : index
    %49 = vector.load %arg15[%c2, %c7_27, %c0_28] : memref<18x32x128xf32, #tpu.memory_space<vmem>>, vector<16x16x128xf32>
    %50 = vector.extract_strided_slice %5 {offsets = [2, 0, 0], sizes = [1, 1, 128], strides = [1, 1, 1]} : vector<3x3x128xf32> to vector<1x1x128xf32>
    %51 = vector.shape_cast %50 : vector<1x1x128xf32> to vector<128xf32>
    %52 = vector.shape_cast %51 : vector<128xf32> to vector<1x1x128xf32>
    %53 = vector.broadcast %52 : vector<1x1x128xf32> to vector<16x16x128xf32>
    %54 = arith.mulf %49, %53 : vector<16x16x128xf32>
    %55 = arith.addf %48, %54 : vector<16x16x128xf32>
    %c2_29 = arith.constant 2 : index
    %c8_30 = arith.constant 8 : index
    %c0_31 = arith.constant 0 : index
    %56 = vector.load %arg15[%c2_29, %c8_30, %c0_31] : memref<18x32x128xf32, #tpu.memory_space<vmem>>, vector<16x16x128xf32>
    %57 = vector.extract_strided_slice %5 {offsets = [2, 1, 0], sizes = [1, 1, 128], strides = [1, 1, 1]} : vector<3x3x128xf32> to vector<1x1x128xf32>
    %58 = vector.shape_cast %57 : vector<1x1x128xf32> to vector<128xf32>
    %59 = vector.shape_cast %58 : vector<128xf32> to vector<1x1x128xf32>
    %60 = vector.broadcast %59 : vector<1x1x128xf32> to vector<16x16x128xf32>
    %61 = arith.mulf %56, %60 : vector<16x16x128xf32>
    %62 = arith.addf %55, %61 : vector<16x16x128xf32>
    %c2_32 = arith.constant 2 : index
    %c9_33 = arith.constant 9 : index
    %c0_34 = arith.constant 0 : index
    %63 = vector.load %arg15[%c2_32, %c9_33, %c0_34] : memref<18x32x128xf32, #tpu.memory_space<vmem>>, vector<16x16x128xf32>
    %64 = vector.extract_strided_slice %5 {offsets = [2, 2, 0], sizes = [1, 1, 128], strides = [1, 1, 1]} : vector<3x3x128xf32> to vector<1x1x128xf32>
    %65 = vector.shape_cast %64 : vector<1x1x128xf32> to vector<128xf32>
    %66 = vector.shape_cast %65 : vector<128xf32> to vector<1x1x128xf32>
    %67 = vector.broadcast %66 : vector<1x1x128xf32> to vector<16x16x128xf32>
    %68 = arith.mulf %63, %67 : vector<16x16x128xf32>
    %69 = arith.addf %62, %68 : vector<16x16x128xf32>
    %c0_35 = arith.constant 0 : index
    %c0_36 = arith.constant 0 : index
    %70 = vector.load %arg3[%c0_35, %c0_36] : memref<1x128xf32, #tpu.memory_space<vmem>>, vector<1x128xf32>
    %71 = vector.shape_cast %70 : vector<1x128xf32> to vector<128xf32>
    %72 = vector.shape_cast %71 : vector<128xf32> to vector<1x1x128xf32>
    %73 = vector.broadcast %72 : vector<1x1x128xf32> to vector<16x16x128xf32>
    %74 = arith.addf %69, %73 : vector<16x16x128xf32>
    %75 = arith.negf %74 : vector<16x16x128xf32>
    %76 = math.exp %75 : vector<16x16x128xf32>
    %cst_37 = arith.constant 1.000000e+00 : f32
    %77 = vector.broadcast %cst_37 : f32 to vector<16x16x128xf32>
    %78 = arith.addf %77, %76 : vector<16x16x128xf32>
    %79 = arith.divf %77, %78 : vector<16x16x128xf32>
    %80 = arith.mulf %74, %79 : vector<16x16x128xf32>
    %81 = vector.extract_strided_slice %80 {offsets = [0, 0, 0], sizes = [16, 16, 64], strides = [1, 1, 1]} : vector<16x16x128xf32> to vector<16x16x64xf32>
    %82 = vector.extract_strided_slice %80 {offsets = [0, 0, 64], sizes = [16, 16, 64], strides = [1, 1, 1]} : vector<16x16x128xf32> to vector<16x16x64xf32>
    %83 = arith.addf %81, %82 : vector<16x16x64xf32>
    %84 = vector.shape_cast %83 : vector<16x16x64xf32> to vector<256x64xf32>
    %c0_38 = arith.constant 0 : index
    %c0_39 = arith.constant 0 : index
    %85 = vector.load %arg4[%c0_38, %c0_39] : memref<64x32xf32, #tpu.memory_space<vmem>>, vector<64x32xf32>
    %cst_40 = arith.constant dense<0.000000e+00> : vector<256x32xf32>
    %86 = tpu.matmul %84, %85, %cst_40 {dimension_numbers = #tpu.dot_dimension_numbers<[1], [0], [0], [1], [0, 0, 1, 1], [], []>} : vector<256x64xf32>, vector<64x32xf32>, vector<256x32xf32> -> vector<256x32xf32>
    %c0_41 = arith.constant 0 : index
    %c0_42 = arith.constant 0 : index
    %87 = vector.load %arg5[%c0_41, %c0_42] : memref<1x32xf32, #tpu.memory_space<vmem>>, vector<1x32xf32>
    %88 = vector.shape_cast %87 : vector<1x32xf32> to vector<32xf32>
    %89 = vector.shape_cast %88 : vector<32xf32> to vector<1x32xf32>
    %90 = vector.broadcast %89 : vector<1x32xf32> to vector<256x32xf32>
    %91 = arith.addf %86, %90 : vector<256x32xf32>
    %c0_43 = arith.constant 0 : index
    %c0_44 = arith.constant 0 : index
    %92 = vector.load %arg6[%c0_43, %c0_44] : memref<32x64xf32, #tpu.memory_space<vmem>>, vector<32x64xf32>
    %cst_45 = arith.constant dense<0.000000e+00> : vector<256x64xf32>
    %93 = tpu.matmul %91, %92, %cst_45 {dimension_numbers = #tpu.dot_dimension_numbers<[1], [0], [0], [1], [0, 0, 1, 1], [], []>} : vector<256x32xf32>, vector<32x64xf32>, vector<256x64xf32> -> vector<256x64xf32>
    %c0_46 = arith.constant 0 : index
    %c0_47 = arith.constant 0 : index
    %94 = vector.load %arg7[%c0_46, %c0_47] : memref<1x64xf32, #tpu.memory_space<vmem>>, vector<1x64xf32>
    %95 = vector.shape_cast %94 : vector<1x64xf32> to vector<64xf32>
    %96 = vector.shape_cast %95 : vector<64xf32> to vector<1x64xf32>
    %97 = vector.broadcast %96 : vector<1x64xf32> to vector<256x64xf32>
    %98 = arith.addf %93, %97 : vector<256x64xf32>
    %99 = arith.negf %98 : vector<256x64xf32>
    %100 = math.exp %99 : vector<256x64xf32>
    %cst_48 = arith.constant 1.000000e+00 : f32
    %101 = vector.broadcast %cst_48 : f32 to vector<256x64xf32>
    %102 = arith.addf %101, %100 : vector<256x64xf32>
    %103 = arith.divf %101, %102 : vector<256x64xf32>
    %104 = arith.mulf %98, %103 : vector<256x64xf32>
    %105 = tpu.concatenate %104, %104 in 1 : vector<256x64xf32>, vector<256x64xf32> -> vector<256x128xf32>
    %106 = vector.shape_cast %105 : vector<256x128xf32> to vector<16x16x128xf32>
    %c1_49 = arith.constant 1 : index
    %c8_50 = arith.constant 8 : index
    %c0_51 = arith.constant 0 : index
    %107 = vector.load %arg15[%c1_49, %c8_50, %c0_51] : memref<18x32x128xf32, #tpu.memory_space<vmem>>, vector<16x16x128xf32>
    tpu.vector_store %arg15[%c1_49, %c8_50, %c0_51], %106 {strides = array<i32>} : memref<18x32x128xf32, #tpu.memory_space<vmem>>, vector<16x16x128xf32>,
    %c0_52 = arith.constant 0 : index
    %c0_53 = arith.constant 0 : index
    %c0_54 = arith.constant 0 : index
    %108 = vector.load %arg8[%c0_52, %c0_53, %c0_54] : memref<3x3x128xf32, #tpu.memory_space<vmem>>, vector<3x3x128xf32>
    %cst_55 = arith.constant 0.000000e+00 : f32
    %109 = vector.broadcast %cst_55 : f32 to vector<16x16x128xf32>
    %c0_56 = arith.constant 0 : index
    %c7_57 = arith.constant 7 : index
    %c0_58 = arith.constant 0 : index
    %110 = vector.load %arg15[%c0_56, %c7_57, %c0_58] : memref<18x32x128xf32, #tpu.memory_space<vmem>>, vector<16x16x128xf32>
    %111 = vector.extract_strided_slice %108 {offsets = [0, 0, 0], sizes = [1, 1, 128], strides = [1, 1, 1]} : vector<3x3x128xf32> to vector<1x1x128xf32>
    %112 = vector.shape_cast %111 : vector<1x1x128xf32> to vector<128xf32>
    %113 = vector.shape_cast %112 : vector<128xf32> to vector<1x1x128xf32>
    %114 = vector.broadcast %113 : vector<1x1x128xf32> to vector<16x16x128xf32>
    %115 = arith.mulf %110, %114 : vector<16x16x128xf32>
    %116 = arith.addf %109, %115 : vector<16x16x128xf32>
    %c0_59 = arith.constant 0 : index
    %c8_60 = arith.constant 8 : index
    %c0_61 = arith.constant 0 : index
    %117 = vector.load %arg15[%c0_59, %c8_60, %c0_61] : memref<18x32x128xf32, #tpu.memory_space<vmem>>, vector<16x16x128xf32>
    %118 = vector.extract_strided_slice %108 {offsets = [0, 1, 0], sizes = [1, 1, 128], strides = [1, 1, 1]} : vector<3x3x128xf32> to vector<1x1x128xf32>
    %119 = vector.shape_cast %118 : vector<1x1x128xf32> to vector<128xf32>
    %120 = vector.shape_cast %119 : vector<128xf32> to vector<1x1x128xf32>
    %121 = vector.broadcast %120 : vector<1x1x128xf32> to vector<16x16x128xf32>
    %122 = arith.mulf %117, %121 : vector<16x16x128xf32>
    %123 = arith.addf %116, %122 : vector<16x16x128xf32>
    %c0_62 = arith.constant 0 : index
    %c9_63 = arith.constant 9 : index
    %c0_64 = arith.constant 0 : index
    %124 = vector.load %arg15[%c0_62, %c9_63, %c0_64] : memref<18x32x128xf32, #tpu.memory_space<vmem>>, vector<16x16x128xf32>
    %125 = vector.extract_strided_slice %108 {offsets = [0, 2, 0], sizes = [1, 1, 128], strides = [1, 1, 1]} : vector<3x3x128xf32> to vector<1x1x128xf32>
    %126 = vector.shape_cast %125 : vector<1x1x128xf32> to vector<128xf32>
    %127 = vector.shape_cast %126 : vector<128xf32> to vector<1x1x128xf32>
    %128 = vector.broadcast %127 : vector<1x1x128xf32> to vector<16x16x128xf32>
    %129 = arith.mulf %124, %128 : vector<16x16x128xf32>
    %130 = arith.addf %123, %129 : vector<16x16x128xf32>
    %c1_65 = arith.constant 1 : index
    %c7_66 = arith.constant 7 : index
    %c0_67 = arith.constant 0 : index
    %131 = vector.load %arg15[%c1_65, %c7_66, %c0_67] : memref<18x32x128xf32, #tpu.memory_space<vmem>>, vector<16x16x128xf32>
    %132 = vector.extract_strided_slice %108 {offsets = [1, 0, 0], sizes = [1, 1, 128], strides = [1, 1, 1]} : vector<3x3x128xf32> to vector<1x1x128xf32>
    %133 = vector.shape_cast %132 : vector<1x1x128xf32> to vector<128xf32>
    %134 = vector.shape_cast %133 : vector<128xf32> to vector<1x1x128xf32>
    %135 = vector.broadcast %134 : vector<1x1x128xf32> to vector<16x16x128xf32>
    %136 = arith.mulf %131, %135 : vector<16x16x128xf32>
    %137 = arith.addf %130, %136 : vector<16x16x128xf32>
    %c1_68 = arith.constant 1 : index
    %c8_69 = arith.constant 8 : index
    %c0_70 = arith.constant 0 : index
    %138 = vector.load %arg15[%c1_68, %c8_69, %c0_70] : memref<18x32x128xf32, #tpu.memory_space<vmem>>, vector<16x16x128xf32>
    %139 = vector.extract_strided_slice %108 {offsets = [1, 1, 0], sizes = [1, 1, 128], strides = [1, 1, 1]} : vector<3x3x128xf32> to vector<1x1x128xf32>
    %140 = vector.shape_cast %139 : vector<1x1x128xf32> to vector<128xf32>
    %141 = vector.shape_cast %140 : vector<128xf32> to vector<1x1x128xf32>
    %142 = vector.broadcast %141 : vector<1x1x128xf32> to vector<16x16x128xf32>
    %143 = arith.mulf %138, %142 : vector<16x16x128xf32>
    %144 = arith.addf %137, %143 : vector<16x16x128xf32>
    %c1_71 = arith.constant 1 : index
    %c9_72 = arith.constant 9 : index
    %c0_73 = arith.constant 0 : index
    %145 = vector.load %arg15[%c1_71, %c9_72, %c0_73] : memref<18x32x128xf32, #tpu.memory_space<vmem>>, vector<16x16x128xf32>
    %146 = vector.extract_strided_slice %108 {offsets = [1, 2, 0], sizes = [1, 1, 128], strides = [1, 1, 1]} : vector<3x3x128xf32> to vector<1x1x128xf32>
    %147 = vector.shape_cast %146 : vector<1x1x128xf32> to vector<128xf32>
    %148 = vector.shape_cast %147 : vector<128xf32> to vector<1x1x128xf32>
    %149 = vector.broadcast %148 : vector<1x1x128xf32> to vector<16x16x128xf32>
    %150 = arith.mulf %145, %149 : vector<16x16x128xf32>
    %151 = arith.addf %144, %150 : vector<16x16x128xf32>
    %c2_74 = arith.constant 2 : index
    %c7_75 = arith.constant 7 : index
    %c0_76 = arith.constant 0 : index
    %152 = vector.load %arg15[%c2_74, %c7_75, %c0_76] : memref<18x32x128xf32, #tpu.memory_space<vmem>>, vector<16x16x128xf32>
    %153 = vector.extract_strided_slice %108 {offsets = [2, 0, 0], sizes = [1, 1, 128], strides = [1, 1, 1]} : vector<3x3x128xf32> to vector<1x1x128xf32>
    %154 = vector.shape_cast %153 : vector<1x1x128xf32> to vector<128xf32>
    %155 = vector.shape_cast %154 : vector<128xf32> to vector<1x1x128xf32>
    %156 = vector.broadcast %155 : vector<1x1x128xf32> to vector<16x16x128xf32>
    %157 = arith.mulf %152, %156 : vector<16x16x128xf32>
    %158 = arith.addf %151, %157 : vector<16x16x128xf32>
    %c2_77 = arith.constant 2 : index
    %c8_78 = arith.constant 8 : index
    %c0_79 = arith.constant 0 : index
    %159 = vector.load %arg15[%c2_77, %c8_78, %c0_79] : memref<18x32x128xf32, #tpu.memory_space<vmem>>, vector<16x16x128xf32>
    %160 = vector.extract_strided_slice %108 {offsets = [2, 1, 0], sizes = [1, 1, 128], strides = [1, 1, 1]} : vector<3x3x128xf32> to vector<1x1x128xf32>
    %161 = vector.shape_cast %160 : vector<1x1x128xf32> to vector<128xf32>
    %162 = vector.shape_cast %161 : vector<128xf32> to vector<1x1x128xf32>
    %163 = vector.broadcast %162 : vector<1x1x128xf32> to vector<16x16x128xf32>
    %164 = arith.mulf %159, %163 : vector<16x16x128xf32>
    %165 = arith.addf %158, %164 : vector<16x16x128xf32>
    %c2_80 = arith.constant 2 : index
    %c9_81 = arith.constant 9 : index
    %c0_82 = arith.constant 0 : index
    %166 = vector.load %arg15[%c2_80, %c9_81, %c0_82] : memref<18x32x128xf32, #tpu.memory_space<vmem>>, vector<16x16x128xf32>
    %167 = vector.extract_strided_slice %108 {offsets = [2, 2, 0], sizes = [1, 1, 128], strides = [1, 1, 1]} : vector<3x3x128xf32> to vector<1x1x128xf32>
    %168 = vector.shape_cast %167 : vector<1x1x128xf32> to vector<128xf32>
    %169 = vector.shape_cast %168 : vector<128xf32> to vector<1x1x128xf32>
    %170 = vector.broadcast %169 : vector<1x1x128xf32> to vector<16x16x128xf32>
    %171 = arith.mulf %166, %170 : vector<16x16x128xf32>
    %172 = arith.addf %165, %171 : vector<16x16x128xf32>
    %c0_83 = arith.constant 0 : index
    %c0_84 = arith.constant 0 : index
    %173 = vector.load %arg9[%c0_83, %c0_84] : memref<1x128xf32, #tpu.memory_space<vmem>>, vector<1x128xf32>
    %174 = vector.shape_cast %173 : vector<1x128xf32> to vector<128xf32>
    %175 = vector.shape_cast %174 : vector<128xf32> to vector<1x1x128xf32>
    %176 = vector.broadcast %175 : vector<1x1x128xf32> to vector<16x16x128xf32>
    %177 = arith.addf %172, %176 : vector<16x16x128xf32>
    %178 = vector.shape_cast %177 : vector<16x16x128xf32> to vector<256x128xf32>
    %cst_85 = arith.constant dense<0.000000e+00> : vector<128xf32>
    %179 = vector.multi_reduction <add>, %178, %cst_85 [0] : vector<256x128xf32> to vector<128xf32>
    %180 = vector.shape_cast %179 : vector<128xf32> to vector<1x128xf32>
    %cst_86 = arith.constant 2.560000e+02 : f32
    %181 = vector.broadcast %cst_86 : f32 to vector<1x128xf32>
    %182 = arith.divf %180, %181 : vector<1x128xf32>
    %c0_87 = arith.constant 0 : index
    %c0_88 = arith.constant 0 : index
    %183 = vector.load %arg10[%c0_87, %c0_88] : memref<128x16xf32, #tpu.memory_space<vmem>>, vector<128x16xf32>
    %cst_89 = arith.constant dense<0.000000e+00> : vector<1x16xf32>
    %184 = tpu.matmul %182, %183, %cst_89 {dimension_numbers = #tpu.dot_dimension_numbers<[1], [0], [0], [1], [0, 0, 1, 1], [], []>} : vector<1x128xf32>, vector<128x16xf32>, vector<1x16xf32> -> vector<1x16xf32>
    %c0_90 = arith.constant 0 : index
    %c0_91 = arith.constant 0 : index
    %185 = vector.load %arg11[%c0_90, %c0_91] : memref<1x16xf32, #tpu.memory_space<vmem>>, vector<1x16xf32>
    %186 = vector.shape_cast %185 : vector<1x16xf32> to vector<16xf32>
    %187 = vector.shape_cast %186 : vector<16xf32> to vector<1x16xf32>
    %188 = arith.addf %184, %187 : vector<1x16xf32>
    %189 = arith.negf %188 : vector<1x16xf32>
    %190 = math.exp %189 : vector<1x16xf32>
    %cst_92 = arith.constant 1.000000e+00 : f32
    %191 = vector.broadcast %cst_92 : f32 to vector<1x16xf32>
    %192 = arith.addf %191, %190 : vector<1x16xf32>
    %193 = arith.divf %191, %192 : vector<1x16xf32>
    %194 = arith.mulf %188, %193 : vector<1x16xf32>
    %c0_93 = arith.constant 0 : index
    %c0_94 = arith.constant 0 : index
    %195 = vector.load %arg12[%c0_93, %c0_94] : memref<16x128xf32, #tpu.memory_space<vmem>>, vector<16x128xf32>
    %cst_95 = arith.constant dense<0.000000e+00> : vector<1x128xf32>
    %196 = tpu.matmul %194, %195, %cst_95 {dimension_numbers = #tpu.dot_dimension_numbers<[1], [0], [0], [1], [0, 0, 1, 1], [], []>} : vector<1x16xf32>, vector<16x128xf32>, vector<1x128xf32> -> vector<1x128xf32>
    %c0_96 = arith.constant 0 : index
    %c0_97 = arith.constant 0 : index
    %197 = vector.load %arg13[%c0_96, %c0_97] : memref<1x128xf32, #tpu.memory_space<vmem>>, vector<1x128xf32>
    %198 = vector.shape_cast %197 : vector<1x128xf32> to vector<128xf32>
    %199 = vector.shape_cast %198 : vector<128xf32> to vector<1x128xf32>
    %200 = arith.addf %196, %199 : vector<1x128xf32>
    %201 = arith.negf %200 : vector<1x128xf32>
    %202 = math.exp %201 : vector<1x128xf32>
    %cst_98 = arith.constant 1.000000e+00 : f32
    %203 = vector.broadcast %cst_98 : f32 to vector<1x128xf32>
    %204 = arith.addf %203, %202 : vector<1x128xf32>
    %205 = arith.divf %203, %204 : vector<1x128xf32>
    %206 = vector.broadcast %205 : vector<1x128xf32> to vector<256x128xf32>
    %207 = arith.mulf %178, %206 : vector<256x128xf32>
    %208 = vector.shape_cast %207 : vector<256x128xf32> to vector<16x16x128xf32>
    %209 = arith.addf %208, %3 : vector<16x16x128xf32>
    %c0_99 = arith.constant 0 : index
    %c0_100 = arith.constant 0 : index
    %c0_101 = arith.constant 0 : index
    %c0_102 = arith.constant 0 : index
    %210 = vector.load %arg14[%c0_99, %c0_100, %c0_101, %c0_102] : memref<1x16x16x128xf32, #tpu.memory_space<vmem>>, vector<1x16x16x128xf32>
    %211 = vector.shape_cast %210 : vector<1x16x16x128xf32> to vector<16x16x128xf32>
    %212 = vector.shape_cast %209 : vector<16x16x128xf32> to vector<1x16x16x128xf32>
    tpu.vector_store %arg14[%c0_99, %c0_100, %c0_101, %c0_102], %212 {strides = array<i32>} : memref<1x16x16x128xf32, #tpu.memory_space<vmem>>, vector<1x16x16x128xf32>,
    return
  }
  func.func @transform_0(%arg0: i32) -> (i32, i32, i32, i32) {
    %c0_i32 = arith.constant 0 : i32
    %c0_i32_0 = arith.constant 0 : i32
    %c0_i32_1 = arith.constant 0 : i32
    %c0_i32_2 = arith.constant 0 : i32
    return %arg0, %c0_i32, %c0_i32_0, %c0_i32_1 : i32, i32, i32, i32
  }
  func.func @transform_1(%arg0: i32) -> (i32, i32, i32) {
    %c0_i32 = arith.constant 0 : i32
    %c0_i32_0 = arith.constant 0 : i32
    %c0_i32_1 = arith.constant 0 : i32
    %c0_i32_2 = arith.constant 0 : i32
    return %c0_i32, %c0_i32_0, %c0_i32_1 : i32, i32, i32
  }
  func.func @transform_2(%arg0: i32) -> (i32, i32) {
    %c0_i32 = arith.constant 0 : i32
    %c0_i32_0 = arith.constant 0 : i32
    %c0_i32_1 = arith.constant 0 : i32
    return %c0_i32, %c0_i32_0 : i32, i32
  }
  func.func @transform_3(%arg0: i32) -> (i32, i32) {
    %c0_i32 = arith.constant 0 : i32
    %c0_i32_0 = arith.constant 0 : i32
    %c0_i32_1 = arith.constant 0 : i32
    return %c0_i32, %c0_i32_0 : i32, i32
  }
  func.func @transform_4(%arg0: i32) -> (i32, i32) {
    %c0_i32 = arith.constant 0 : i32
    %c0_i32_0 = arith.constant 0 : i32
    %c0_i32_1 = arith.constant 0 : i32
    return %c0_i32, %c0_i32_0 : i32, i32
  }
  func.func @transform_5(%arg0: i32) -> (i32, i32) {
    %c0_i32 = arith.constant 0 : i32
    %c0_i32_0 = arith.constant 0 : i32
    %c0_i32_1 = arith.constant 0 : i32
    return %c0_i32, %c0_i32_0 : i32, i32
  }
  func.func @transform_6(%arg0: i32) -> (i32, i32) {
    %c0_i32 = arith.constant 0 : i32
    %c0_i32_0 = arith.constant 0 : i32
    %c0_i32_1 = arith.constant 0 : i32
    return %c0_i32, %c0_i32_0 : i32, i32
  }
  func.func @transform_7(%arg0: i32) -> (i32, i32, i32) {
    %c0_i32 = arith.constant 0 : i32
    %c0_i32_0 = arith.constant 0 : i32
    %c0_i32_1 = arith.constant 0 : i32
    %c0_i32_2 = arith.constant 0 : i32
    return %c0_i32, %c0_i32_0, %c0_i32_1 : i32, i32, i32
  }
  func.func @transform_8(%arg0: i32) -> (i32, i32) {
    %c0_i32 = arith.constant 0 : i32
    %c0_i32_0 = arith.constant 0 : i32
    %c0_i32_1 = arith.constant 0 : i32
    return %c0_i32, %c0_i32_0 : i32, i32
  }
  func.func @transform_9(%arg0: i32) -> (i32, i32) {
    %c0_i32 = arith.constant 0 : i32
    %c0_i32_0 = arith.constant 0 : i32
    %c0_i32_1 = arith.constant 0 : i32
    return %c0_i32, %c0_i32_0 : i32, i32
  }
  func.func @transform_10(%arg0: i32) -> (i32, i32) {
    %c0_i32 = arith.constant 0 : i32
    %c0_i32_0 = arith.constant 0 : i32
    %c0_i32_1 = arith.constant 0 : i32
    return %c0_i32, %c0_i32_0 : i32, i32
  }
  func.func @transform_11(%arg0: i32) -> (i32, i32) {
    %c0_i32 = arith.constant 0 : i32
    %c0_i32_0 = arith.constant 0 : i32
    %c0_i32_1 = arith.constant 0 : i32
    return %c0_i32, %c0_i32_0 : i32, i32
  }
  func.func @transform_12(%arg0: i32) -> (i32, i32) {
    %c0_i32 = arith.constant 0 : i32
    %c0_i32_0 = arith.constant 0 : i32
    %c0_i32_1 = arith.constant 0 : i32
    return %c0_i32, %c0_i32_0 : i32, i32
  }
  func.func @transform_13(%arg0: i32) -> (i32, i32, i32, i32) {
    %c0_i32 = arith.constant 0 : i32
    %c0_i32_0 = arith.constant 0 : i32
    %c0_i32_1 = arith.constant 0 : i32
    %c0_i32_2 = arith.constant 0 : i32
    return %arg0, %c0_i32, %c0_i32_0, %c0_i32_1 : i32, i32, i32, i32
  }
}

</mosaic_0001>

<bundles_post_ra>
// kernel: nesi2r_block.1
= control target key start
LH: loop header
LB: loop body
LE: loop exit
PB: predicated region body
PF: predicated region fallthrough
CT: control target
= control target key end

     0   :  { %s5085_s25 = smov 0   ;;  %s7624_s0 = inlined_call_operand.vmem [shape: f32[2,16,16,128], index: 0, kind: input, shape index: {}]   ;;  %s7625_s1 = inlined_call_operand.vmem [shape: f32[3,3,128], index: 1, kind: input, shape index: {}]   ;;  %s7626_s2 = inlined_call_operand.vmem [shape: f32[1,128], index: 2, kind: input, shape index: {}]   ;;  %s7627_s3 = inlined_call_operand.vmem [shape: f32[64,32], index: 3, kind: input, shape index: {}]   ;;  %s7628_s4 = inlined_call_operand.vmem [shape: f32[1,32], index: 4, kind: input, shape index: {}]   ;;  %s7629_s5 = inlined_call_operand.vmem [shape: f32[32,64], index: 5, kind: input, shape index: {}]   ;;  %s7630_s6 = inlined_call_operand.vmem [shape: f32[1,64], index: 6, kind: input, shape index: {}]   ;;  %s7631_s7 = inlined_call_operand.vmem [shape: f32[3,3,128], index: 7, kind: input, shape index: {}]   ;;  %s7632_s8 = inlined_call_operand.vmem [shape: f32[1,128], index: 8, kind: input, shape index: {}]   ;;  %s7633_s9 = inlined_call_operand.vmem [shape: f32[128,16], index: 9, kind: input, shape index: {}]   ;;  %s7634_s10 = inlined_call_operand.vmem [shape: f32[1,16], index: 10, kind: input, shape index: {}]   ;;  %s7635_s11 = inlined_call_operand.vmem [shape: f32[16,128], index: 11, kind: input, shape index: {}]   ;;  %s7636_s12 = inlined_call_operand.vmem [shape: f32[1,128], index: 12, kind: input, shape index: {}]   ;;  %s7637_s13 = inlined_call_operand.vmem [shape: f32[2,16,16,128], index: 13, kind: output, shape index: {}]  }
   0x1 LB: > { %s4304_s26 = sadd.s32 4294967295, %s5010_s25   ;;  %p4308_p0 = scmp.ge.s32.totalorder %s5010_s25, 1  ;;  %s5010_s25 = sphi %s5085_s25, %s23_s25  }
   0x2   : > { %p387_p1 = scmp.lt.s32.totalorder %s5010_s25, 3 }
   0x4   : > { %p388_p2 = pnand %p4308_p0, %p387_p1 }
   0x6   : > { %391 = sbr.rel (%p388_p2) target bundleno = 1454 (0x5ae), region = 72 }
   0xb   : > { %p5095_p3 = scmp.lt.s32.totalorder %s4304_s26, 1  ;;  %v613_v0 = vlaneseq  ;;  %v5012_v1 = vmov 0.0   ;;  %v578_v3 = vld [vmem:[%s7625_s1] sm:$0x7]  ;;  %v579_v7 = vld [vmem:[%s7625_s1 + $0x4] sm:$0x7] }
   0xc   : > { %441 = vst [vmem:[#allocation2] sm:$0xff] %v5012_v1  ;;  %442 = vst [vmem:[#allocation2 + $0x8] sm:$0xff] %v5012_v1  ;;  %v580_v8 = vld [vmem:[%s7625_s1 + $0x8] sm:$0x7]  ;;  %s5013_s23 = smov 64   ;;  %vm1920_vm0 = vcmask 523264  }
   0xd   : > { %443 = vst [vmem:[#allocation2 + $0x10] sm:$0xff] %v5012_v1  ;;  %445 = vst [vmem:[#allocation2 + $0x20] sm:$0xff] %v5012_v1  ;;  %s7870_s26 = smov (!%p5095_p3, %s4304_s26), 1  ;;  %v614_v2 = vshrl.u32 %v613_v0, 7  ;;  %vm2253_vm1 = vcmask 261120   ;;  %vm5014_vm2 = vmmov 0  }
   0xe   : > { %449 = vst [vmem:[#allocation2 + $0x40] sm:$0xff] %v5012_v1  ;;  %444 = vst [vmem:[#allocation2 + $0x18] sm:$0xff] %v5012_v1  ;;  %s4450_s30 = sshll.u32 %s7870_s26, 8  ;;  %vm4069_vm3 = vcmask 130048  }
   0xf   : > { %448 = vst [vmem:[#allocation2 + $0x38] sm:$0xff] %v5012_v1  ;;  %452 = vst [vmem:[#allocation2 + $0x58] sm:$0xff] %v5012_v1  ;;  %v5109_v4 = vsub.s32 0, %v614_v2  ;;  %v5111_v5 = vsub.s32 1, %v614_v2  ;;  %v5113_v6 = vsub.s32 2, %v614_v2  ;;  %s5120_s16 = scalar_lea.vmem %s7624_s0, %s4450_s30  ;;  %s7551_s28 = scalar_lea.vmem %s7637_s13, %s4450_s30 }
  0x10   : > { %453 = vst [vmem:[#allocation2 + $0x60] sm:$0xff] %v5012_v1  ;;  %456 = vst [vmem:[#allocation2 + $0x78] sm:$0xff] %v5012_v1  ;;  %v5129_v9 = vld [vmem:[%s5120_s16] sm:$0xff]  ;;  %v5132_v10 = vld [vmem:[%s5120_s16 + $0x8] sm:$0xff] }
  0x11   : > { %457 = vst [vmem:[#allocation2 + $0x80] sm:$0xff] %v5012_v1  ;;  %460 = vst [vmem:[#allocation2 + $0x98] sm:$0xff] %v5012_v1  ;;  %v5135_v11 = vld [vmem:[%s5120_s16 + $0x10] sm:$0xff]  ;;  %v5138_v12 = vrot.slane %v578_v3, %v5109_v4  ;;  %v5141_v13 = vrot.slane %v578_v3, %v5111_v5  ;;  %v5144_v14 = vrot.slane %v578_v3, %v5113_v6  ;;  %v5147_v15 = vld [vmem:[%s5120_s16 + $0x18] sm:$0xff] }
  0x12   : > { %461 = vst [vmem:[#allocation2 + $0xa0] sm:$0xff] %v5012_v1  ;;  %464 = vst [vmem:[#allocation2 + $0xb8] sm:$0xff] %v5012_v1  ;;  %v5153_v16 = vrot.slane %v579_v7, %v5111_v5  ;;  %v5156_v17 = vrot.slane %v580_v8, %v5111_v5  ;;  %v5159_v18 = vld [vmem:[%s5120_s16 + $0x20] sm:$0xff]  ;;  %v5162_v19 = vld [vmem:[%s5120_s16 + $0x28] sm:$0xff]  ;;  %v5171_v26 = vrot.slane %v579_v7, %v5109_v4 }
  0x13   : > { %465 = vst [vmem:[#allocation2 + $0xc0] sm:$0xff] %v5012_v1  ;;  %468 = vst [vmem:[#allocation2 + $0xd8] sm:$0xff] %v5012_v1  ;;  %v581_v20 = vld [vmem:[#allocation2 + $0x7] sm:$0xff]  ;;  %v717_v21 = vmul.f32 0.0, %v5141_v13  ;;  %v5174_v28 = vld [vmem:[%s5120_s16 + $0x30] sm:$0xff]  ;;  %v5180_v30 = vrot.slane %v579_v7, %v5113_v6  ;;  %v5183_v31 = vrot.slane %v580_v8, %v5109_v4  ;;  %v5186_v32 = vrot.slane %v580_v8, %v5113_v6 }
  0x14   : > { %469 = vst [vmem:[#allocation2 + $0xe0] sm:$0xff] %v5012_v1  ;;  %472 = vst [vmem:[#allocation2 + $0xf8] sm:$0xff] %v5012_v1  ;;  %v781_v22 = vld [vmem:[#allocation2 + $0x9] sm:$0xff]  ;;  %v617_v24 = vmul.f32 %v5138_v12, %v581_v20  ;;  %v5177_v29 = vld [vmem:[%s5120_s16 + $0x38] sm:$0xff]  ;;  %v1017_v38 = vmul.f32 %v5153_v16, %v5129_v9  ;;  %v5204_v39 = vmul.f32 %v5156_v17, %v5135_v11 }
  0x15   : > { %473 = vst [vmem:[#allocation2 + $0x100] sm:$0xff] %v5012_v1  ;;  %476 = vst [vmem:[#allocation2 + $0x118] sm:$0xff] %v5012_v1  ;;  %v582_v23 = vld [vmem:[#allocation2 + $0xf] sm:$0xff]  ;;  %v817_v25 = vmul.f32 %v5144_v14, %v781_v22  ;;  %v5192_v34 = vld [vmem:[%s5120_s16 + $0x40] sm:$0xff]  ;;  %v1018_v45 = vmul.f32 %v5153_v16, %v5132_v10  ;;  %v5223_v46 = vmul.f32 %v5156_v17, %v5147_v15 }
  0x16   : > { %477 = vst [vmem:[#allocation2 + $0x120] sm:$0xff] %v5012_v1  ;;  %480 = vst [vmem:[#allocation2 + $0x138] sm:$0xff] %v5012_v1  ;;  %v782_v27 = vld [vmem:[#allocation2 + $0x11] sm:$0xff]  ;;  %v618_v33 = vmul.f32 %v5138_v12, %v582_v23  ;;  %v5195_v35 = vld [vmem:[%s5120_s16 + $0x48] sm:$0xff]  ;;  %v749_v37 = vadd.f32 %v717_v21, %v617_v24  ;;  %v719_v47 = vmul.f32 %v5141_v13, %v5129_v9 }
  0x17   : > { %481 = vst [vmem:[#allocation2 + $0x140] sm:$0xff] %v5012_v1  ;;  %484 = vst [vmem:[#allocation2 + $0x158] sm:$0xff] %v5012_v1  ;;  %v5198_v36 = vld [vmem:[%s5120_s16 + $0x50] sm:$0xff]  ;;  %v818_v40 = vmul.f32 %v5144_v14, %v782_v27  ;;  %v5210_v41 = vld [vmem:[%s5120_s16 + $0x58] sm:$0xff]  ;;  %v1019_v52 = vmul.f32 %v5153_v16, %v5135_v11  ;;  %v5243_v53 = vmul.f32 %v5156_v17, %v5159_v18 }
  0x18   : > { %485 = vst [vmem:[#allocation2 + $0x160] sm:$0xff] %v5012_v1  ;;  %488 = vst [vmem:[#allocation2 + $0x178] sm:$0xff] %v5012_v1  ;;  %v5214_v42 = vld [vmem:[%s5120_s16 + $0x60] sm:$0xff]  ;;  %v5217_v43 = vld [vmem:[%s5120_s16 + $0x68] sm:$0xff]  ;;  %v750_v44 = vadd.f32 %v717_v21, %v618_v33  ;;  %v849_v51 = vadd.f32 %v817_v25, %v749_v37  ;;  %v720_v54 = vmul.f32 %v5141_v13, %v5132_v10 }
  0x19   : > { %489 = vst [vmem:[#allocation2 + $0x180] sm:$0xff] %v5012_v1  ;;  %492 = vst [vmem:[#allocation2 + $0x198] sm:$0xff] %v5012_v1  ;;  %v5231_v48 = vld [vmem:[%s5120_s16 + $0x70] sm:$0xff]  ;;  %v5234_v49 = vld [vmem:[%s5120_s16 + $0x78] sm:$0xff]  ;;  %v5261_v61 = vmul.f32 %v5153_v16, %v5147_v15  ;;  %v5265_v62 = vmul.f32 %v5156_v17, %v5162_v19  ;;  %v721_v63 = vmul.f32 %v5141_v13, %v5135_v11 }
  0x1a   : > { %493 = vst [vmem:[#allocation2 + $0x1a0] sm:$0xff] %v5012_v1  ;;  %496 = vst [vmem:[#allocation2 + $0x1b8] sm:$0xff] %v5012_v1  ;;  %v5237_v50 = vld [vmem:[%s5120_s16 + $0x80] sm:$0xff]  ;;  %v5250_v55 = vld [vmem:[%s5120_s16 + $0x88] sm:$0xff]  ;;  %v850_v60 = vadd.f32 %v818_v40, %v750_v44  ;;  %v5276_v7 = vmul.f32 %v5153_v16, %v5159_v18  ;;  %v5280_v8 = vmul.f32 %v5156_v17, %v5174_v28 }
  0x1b   : > { %497 = vst [vmem:[#allocation2 + $0x1c0] sm:$0xff] %v5012_v1  ;;  %500 = vst [vmem:[#allocation2 + $0x1d8] sm:$0xff] %v5012_v1  ;;  %v5254_v56 = vld [vmem:[%s5120_s16 + $0x90] sm:$0xff]  ;;  %v5257_v57 = vld [vmem:[%s5120_s16 + $0x98] sm:$0xff] }
  0x1c   : > { %501 = vst [vmem:[#allocation2 + $0x1e0] sm:$0xff] %v5012_v1  ;;  %504 = vst [vmem:[#allocation2 + $0x1f8] sm:$0xff] %v5012_v1 }
  0x1d   : > { %505 = vst [vmem:[#allocation2 + $0x200] sm:$0xff] %v5012_v1  ;;  %508 = vst [vmem:[#allocation2 + $0x218] sm:$0xff] %v5012_v1 }
  0x1e   : > { %509 = vst [vmem:[#allocation2 + $0x220] sm:$0xff] %v5012_v1  ;;  %510 = vst [vmem:[#allocation2 + $0x228] sm:$0xff] %v5012_v1 }
  0x1f   : > { %511 = vst [vmem:[#allocation2 + $0x230] sm:$0xff] %v5012_v1  ;;  %512 = vst [vmem:[#allocation2 + $0x238] sm:$0xff] %v5012_v1 }
  0x20   : > { %7722 = vst [vmem:[#allocation3_spill] sm:$0xff] %v5109_v4  ;;  %7723 = vst [vmem:[#allocation4_spill] sm:$0xff] %v5111_v5 }
  0x21   : > { %7724 = vst [vmem:[#allocation5_spill] sm:$0xff] %v5113_v6  ;;  %7725 = vst [vmem:[#allocation6_spill] sm:$0xff] %v5129_v9 }
  0x22   : > { %7726 = vst [vmem:[#allocation7_spill] sm:$0xff] %v5132_v10  ;;  %7727 = vst [vmem:[#allocation8_spill] sm:$0xff] %v5135_v11 }
  0x23   : > { %7728 = vst [vmem:[#allocation9_spill] sm:$0xff] %v5147_v15  ;;  %546 = vst [vmem:[#allocation2 + $0x28] sm:$0xff] %v5129_v9 }
  0x24   : > { %547 = vst [vmem:[#allocation2 + $0x30] sm:$0xff] %v5132_v10  ;;  %548 = vst [vmem:[#allocation2 + $0x48] sm:$0xff] %v5135_v11 }
  0x25   : > { %7729 = vst [vmem:[#allocation10_spill] sm:$0xff] %v5159_v18  ;;  %7730 = vst [vmem:[#allocation11_spill] sm:$0xff] %v5162_v19 }
  0x26   : > { %549 = vst [vmem:[#allocation2 + $0x50] sm:$0xff] %v5147_v15  ;;  %550 = vst [vmem:[#allocation2 + $0x68] sm:$0xff] %v5159_v18 }
  0x27   : > { %551 = vst [vmem:[#allocation2 + $0x70] sm:$0xff] %v5162_v19  ;;  %7731 = vst [vmem:[#allocation12_spill] sm:$0xff] %v5174_v28 }
  0x28   : > { %7732 = vst [vmem:[#allocation13_spill] sm:$0xff] %v5177_v29  ;;  %552 = vst [vmem:[#allocation2 + $0x88] sm:$0xff] %v5174_v28 }
  0x29   : > { %553 = vst [vmem:[#allocation2 + $0x90] sm:$0xff] %v5177_v29  ;;  %7733 = vst [vmem:[#allocation14_spill] sm:$0xff] %v5192_v34 }
  0x2a   : > { %7734 = vst [vmem:[#allocation15_spill] sm:$0xff] %v5195_v35  ;;  %7735 = vst [vmem:[#allocation16_spill] sm:$0xff] %v5198_v36  ;;  %v881_v58 = vld [vmem:[#allocation2 + $0x27] sm:$0xff] }
  0x2b   : > { %554 = vst [vmem:[#allocation2 + $0xa8] sm:$0xff] %v5192_v34  ;;  %555 = vst [vmem:[#allocation2 + $0xb0] sm:$0xff] %v5195_v35  ;;  %v1081_v59 = vld [vmem:[#allocation2 + $0x29] sm:$0xff]  ;;  %v917_v0 = vmul.f32 %v5171_v26, %v881_v58  ;;  %v619_v3 = vmul.f32 %v881_v58, %v5138_v12  ;;  %v1082_v24 = vld [vmem:[#allocation2 + $0x31] sm:$0xff] }
  0x2c   : > { %7736 = vst [vmem:[#allocation17_spill] sm:$0xff] %v5210_v41  ;;  %556 = vst [vmem:[#allocation2 + $0xc8] sm:$0xff] %v5198_v36  ;;  %v1182_v1 = vld [vmem:[#allocation2 + $0x47] sm:$0xff]  ;;  %v882_v2 = vld [vmem:[#allocation2 + $0x2f] sm:$0xff]  ;;  %v1117_v20 = vmul.f32 %v5180_v30, %v1081_v59  ;;  %v819_v27 = vmul.f32 %v1081_v59, %v5144_v14  ;;  %v1118_v40 = vmul.f32 %v5180_v30, %v1082_v24 }
  0x2d   : > { %7737 = vst [vmem:[#allocation18_spill] sm:$0xff] %v5214_v42  ;;  %7738 = vst [vmem:[#allocation19_spill] sm:$0xff] %v5217_v43  ;;  %v1218_v21 = vmul.f32 %v5183_v31, %v1182_v1  ;;  %v1382_v22 = vld [vmem:[#allocation2 + $0x49] sm:$0xff]  ;;  %v918_v23 = vmul.f32 %v5171_v26, %v882_v2  ;;  %v949_v33 = vadd.f32 %v917_v0, %v849_v51  ;;  %v1383_v44 = vld [vmem:[#allocation2 + $0x51] sm:$0xff] }
  0x2e   : > { %557 = vst [vmem:[#allocation2 + $0xd0] sm:$0xff] %v5210_v41  ;;  %558 = vst [vmem:[#allocation2 + $0xe8] sm:$0xff] %v5214_v42  ;;  %v1183_v25 = vld [vmem:[#allocation2 + $0x4f] sm:$0xff]  ;;  %v1418_v37 = vmul.f32 %v5186_v32, %v1382_v22  ;;  %v751_v58 = vadd.f32 %v719_v47, %v619_v3  ;;  %v5288_v11 = vld [vmem:[#allocation2 + $0x67] sm:$0xff]  ;;  %v1419_v5 = vmul.f32 %v5186_v32, %v1383_v44 }
  0x2f   : > { %559 = vst [vmem:[#allocation2 + $0xf0] sm:$0xff] %v5217_v43  ;;  %7739 = vst [vmem:[#allocation20_spill] sm:$0xff] %v5231_v48  ;;  %v5290_v10 = vld [vmem:[#allocation2 + $0x69] sm:$0xff]  ;;  %v950_v9 = vadd.f32 %v918_v23, %v850_v60  ;;  %v1219_v6 = vmul.f32 %v5183_v31, %v1183_v25  ;;  %v919_v4 = vmul.f32 %v1182_v1, %v5171_v26 }
  0x30   : > { %7740 = vst [vmem:[#allocation21_spill] sm:$0xff] %v5234_v49  ;;  %7741 = vst [vmem:[#allocation22_spill] sm:$0xff] %v5237_v50  ;;  %v851_v59 = vadd.f32 %v819_v27, %v751_v58  ;;  %v1119_v51 = vmul.f32 %v1382_v22, %v5180_v30  ;;  %v620_v0 = vmul.f32 %v882_v2, %v5138_v12  ;;  %v5306_v58 = vld [vmem:[#allocation2 + $0x6f] sm:$0xff] }
  0x31   : > { %560 = vst [vmem:[#allocation2 + $0x108] sm:$0xff] %v5231_v48  ;;  %561 = vst [vmem:[#allocation2 + $0x110] sm:$0xff] %v5234_v49  ;;  %v1220_v47 = vmul.f32 %v5183_v31, %v5288_v11  ;;  %v5301_v3 = vmul.f32 %v5186_v32, %v5290_v10  ;;  %v820_v60 = vmul.f32 %v1082_v24, %v5144_v14 }
  0x32   : > { %7742 = vst [vmem:[#allocation23_spill] sm:$0xff] %v5250_v55  ;;  %562 = vst [vmem:[#allocation2 + $0x128] sm:$0xff] %v5237_v50  ;;  %v752_v50 = vadd.f32 %v720_v54, %v620_v0  ;;  %v1221_v24 = vmul.f32 %v5183_v31, %v5306_v58  ;;  %v5337_v0 = vld [vmem:[%s5120_s16 + $0xa0] sm:$0xff] }
  0x33   : > { %7743 = vst [vmem:[#allocation24_spill] sm:$0xff] %v5254_v56  ;;  %7744 = vst [vmem:[#allocation25_spill] sm:$0xff] %v5257_v57 }
  0x34   : > { %563 = vst [vmem:[#allocation2 + $0x130] sm:$0xff] %v5250_v55  ;;  %564 = vst [vmem:[#allocation2 + $0x148] sm:$0xff] %v5254_v56  ;;  %v1050_v56 = vadd.f32 %v1018_v45, %v950_v9  ;;  %v951_v55 = vadd.f32 %v919_v4, %v851_v59  ;;  %v621_v9 = vmul.f32 %v1182_v1, %v5138_v12  ;;  %v5333_v59 = vld [vmem:[#allocation2 + $0x87] sm:$0xff] }
  0x35   : > { %565 = vst [vmem:[#allocation2 + $0x150] sm:$0xff] %v5257_v57  ;;  %v1049_v57 = vadd.f32 %v1017_v38, %v949_v33  ;;  %v920_v38 = vmul.f32 %v1183_v25, %v5171_v26  ;;  %v1120_v33 = vmul.f32 %v1383_v44, %v5180_v30  ;;  %v821_v45 = vmul.f32 %v1382_v22, %v5144_v14 }
  0x36   : > { %v1150_v27 = vadd.f32 %v1118_v40, %v1050_v56  ;;  %v1051_v49 = vadd.f32 %v1019_v52, %v951_v55  ;;  %v852_v48 = vadd.f32 %v820_v60, %v752_v50  ;;  %v753_v56 = vadd.f32 %v721_v63, %v621_v9  ;;  %566 = vst [vmem:[#allocation2 + $0x168] sm:$0xff] %v5337_v0 }
  0x37   : > { %v1149_v23 = vadd.f32 %v1117_v20, %v1049_v57  ;;  %v5312_v57 = vld [vmem:[#allocation2 + $0x71] sm:$0xff]  ;;  %v921_v1 = vmul.f32 %v5288_v11, %v5171_v26  ;;  %v1121_v55 = vmul.f32 %v5290_v10, %v5180_v30  ;;  %v622_v22 = vmul.f32 %v1183_v25, %v5138_v12 }
  0x38   : > { %v1251_v4 = vadd.f32 %v1219_v6, %v1150_v27  ;;  %v5316_v54 = vmul.f32 %v5186_v32, %v5312_v57  ;;  %v1151_v52 = vadd.f32 %v1119_v51, %v1051_v49  ;;  %v952_v50 = vadd.f32 %v920_v38, %v852_v48  ;;  %v5326_v6 = vld [vmem:[%s7626_s2] ss:$0 sm:$0xff] }
  0x39   : > { %v1250_v2 = vadd.f32 %v1218_v21, %v1149_v23  ;;  %v853_v63 = vadd.f32 %v821_v45, %v753_v56  ;;  %v722_v40 = vmul.f32 %v5141_v13, %v5147_v15  ;;  %v822_v51 = vmul.f32 %v1383_v44, %v5144_v14  ;;  %v5342_v23 = vld [vmem:[#allocation2 + $0x89] sm:$0xff]  ;;  %v536_v44 = vld [vmem:[%s5120_s16 + $0xb8] sm:$0xff] }
  0x3a   : > { %v1351_v21 = vadd.f32 %v5223_v46, %v1251_v4  ;;  %v1252_v48 = vadd.f32 %v1220_v47, %v1151_v52  ;;  %v1052_v49 = vadd.f32 %v5261_v61, %v952_v50  ;;  %v5340_v46 = vld [vmem:[%s5120_s16 + $0xa8] sm:$0xff]  ;;  %v5349_v61 = vld [vmem:[%s5120_s16 + $0xb0] sm:$0xff]  ;;  %v537_v47 = vld [vmem:[%s5120_s16 + $0xc0] sm:$0xff]  ;;  %v1222_v45 = vmul.f32 %v5183_v31, %v5333_v59  ;;  %569 = vst [vmem:[#allocation2 + $0x190] sm:$0xff] %v536_v44 }
  0x3b   : > { %v1350_v20 = vadd.f32 %v5204_v39, %v1250_v2  ;;  %v953_v25 = vadd.f32 %v921_v1, %v853_v63  ;;  %v754_v38 = vadd.f32 %v722_v40, %v622_v22  ;;  %567 = vst [vmem:[#allocation2 + $0x170] sm:$0xff] %v5340_v46  ;;  %568 = vst [vmem:[#allocation2 + $0x188] sm:$0xff] %v5349_v61  ;;  %v538_v2 = vld [vmem:[%s5120_s16 + $0xc8] sm:$0xff]  ;;  %v539_v4 = vld [vmem:[%s5120_s16 + $0xd0] sm:$0xff] }
  0x3c   : > { %v1451_v60 = vadd.f32 %v1419_v5, %v1351_v21  ;;  %v1352_v27 = vadd.f32 %v5243_v53, %v1252_v48  ;;  %v1152_v9 = vadd.f32 %v1120_v33, %v1052_v49  ;;  %570 = vst [vmem:[#allocation2 + $0x1a8] sm:$0xff] %v537_v47  ;;  %v540_v56 = vld [vmem:[%s5120_s16 + $0xd8] sm:$0xff]  ;;  %v1022_v33 = vmul.f32 %v5153_v16, %v5162_v19  ;;  %v541_v52 = vld [vmem:[%s5120_s16 + $0xe0] sm:$0xff]  ;;  %v542_v50 = vld [vmem:[%s5120_s16 + $0xe8] sm:$0xff] }
  0x3d   : > { %v1450_v39 = vadd.f32 %v1418_v37, %v1350_v20  ;;  %v922_v37 = vmul.f32 %v5306_v58, %v5171_v26  ;;  %v1053_v53 = vadd.f32 %v5276_v7, %v953_v25  ;;  %v854_v20 = vadd.f32 %v822_v51, %v754_v38  ;;  %571 = vst [vmem:[#allocation2 + $0x1b0] sm:$0xff] %v538_v2  ;;  %v543_v21 = vld [vmem:[%s5120_s16 + $0xf0] sm:$0xff]  ;;  %v544_v7 = vld [vmem:[%s5120_s16 + $0xf8] sm:$0xff] }
  0x3e   : > { %v5364_v1 = vadd.f32 %v5326_v6, %v1451_v60  ;;  %572 = vst [vmem:[#allocation2 + $0x1c8] sm:$0xff] %v539_v4  ;;  %573 = vst [vmem:[#allocation2 + $0x1d0] sm:$0xff] %v540_v56  ;;  %v1452_v22 = vadd.f32 %v5301_v3, %v1352_v27  ;;  %v1253_v40 = vadd.f32 %v1221_v24, %v1152_v9  ;;  %v5380_v25 = vld [vmem:[#allocation2 + $0x8f] sm:$0xff] }
  0x3f   : > { %v5354_v5 = vadd.f32 %v5326_v6, %v1450_v39  ;;  %v1422_v39 = vmul.f32 %v5186_v32, %v5342_v23  ;;  %574 = vst [vmem:[#allocation2 + $0x1e8] sm:$0xff] %v541_v52  ;;  %575 = vst [vmem:[#allocation2 + $0x1f0] sm:$0xff] %v542_v50  ;;  %v1153_v49 = vadd.f32 %v1121_v55, %v1053_v53  ;;  %v5392_v9 = vld [vmem:[#allocation2 + $0x91] sm:$0xff]  ;;  %v5412_v50 = vld [vmem:[#allocation2 + $0xa7] sm:$0xff] }
  0x40   : > { %576 = vst [vmem:[#allocation2 + $0x208] sm:$0xff] %v543_v21  ;;  %v4315_v48 = vmul.f32 -1.442695, %v5364_v1  ;;  %v954_v51 = vadd.f32 %v922_v37, %v854_v20  ;;  %v1122_v60 = vmul.f32 %v5312_v57, %v5180_v30  ;;  %577 = vst [vmem:[#allocation2 + $0x210] sm:$0xff] %v544_v7  ;;  %v5383_v3 = vadd.f32 %v5326_v6, %v1452_v22 }
  0x41   : > { %v4314_v63 = vmul.f32 -1.442695, %v5354_v5  ;;  %v1353_v24 = vadd.f32 %v5265_v62, %v1253_v40  ;;  %v1223_v38 = vmul.f32 %v5183_v31, %v5380_v25  ;;  %v1254_v44 = vadd.f32 %v1222_v45, %v1153_v49 }
  0x42   : > { %v1054_v47 = vadd.f32 %v1022_v33, %v954_v51  ;;  %v623_v55 = vmul.f32 %v5288_v11, %v5138_v12  ;;  %v4316_v37 = vmul.f32 -1.442695, %v5383_v3  ;;  %v723_v2 = vmul.f32 %v5141_v13, %v5159_v18 }
  0x43   : > { %4721 = vpow2.f32 %v4314_v63  ;;  %v1453_v27 = vadd.f32 %v5316_v54, %v1353_v24  ;;  %v823_v62 = vmul.f32 %v5290_v10, %v5144_v14  ;;  %v1354_v4 = vadd.f32 %v5280_v8, %v1254_v44 }
  0x44   : > { %4723 = vpow2.f32 %v4315_v48  ;;  %v1154_v56 = vadd.f32 %v1122_v60, %v1054_v47  ;;  %v1323_v45 = vmul.f32 %v5156_v17, %v5177_v29  ;;  %v1423_v11 = vmul.f32 %v5186_v32, %v5392_v9  ;;  %v5422_v48 = vld [vmem:[#allocation2 + $0xa9] sm:$0xff] }
  0x45   : > { %4725 = vpow2.f32 %v4316_v37  ;;  %v5404_v54 = vadd.f32 %v5326_v6, %v1453_v27  ;;  %v755_v53 = vadd.f32 %v723_v2, %v623_v55  ;;  %v923_v20 = vmul.f32 %v5333_v59, %v5171_v26  ;;  %v5435_v37 = vld [vmem:[#allocation2 + $0xaf] sm:$0xff] }
  0x46   : > { %v1454_v33 = vadd.f32 %v1422_v39, %v1354_v4  ;;  %v1255_v52 = vadd.f32 %v1223_v38, %v1154_v56  ;;  %v1023_v10 = vmul.f32 %v5153_v16, %v5174_v28  ;;  %v1123_v8 = vmul.f32 %v5342_v23, %v5180_v30 }
  0x47   : > { %v4317_v21 = vmul.f32 -1.442695, %v5404_v54  ;;  %v855_v63 = vadd.f32 %v823_v62, %v755_v53  ;;  %v1224_v22 = vmul.f32 %v5183_v31, %v5412_v50  ;;  %v624_v40 = vmul.f32 %v5306_v58, %v5138_v12 }
  0x48   : > { %v5420_v39 = vadd.f32 %v5326_v6, %v1454_v33  ;;  %v1355_v7 = vadd.f32 %v1323_v45, %v1255_v52  ;;  %v724_v49 = vmul.f32 %v5141_v13, %v5162_v19  ;;  %v824_v51 = vmul.f32 %v5312_v57, %v5144_v14 }
  0x49   : > { %4727 = vpow2.f32 %v4317_v21  ;;  %v955_v60 = vadd.f32 %v923_v20, %v855_v63  ;;  %v1324_v24 = vmul.f32 %v5156_v17, %v5192_v34  ;;  %v1424_v58 = vmul.f32 %v5186_v32, %v5422_v48  ;;  %v5450_v20 = vld [vmem:[#allocation2 + $0xb1] sm:$0xff] }
  0x4a   : > { %v4318_v38 = vmul.f32 -1.442695, %v5420_v39  ;;  %v1455_v44 = vadd.f32 %v1423_v11, %v1355_v7  ;;  %v756_v47 = vadd.f32 %v724_v49, %v624_v40  ;;  %v924_v55 = vmul.f32 %v5380_v25, %v5171_v26 }
  0x4b   : > { %v1055_v27 = vadd.f32 %v1023_v10, %v955_v60  ;;  %v1024_v57 = vmul.f32 %v5153_v16, %v5177_v29  ;;  %v1124_v2 = vmul.f32 %v5392_v9, %v5180_v30  ;;  %v1225_v62 = vmul.f32 %v5183_v31, %v5435_v37 }
  0x4c   : > { %4729 = vpow2.f32 %v4318_v38  ;;  %v5444_v4 = vadd.f32 %v5326_v6, %v1455_v44  ;;  %v856_v56 = vadd.f32 %v824_v51, %v756_v47  ;;  %v625_v45 = vmul.f32 %v5333_v59, %v5138_v12  ;;  %v5465_v47 = vld [vmem:[#allocation2 + $0xc7] sm:$0xff] }
  0x4d   : > { %v1155_v11 = vadd.f32 %v1123_v8, %v1055_v27  ;;  %v1325_v53 = vmul.f32 %v5156_v17, %v5195_v35  ;;  %v725_v33 = vmul.f32 %v5141_v13, %v5174_v28  ;;  %v825_v52 = vmul.f32 %v5342_v23, %v5144_v14 }
  0x4e   : > { %v4319_v21 = vmul.f32 -1.442695, %v5444_v4  ;;  %v956_v63 = vadd.f32 %v924_v55, %v856_v56  ;;  %v1425_v40 = vmul.f32 %v5186_v32, %v5450_v20  ;;  %v925_v59 = vmul.f32 %v5412_v50, %v5171_v26 }
  0x4f   : > { %v1256_v49 = vadd.f32 %v1224_v22, %v1155_v11  ;;  %v757_v51 = vadd.f32 %v725_v33, %v625_v45  ;;  %v1025_v60 = vmul.f32 %v5153_v16, %v5192_v34  ;;  %v1125_v44 = vmul.f32 %v5422_v48, %v5180_v30 }
  0x50   : > { %v4722_v10 = vpop.eup %4721  ;;  %4731 = vpow2.f32 %v4319_v21  ;;  %v1056_v23 = vadd.f32 %v1024_v57, %v956_v63  ;;  %v1226_v56 = vmul.f32 %v5183_v31, %v5465_v47  ;;  %v626_v45 = vmul.f32 %v5380_v25, %v5138_v12 }
  0x51   : > { %v4724_v8 = vpop.eup %4723  ;;  %v1617_v7 = vadd.f32 1.0, %v4722_v10  ;;  %v1356_v55 = vadd.f32 %v1324_v24, %v1256_v49  ;;  %v857_v27 = vadd.f32 %v825_v52, %v757_v51  ;;  %v726_v57 = vmul.f32 %v5141_v13, %v5177_v29 }
  0x52   : > { %v1618_v38 = vadd.f32 1.0, %v4724_v8  ;;  %v4726_v10 = vpop.eup %4725  ;;  %v1156_v22 = vadd.f32 %v1124_v2, %v1056_v23  ;;  %v826_v63 = vmul.f32 %v5392_v9, %v5144_v14  ;;  %v1326_v52 = vmul.f32 %v5156_v17, %v5198_v36  ;;  %v5477_v8 = vld [vmem:[#allocation2 + $0xc9] sm:$0xff] }
  0x53   : > { %4733 = vrcp.f32 %v1617_v7  ;;  %v1619_v11 = vadd.f32 1.0, %v4726_v10  ;;  %v1456_v33 = vadd.f32 %v1424_v58, %v1356_v55  ;;  %v957_v21 = vadd.f32 %v925_v59, %v857_v27  ;;  %v5490_v23 = vld [vmem:[#allocation2 + $0xcf] sm:$0xff] }
  0x54   : > { %4735 = vrcp.f32 %v1618_v38  ;;  %v1257_v24 = vadd.f32 %v1225_v62, %v1156_v22  ;;  %v758_v7 = vadd.f32 %v726_v57, %v626_v45  ;;  %v926_v2 = vmul.f32 %v5435_v37, %v5171_v26 }
  0x55   : > { %4737 = vrcp.f32 %v1619_v11  ;;  %v5482_v25 = vadd.f32 %v5326_v6, %v1456_v33  ;;  %v1057_v49 = vadd.f32 %v1025_v60, %v957_v21  ;;  %v1426_v58 = vmul.f32 %v5186_v32, %v5477_v8 }
  0x56   : > { %v4728_v59 = vpop.eup %4727  ;;  %v1357_v9 = vadd.f32 %v1325_v53, %v1257_v24  ;;  %v858_v62 = vadd.f32 %v826_v63, %v758_v7  ;;  %v1026_v51 = vmul.f32 %v5153_v16, %v5195_v35  ;;  %v1126_v38 = vmul.f32 %v5450_v20, %v5180_v30  ;;  %v5506_v7 = vld [vmem:[#allocation2 + $0xd1] sm:$0xff] }
  0x57   : > { %v1620_v55 = vadd.f32 1.0, %v4728_v59  ;;  %v4320_v27 = vmul.f32 -1.442695, %v5482_v25  ;;  %v1157_v10 = vadd.f32 %v1125_v44, %v1057_v49  ;;  %v1227_v60 = vmul.f32 %v5183_v31, %v5490_v23 }
  0x58   : > { %v1457_v22 = vadd.f32 %v1425_v40, %v1357_v9  ;;  %v958_v45 = vadd.f32 %v926_v2, %v858_v62  ;;  %v627_v53 = vmul.f32 %v5412_v50, %v5138_v12  ;;  %v727_v57 = vmul.f32 %v5141_v13, %v5192_v34  ;;  %v5515_v62 = vld [vmem:[#allocation2 + $0xe7] sm:$0xff] }
  0x59   : > { %v4730_v11 = vpop.eup %4729  ;;  %4739 = vrcp.f32 %v1620_v55  ;;  %v1258_v33 = vadd.f32 %v1226_v56, %v1157_v10  ;;  %v1327_v21 = vmul.f32 %v5156_v17, %v5210_v41  ;;  %v827_v44 = vmul.f32 %v5422_v48, %v5144_v14 }
  0x5a   : > { %v1621_v63 = vadd.f32 1.0, %v4730_v11  ;;  %4741 = vpow2.f32 %v4320_v27  ;;  %v5504_v40 = vadd.f32 %v5326_v6, %v1457_v22  ;;  %v1058_v24 = vadd.f32 %v1026_v51, %v958_v45 }
  0x5b   : > { %v1358_v50 = vadd.f32 %v1326_v52, %v1258_v33  ;;  %v1427_v2 = vmul.f32 %v5186_v32, %v5506_v7  ;;  %v759_v49 = vadd.f32 %v727_v57, %v627_v53  ;;  %v927_v56 = vmul.f32 %v5465_v47, %v5171_v26 }
  0x5c   : > { %4743 = vrcp.f32 %v1621_v63  ;;  %v4321_v59 = vmul.f32 -1.442695, %v5504_v40  ;;  %v1158_v48 = vadd.f32 %v1126_v38, %v1058_v24  ;;  %v1027_v9 = vmul.f32 %v5153_v16, %v5198_v36 }
  0x5d   : > { %v4732_v51 = vpop.eup %4731  ;;  %v1458_v55 = vadd.f32 %v1426_v58, %v1358_v50  ;;  %v859_v27 = vadd.f32 %v827_v44, %v759_v49  ;;  %v1127_v52 = vmul.f32 %v5477_v8, %v5180_v30  ;;  %v1228_v10 = vmul.f32 %v5183_v31, %v5515_v62  ;;  %v5539_v50 = vld [vmem:[#allocation2 + $0xe9] sm:$0xff] }
  0x5e   : > { %v1622_v45 = vadd.f32 1.0, %v4732_v51  ;;  %4745 = vpow2.f32 %v4321_v59  ;;  %v1259_v53 = vadd.f32 %v1227_v60, %v1158_v48  ;;  %v628_v38 = vmul.f32 %v5435_v37, %v5138_v12 }
  0x5f   : > { %v5527_v58 = vadd.f32 %v5326_v6, %v1458_v55  ;;  %v959_v33 = vadd.f32 %v927_v56, %v859_v27  ;;  %v728_v44 = vmul.f32 %v5141_v13, %v5195_v35  ;;  %v828_v60 = vmul.f32 %v5450_v20, %v5144_v14  ;;  %v5552_v27 = vld [vmem:[#allocation2 + $0xef] sm:$0xff] }
  0x60   : > { %v4734_v22 = vpop.eup %4733  ;;  %4747 = vrcp.f32 %v1622_v45  ;;  %v1359_v24 = vadd.f32 %v1327_v21, %v1259_v53  ;;  %v928_v56 = vmul.f32 %v5490_v23, %v5171_v26  ;;  %v1328_v21 = vmul.f32 %v5156_v17, %v5214_v42  ;;  %v5621_v35 = vld [vmem:[#allocation2 + $0x10f] sm:$0xff] }
  0x61   : > { %v4736_v57 = vpop.eup %4735  ;;  %v5524_v11 = vmul.f32 %v4734_v22, %v5354_v5  ;;  %v4322_v5 = vmul.f32 -1.442695, %v5527_v58  ;;  %v1059_v37 = vadd.f32 %v1027_v9, %v959_v33  ;;  %v760_v49 = vadd.f32 %v728_v44, %v628_v38 }
  0x62   : > { %v5532_v63 = vmul.f32 %v4736_v57, %v5364_v1  ;;  %v4738_v1 = vpop.eup %4737  ;;  %v1459_v59 = vadd.f32 %v1427_v2, %v1359_v24  ;;  %v1428_v20 = vmul.f32 %v5186_v32, %v5539_v50  ;;  %v1028_v48 = vmul.f32 %v5153_v16, %v5210_v41 }
  0x63   : > { %1777 = vrot.lane.b32.xlu0 %v5524_v11, %s5013_s23  ;;  %v5550_v51 = vmul.f32 %v4738_v1, %v5383_v3  ;;  %4749 = vpow2.f32 %v4322_v5  ;;  %v1159_v9 = vadd.f32 %v1127_v52, %v1059_v37  ;;  %v860_v55 = vadd.f32 %v828_v60, %v760_v49  ;;  %v5579_v49 = vld [vmem:[#allocation2 + $0xf1] sm:$0xff] }
  0x64   : > { %v5555_v22 = vadd.f32 %v5326_v6, %v1459_v59  ;;  %v1128_v2 = vmul.f32 %v5506_v7, %v5180_v30  ;;  %v1229_v45 = vmul.f32 %v5183_v31, %v5552_v27  ;;  %v629_v53 = vmul.f32 %v5465_v47, %v5138_v12 }
  0x65   : > { %1781 = vrot.lane.b32.xlu1 %v5550_v51, %s5013_s23  ;;  %v1260_v3 = vadd.f32 %v1228_v10, %v1159_v9  ;;  %v960_v52 = vadd.f32 %v928_v56, %v860_v55  ;;  %v729_v38 = vmul.f32 %v5141_v13, %v5198_v36  ;;  %v1329_v44 = vmul.f32 %v5156_v17, %v5217_v43 }
  0x66   : > { %v4740_v57 = vpop.eup %4739  ;;  %v4323_v33 = vmul.f32 -1.442695, %v5555_v22  ;;  %v829_v47 = vmul.f32 %v5477_v8, %v5144_v14  ;;  %v929_v24 = vmul.f32 %v5515_v62, %v5171_v26  ;;  %v1429_v59 = vmul.f32 %v5186_v32, %v5579_v49 }
  0x67   : > { %1779 = vrot.lane.b32.xlu0 %v5532_v63, %s5013_s23  ;;  %v4742_v60 = vpop.eup %4741  ;;  %v5577_v5 = vmul.f32 %v4740_v57, %v5404_v54  ;;  %v1360_v10 = vadd.f32 %v1328_v21, %v1260_v3  ;;  %v1060_v37 = vadd.f32 %v1028_v48, %v960_v52  ;;  %v761_v56 = vadd.f32 %v729_v38, %v629_v53  ;;  %v5589_v48 = vld [vmem:[#allocation2 + $0x107] sm:$0xff] }
  0x68   : > { %v1623_v1 = vadd.f32 1.0, %v4742_v60  ;;  %4751 = vpow2.f32 %v4323_v33  ;;  %v1029_v8 = vmul.f32 %v5153_v16, %v5214_v42  ;;  %v1129_v21 = vmul.f32 %v5539_v50, %v5180_v30  ;;  %v7745_v60 = vld [vmem:[#allocation20_spill] sm:$0xff] }
  0x69   : > { %v4744_v9 = vpop.eup %4743  ;;  %1783 = vrot.lane.b32.xlu1 %v5577_v5, %s5013_s23  ;;  %v1460_v55 = vadd.f32 %v1428_v20, %v1360_v10  ;;  %v1160_v54 = vadd.f32 %v1128_v2, %v1060_v37  ;;  %v861_v57 = vadd.f32 %v829_v47, %v761_v56  ;;  %v1230_v3 = vmul.f32 %v5183_v31, %v5589_v48 }
  0x6a   : > { %v5592_v53 = vmul.f32 %v4744_v9, %v5420_v39  ;;  %4753 = vrcp.f32 %v1623_v1  ;;  %v630_v52 = vmul.f32 %v5490_v23, %v5138_v12  ;;  %v730_v47 = vmul.f32 %v5141_v13, %v5210_v41  ;;  %v5612_v9 = vld [vmem:[#allocation2 + $0x109] sm:$0xff] }
  0x6b   : > { %v4746_v38 = vpop.eup %4745  ;;  %v5599_v20 = vadd.f32 %v5326_v6, %v1460_v55  ;;  %v1261_v2 = vadd.f32 %v1229_v45, %v1160_v54  ;;  %v961_v33 = vadd.f32 %v929_v24, %v861_v57  ;;  %v1330_v10 = vmul.f32 %v5156_v17, %v7745_v60 }
  0x6c   : > { %1785 = vrot.lane.b32.xlu0 %v5592_v53, %s5013_s23  ;;  %v1624_v39 = vadd.f32 1.0, %v4746_v38  ;;  %v830_v37 = vmul.f32 %v5506_v7, %v5144_v14  ;;  %v930_v23 = vmul.f32 %v5552_v27, %v5171_v26  ;;  %v762_v55 = vadd.f32 %v730_v47, %v630_v52 }
  0x6d   : > { %v4748_v56 = vpop.eup %4747  ;;  %v4324_v45 = vmul.f32 -1.442695, %v5599_v20  ;;  %v1361_v24 = vadd.f32 %v1329_v44, %v1261_v2  ;;  %v1061_v1 = vadd.f32 %v1029_v8, %v961_v33  ;;  %v1430_v57 = vmul.f32 %v5186_v32, %v5612_v9 }
  0x6e   : > { %v5615_v54 = vmul.f32 %v4748_v56, %v5444_v4  ;;  %4755 = vrcp.f32 %v1624_v39  ;;  %v1030_v7 = vmul.f32 %v5153_v16, %v5217_v43  ;;  %v862_v36 = vadd.f32 %v830_v37, %v762_v55  ;;  %v7746_v39 = vld [vmem:[#allocation21_spill] sm:$0xff] }
  0x6f   : > { %4757 = vpow2.f32 %v4324_v45  ;;  %v1461_v38 = vadd.f32 %v1429_v59, %v1361_v24  ;;  %v1161_v41 = vadd.f32 %v1129_v21, %v1061_v1  ;;  %v1130_v4 = vmul.f32 %v5579_v49, %v5180_v30 }
  0x70   : > { %v4750_v44 = vpop.eup %4749  ;;  %1787 = vrot.lane.b32.xlu1 %v5615_v54, %s5013_s23  ;;  %v1231_v8 = vmul.f32 %v5183_v31, %v5621_v35  ;;  %v631_v52 = vmul.f32 %v5515_v62, %v5138_v12  ;;  %v731_v59 = vmul.f32 %v5141_v13, %v5214_v42  ;;  %v962_v47 = vadd.f32 %v930_v23, %v862_v36  ;;  %v5651_v23 = vld [vmem:[#allocation2 + $0x127] sm:$0xff] }
  0x71   : > { %v1625_v21 = vadd.f32 1.0, %v4750_v44  ;;  %v5634_v2 = vadd.f32 %v5326_v6, %v1461_v38  ;;  %v1262_v33 = vadd.f32 %v1230_v3, %v1161_v41  ;;  %v1331_v37 = vmul.f32 %v5156_v17, %v7746_v39  ;;  %v5643_v44 = vld [vmem:[#allocation2 + $0x111] sm:$0xff] }
  0x72   : > { %v763_v56 = vadd.f32 %v731_v59, %v631_v52  ;;  %v831_v45 = vmul.f32 %v5539_v50, %v5144_v14  ;;  %v931_v24 = vmul.f32 %v5589_v48, %v5171_v26  ;;  %v1062_v55 = vadd.f32 %v1030_v7, %v962_v47 }
  0x73   : > { %4759 = vrcp.f32 %v1625_v21  ;;  %v4325_v62 = vmul.f32 -1.442695, %v5634_v2  ;;  %v1362_v1 = vadd.f32 %v1330_v10, %v1262_v33  ;;  %v1431_v36 = vmul.f32 %v5186_v32, %v5643_v44 }
  0x74   : > { %v863_v41 = vadd.f32 %v831_v45, %v763_v56  ;;  %v1031_v3 = vmul.f32 %v5153_v16, %v7745_v60  ;;  %v1131_v50 = vmul.f32 %v5612_v9, %v5180_v30  ;;  %v1162_v59 = vadd.f32 %v1130_v4, %v1062_v55 }
  0x75   : > { %v4752_v38 = vpop.eup %4751  ;;  %4761 = vpow2.f32 %v4325_v62  ;;  %v1462_v52 = vadd.f32 %v1430_v57, %v1362_v1  ;;  %v1232_v10 = vmul.f32 %v5183_v31, %v5651_v23  ;;  %v632_v33 = vmul.f32 %v5552_v27, %v5138_v12  ;;  %v5669_v27 = vld [vmem:[#allocation2 + $0x129] sm:$0xff] }
  0x76   : > { %v1626_v7 = vadd.f32 1.0, %v4752_v38  ;;  %v963_v21 = vadd.f32 %v931_v24, %v863_v41  ;;  %v732_v47 = vmul.f32 %v5141_v13, %v5217_v43  ;;  %v1263_v42 = vadd.f32 %v1231_v8, %v1162_v59  ;;  %v7747_v38 = vld [vmem:[#allocation22_spill] sm:$0xff] }
  0x77   : > { %v4754_v56 = vpop.eup %4753  ;;  %v5660_v45 = vadd.f32 %v5326_v6, %v1462_v52  ;;  %v832_v57 = vmul.f32 %v5579_v49, %v5144_v14  ;;  %v932_v4 = vmul.f32 %v5621_v35, %v5171_v26  ;;  %v1332_v8 = vmul.f32 %v5156_v17, %v7747_v38 }
  0x78   : > { %v5667_v62 = vmul.f32 %v4754_v56, %v5482_v25  ;;  %4763 = vrcp.f32 %v1626_v7  ;;  %v1063_v24 = vadd.f32 %v1031_v3, %v963_v21  ;;  %v764_v1 = vadd.f32 %v732_v47, %v632_v33  ;;  %v5682_v7 = vld [vmem:[#allocation2 + $0x12f] sm:$0xff] }
  0x79   : > { %v4326_v55 = vmul.f32 -1.442695, %v5660_v45  ;;  %v1363_v41 = vadd.f32 %v1331_v37, %v1263_v42  ;;  %v1432_v49 = vmul.f32 %v5186_v32, %v5669_v27  ;;  %v1032_v3 = vmul.f32 %v5153_v16, %v7746_v39 }
  0x7a   : > { %1789 = vrot.lane.b32.xlu0 %v5667_v62, %s5013_s23  ;;  %v1163_v52 = vadd.f32 %v1131_v50, %v1063_v24  ;;  %v864_v25 = vadd.f32 %v832_v57, %v764_v1  ;;  %v1132_v59 = vmul.f32 %v5643_v44, %v5180_v30  ;;  %v1233_v21 = vmul.f32 %v5183_v31, %v5682_v7 }
  0x7b   : > { %v4756_v42 = vpop.eup %4755  ;;  %4765 = vpow2.f32 %v4326_v55  ;;  %v1463_v37 = vadd.f32 %v1431_v36, %v1363_v41  ;;  %v633_v33 = vmul.f32 %v5589_v48, %v5138_v12  ;;  %v733_v24 = vmul.f32 %v5141_v13, %v7745_v60  ;;  %v7748_v36 = vld [vmem:[#allocation23_spill] sm:$0xff] }
  0x7c   : > { %v4758_v47 = vpop.eup %4757  ;;  %v5689_v50 = vmul.f32 %v4756_v42, %v5504_v40  ;;  %v1264_v56 = vadd.f32 %v1232_v10, %v1163_v52  ;;  %v964_v57 = vadd.f32 %v932_v4, %v864_v25  ;;  %v1333_v55 = vmul.f32 %v5156_v17, %v7748_v36  ;;  %v5702_v10 = vld [vmem:[#allocation2 + $0x131] sm:$0xff] }
  0x7d   : > { %v1627_v1 = vadd.f32 1.0, %v4758_v47  ;;  %v5694_v43 = vadd.f32 %v5326_v6, %v1463_v37  ;;  %v833_v41 = vmul.f32 %v5612_v9, %v5144_v14  ;;  %v765_v4 = vadd.f32 %v733_v24, %v633_v33  ;;  %v5713_v33 = vld [vmem:[#allocation2 + $0x147] sm:$0xff] }
  0x7e   : > { %1791 = vrot.lane.b32.xlu1 %v5689_v50, %s5013_s23  ;;  %v1364_v40 = vadd.f32 %v1332_v8, %v1264_v56  ;;  %v1064_v48 = vadd.f32 %v1032_v3, %v964_v57  ;;  %v933_v52 = vmul.f32 %v5651_v23, %v5171_v26  ;;  %v1433_v42 = vmul.f32 %v5186_v32, %v5702_v10 }
  0x7f   : > { %4767 = vrcp.f32 %v1627_v1  ;;  %v4327_v25 = vmul.f32 -1.442695, %v5694_v43  ;;  %v1033_v9 = vmul.f32 %v5153_v16, %v7747_v38  ;;  %v865_v8 = vadd.f32 %v833_v41, %v765_v4  ;;  %v7749_v4 = vld [vmem:[#allocation24_spill] sm:$0xff] }
  0x80   : > { %v4760_v37 = vpop.eup %4759  ;;  %v1464_v47 = vadd.f32 %v1432_v49, %v1364_v40  ;;  %v1164_v60 = vadd.f32 %v1132_v59, %v1064_v48  ;;  %v1133_v3 = vmul.f32 %v5669_v27, %v5180_v30  ;;  %v1234_v57 = vmul.f32 %v5183_v31, %v5713_v33  ;;  %v5725_v40 = vld [vmem:[#allocation2 + $0x149] sm:$0xff] }
  0x81   : > { %v5716_v56 = vmul.f32 %v4760_v37, %v5527_v58  ;;  %4769 = vpow2.f32 %v4327_v25  ;;  %v634_v24 = vmul.f32 %v5621_v35, %v5138_v12  ;;  %v965_v41 = vadd.f32 %v933_v52, %v865_v8 }
  0x82   : > { %v4762_v1 = vpop.eup %4761  ;;  %v5723_v49 = vadd.f32 %v5326_v6, %v1464_v47  ;;  %v1265_v59 = vadd.f32 %v1233_v21, %v1164_v60  ;;  %v734_v48 = vmul.f32 %v5141_v13, %v7746_v39  ;;  %v1334_v25 = vmul.f32 %v5156_v17, %v7749_v4 }
  0x83   : > { %1793 = vrot.lane.b32.xlu0 %v5716_v56, %s5013_s23  ;;  %v1628_v58 = vadd.f32 1.0, %v4762_v1  ;;  %v1434_v35 = vmul.f32 %v5186_v32, %v5725_v40  ;;  %v834_v37 = vmul.f32 %v5643_v44, %v5144_v14  ;;  %v1065_v52 = vadd.f32 %v1033_v9, %v965_v41 }
  0x84   : > { %v4328_v60 = vmul.f32 -1.442695, %v5723_v49  ;;  %v1365_v21 = vadd.f32 %v1333_v55, %v1265_v59  ;;  %v766_v47 = vadd.f32 %v734_v48, %v634_v24  ;;  %v934_v39 = vmul.f32 %v5682_v7, %v5171_v26  ;;  %v5747_v55 = vld [vmem:[#allocation2 + $0x14f] sm:$0xff] }
  0x85   : > { %v4764_v8 = vpop.eup %4763  ;;  %4771 = vrcp.f32 %v1628_v58  ;;  %v1034_v1 = vmul.f32 %v5153_v16, %v7748_v36  ;;  %v1134_v34 = vmul.f32 %v5702_v10, %v5180_v30  ;;  %v1165_v28 = vadd.f32 %v1133_v3, %v1065_v52  ;;  %v7750_v3 = vld [vmem:[#allocation25_spill] sm:$0xff] }
  0x86   : > { %v5745_v29 = vmul.f32 %v4764_v8, %v5555_v22  ;;  %4773 = vpow2.f32 %v4328_v60  ;;  %v1465_v44 = vadd.f32 %v1433_v42, %v1365_v21  ;;  %v866_v9 = vadd.f32 %v834_v37, %v766_v47  ;;  %v1911_v60 = vld [vmem:[%s7627_s3 + $0x30] sm:$0xff] }
  0x87   : > { %v1235_v24 = vmul.f32 %v5183_v31, %v5747_v55  ;;  %v635_v59 = vmul.f32 %v5651_v23, %v5138_v12  ;;  %v735_v41 = vmul.f32 %v5141_v13, %v7747_v38  ;;  %v1266_v42 = vadd.f32 %v1234_v57, %v1165_v28  ;;  %v1912_v23 = vld [vmem:[%s7627_s3 + $0x38] sm:$0xff] }
  0x88   : > { %v4766_v48 = vpop.eup %4765  ;;  %1795 = vrot.lane.b32.xlu1 %v5745_v29, %s5013_s23  ;;  %v5758_v22 = vadd.f32 %v5326_v6, %v1465_v44  ;;  %v1335_v58 = vmul.f32 %v5156_v17, %v7750_v3  ;;  %v835_v37 = vmul.f32 %v5669_v27, %v5144_v14  ;;  %v966_v52 = vadd.f32 %v934_v39, %v866_v9  ;;  %v5770_v47 = vld [vmem:[#allocation2 + $0x151] sm:$0xff]  ;;  %v1910_v39 = vld [vmem:[%s7627_s3 + $0x28] sm:$0xff] }
  0x89   : > { %v1629_v21 = vadd.f32 1.0, %v4766_v48  ;;  %v767_v8 = vadd.f32 %v735_v41, %v635_v59  ;;  %v935_v28 = vmul.f32 %v5713_v33, %v5171_v26  ;;  %4548 = vmatprep.subr.mxu0 %v1912_v23  ;;  %v1366_v27 = vadd.f32 %v1334_v25, %v1266_v42  ;;  %v5784_v48 = vld [vmem:[#allocation2 + $0x167] sm:$0xff] }
  0x8a   : > { %v4329_v57 = vmul.f32 -1.442695, %v5758_v22  ;;  %v1435_v44 = vmul.f32 %v5186_v32, %v5770_v47  ;;  %v1035_v38 = vmul.f32 %v5153_v16, %v7749_v4  ;;  %4549 = vmatpush3.msra.mxu0 %v1912_v23  ;;  %v1066_v9 = vadd.f32 %v1034_v1, %v966_v52  ;;  %v1909_v1 = vld [vmem:[%s7627_s3 + $0x20] sm:$0xff] }
  0x8b   : > { %4775 = vrcp.f32 %v1629_v21  ;;  %v867_v59 = vadd.f32 %v835_v37, %v767_v8  ;;  %v1135_v41 = vmul.f32 %v5725_v40, %v5180_v30  ;;  %4550 = vmatprep.subr.mxu0 %v1911_v60  ;;  %v1466_v42 = vadd.f32 %v1434_v35, %v1366_v27 }
  0x8c   : > { %v4768_v25 = vpop.eup %4767  ;;  %4777 = vpow2.f32 %v4329_v57  ;;  %v1236_v4 = vmul.f32 %v5183_v31, %v5784_v48  ;;  %v636_v23 = vmul.f32 %v5682_v7, %v5138_v12  ;;  %4551 = vmatpush3.msra.mxu0 %v1911_v60  ;;  %v1166_v21 = vadd.f32 %v1134_v34, %v1066_v9  ;;  %v1908_v34 = vld [vmem:[%s7627_s3 + $0x18] sm:$0xff] }
  0x8d   : > { %v5794_v37 = vmul.f32 %v4768_v25, %v5599_v20  ;;  %v967_v52 = vadd.f32 %v935_v28, %v867_v59  ;;  %v736_v8 = vmul.f32 %v5141_v13, %v7748_v36  ;;  %4552 = vmatprep.subr.mxu0 %v1910_v39  ;;  %v5799_v57 = vadd.f32 %v5326_v6, %v1466_v42  ;;  %v5812_v59 = vld [vmem:[#allocation2 + $0x169] sm:$0xff] }
  0x8e   : > { %v4770_v35 = vpop.eup %4769  ;;  %v1336_v7 = vmul.f32 %v5156_v17, %v5337_v0  ;;  %v836_v60 = vmul.f32 %v5702_v10, %v5144_v14  ;;  %v936_v20 = vmul.f32 %v5747_v55, %v5171_v26  ;;  %4553 = vmatpush3.msra.mxu0 %v1910_v39  ;;  %v1267_v27 = vadd.f32 %v1235_v24, %v1166_v21 }
  0x8f   : > { %1797 = vrot.lane.b32.xlu0 %v5794_v37, %s5013_s23  ;;  %v1630_v28 = vadd.f32 1.0, %v4770_v35  ;;  %v1067_v9 = vadd.f32 %v1035_v38, %v967_v52  ;;  %v768_v25 = vadd.f32 %v736_v8, %v636_v23  ;;  %4554 = vmatprep.subr.mxu0 %v1909_v1  ;;  %v4330_v10 = vmul.f32 -1.442695, %v5799_v57  ;;  %v1907_v38 = vld [vmem:[%s7627_s3 + $0x10] sm:$0xff] }
  0x90   : > { %v1436_v42 = vmul.f32 %v5186_v32, %v5812_v59  ;;  %v1036_v39 = vmul.f32 %v5153_v16, %v7750_v3  ;;  %v1136_v36 = vmul.f32 %v5770_v47, %v5180_v30  ;;  %4555 = vmatpush3.msra.mxu0 %v1909_v1  ;;  %v1367_v24 = vadd.f32 %v1335_v58, %v1267_v27  ;;  %v5824_v52 = vld [vmem:[#allocation2 + $0x16f] sm:$0xff] }
  0x91   : > { %4779 = vrcp.f32 %v1630_v28  ;;  %v1167_v23 = vadd.f32 %v1135_v41, %v1067_v9  ;;  %v868_v21 = vadd.f32 %v836_v60, %v768_v25  ;;  %4556 = vmatprep.subr.mxu0 %v1908_v34  ;;  %v1237_v3 = vmul.f32 %v5183_v31, %v5824_v52  ;;  %v5830_v1 = vld [vmem:[#allocation2 + $0x148] sm:$0xff] }
  0x92   : > { %v4772_v8 = vpop.eup %4771  ;;  %4781 = vpow2.f32 %v4330_v10  ;;  %v637_v35 = vmul.f32 %v5713_v33, %v5138_v12  ;;  %7751 = vst [vmem:[#allocation24_spill] sm:$0xff] %v5830_v1  ;;  %v737_v19 = vmul.f32 %v5830_v1, %v5141_v13  ;;  %4557 = vmatpush3.msra.mxu0 %v1908_v34  ;;  %v1467_v60 = vadd.f32 %v1435_v44, %v1367_v24  ;;  %v1906_v9 = vld [vmem:[%s7627_s3 + $0x8] sm:$0xff]  ;;  %v5851_v24 = vld [vmem:[#allocation2 + $0x171] sm:$0xff] }
  0x93   : > { %v4774_v58 = vpop.eup %4773  ;;  %v5835_v41 = vmul.f32 %v4772_v8, %v5634_v2  ;;  %v1268_v28 = vadd.f32 %v1236_v4, %v1167_v23  ;;  %v968_v27 = vadd.f32 %v936_v20, %v868_v21  ;;  %4558 = vmatprep.subr.mxu0 %v1907_v38  ;;  %v837_v10 = vmul.f32 %v5725_v40, %v5144_v14 }
  0x94   : > { %v1631_v25 = vadd.f32 1.0, %v4774_v58  ;;  %v769_v33 = vadd.f32 %v737_v19, %v637_v35  ;;  %v937_v34 = vmul.f32 %v5784_v48, %v5171_v26  ;;  %4559 = vmatpush3.msra.mxu0 %v1907_v38  ;;  %v5847_v2 = vadd.f32 %v5326_v6, %v1467_v60  ;;  %v1905_v19 = vld [vmem:[%s7627_s3] sm:$0xff] }
  0x95   : > { %1799 = vrot.lane.b32.xlu1 %v5835_v41, %s5013_s23  ;;  %v1368_v44 = vadd.f32 %v1336_v7, %v1268_v28  ;;  %v1068_v4 = vadd.f32 %v1036_v39, %v968_v27  ;;  %v1337_v20 = vmul.f32 %v5156_v17, %v5340_v46  ;;  %v1437_v40 = vmul.f32 %v5186_v32, %v5851_v24  ;;  %v5863_v35 = vld [vmem:[#allocation2 + $0x187] sm:$0xff] }
  0x96   : > { %4783 = vrcp.f32 %v1631_v25  ;;  %v869_v38 = vadd.f32 %v837_v10, %v769_v33  ;;  %v1037_v23 = vmul.f32 %v5153_v16, %v5337_v0  ;;  %4560 = vmatprep.subr.mxu0 %v1906_v9  ;;  %v4331_v7 = vmul.f32 -1.442695, %v5847_v2  ;;  %v5869_v0 = vld [vmem:[#allocation2 + $0x150] sm:$0xff] }
  0x97   : > { %v1468_v39 = vadd.f32 %v1436_v42, %v1368_v44  ;;  %v1168_v21 = vadd.f32 %v1136_v36, %v1068_v4  ;;  %v1137_v8 = vmul.f32 %v5812_v59, %v5180_v30  ;;  %4561 = vmatpush3.msra.mxu0 %v1906_v9  ;;  %v1238_v28 = vmul.f32 %v5183_v31, %v5863_v35 }
  0x98   : > { %v4776_v58 = vpop.eup %4775  ;;  %v969_v60 = vadd.f32 %v937_v34, %v869_v38  ;;  %v638_v27 = vmul.f32 %v5747_v55, %v5138_v12  ;;  %7752 = vst [vmem:[#allocation25_spill] sm:$0xff] %v5869_v0  ;;  %v738_v42 = vmul.f32 %v5869_v0, %v5141_v13  ;;  %4562 = vmatprep.subr.mxu0 %v1905_v19  ;;  %4785 = vpow2.f32 %v4331_v7 }
  0x99   : > { %v4778_v36 = vpop.eup %4777  ;;  %v5874_v25 = vmul.f32 %v4776_v58, %v5660_v45  ;;  %v5877_v9 = vadd.f32 %v5326_v6, %v1468_v39  ;;  %v1269_v33 = vadd.f32 %v1237_v3, %v1168_v21  ;;  %4563 = vmatpush3.msra.mxu0 %v1905_v19  ;;  %v838_v55 = vmul.f32 %v5770_v47, %v5144_v14  ;;  %v5888_v19 = vld [vmem:[#allocation2 + $0x189] sm:$0xff] }
  0x9a   : > { %v1632_v10 = vadd.f32 1.0, %v4778_v36  ;;  %v1069_v34 = vadd.f32 %v1037_v23, %v969_v60  ;;  %v770_v44 = vadd.f32 %v738_v42, %v638_v27  ;;  %v1338_v45 = vmul.f32 %v5156_v17, %v5349_v61  ;;  %v5896_v61 = vld [vmem:[#allocation2 + $0x18f] sm:$0xff]  ;;  %v5908_v42 = vld [vmem:[%s7626_s2] ss:$0 sm:$0xff] }
  0x9b   : > { %7753 = vst [vmem:[#allocation26_spill] sm:$0xff] %v5874_v25  ;;  %1801 = vrot.lane.b32.xlu0 %v5874_v25, %s5013_s23  ;;  %v4332_v4 = vmul.f32 -1.442695, %v5877_v9  ;;  %v1369_v38 = vadd.f32 %v1337_v20, %v1269_v33  ;;  %v938_v6 = vmul.f32 %v5824_v52, %v5171_v26  ;;  %v1038_v47 = vmul.f32 %v5153_v16, %v5340_v46  ;;  %v6173_v25 = vld [vmem:[#allocation2 + $0x210] sm:$0xff] }
  0x9c   : > { %4787 = vrcp.f32 %v1632_v10  ;;  %v1169_v3 = vadd.f32 %v1137_v8, %v1069_v34  ;;  %v870_v23 = vadd.f32 %v838_v55, %v770_v44  ;;  %v1438_v39 = vmul.f32 %v5186_v32, %v5888_v19  ;;  %v5919_v44 = vld [vmem:[#allocation2 + $0x190] sm:$0xff]  ;;  %7773 = vst [vmem:[#allocation46_spill] sm:$0xff] %v6173_v25 }
  0x9d   : > { %4789 = vpow2.f32 %v4332_v4  ;;  %v1469_v7 = vadd.f32 %v1437_v40, %v1369_v38  ;;  %v1138_v20 = vmul.f32 %v5851_v24, %v5180_v30  ;;  %v1239_v8 = vmul.f32 %v5183_v31, %v5896_v61  ;;  %7756 = vst [vmem:[#allocation29_spill] sm:$0xff] %v5919_v44  ;;  %v5923_v4 = vld [vmem:[#allocation2 + $0x191] sm:$0xff] }
  0x9e   : > { %v4780_v21 = vpop.eup %4779  ;;  %v1270_v58 = vadd.f32 %v1238_v28, %v1169_v3  ;;  %v970_v60 = vadd.f32 %v938_v6, %v870_v23  ;;  %v639_v27 = vmul.f32 %v5784_v48, %v5138_v12  ;;  %v5913_v28 = vld [vmem:[#allocation2 + $0x168] sm:$0xff]  ;;  %v839_v48 = vmul.f32 %v5812_v59, %v5144_v14 }
  0x9f   : > { %v4782_v46 = vpop.eup %4781  ;;  %v5903_v40 = vmul.f32 %v4780_v21, %v5694_v43  ;;  %v5911_v36 = vadd.f32 %v5908_v42, %v1469_v7  ;;  %7755 = vst [vmem:[#allocation28_spill] sm:$0xff] %v5913_v28  ;;  %v739_v33 = vmul.f32 %v5913_v28, %v5141_v13  ;;  %v1339_v55 = vmul.f32 %v5919_v44, %v5156_v17  ;;  %v5936_v21 = vld [vmem:[#allocation2 + $0x1a7] sm:$0xff] }
  0xa0   : > { %v1633_v10 = vadd.f32 1.0, %v4782_v46  ;;  %v1370_v34 = vadd.f32 %v1338_v45, %v1270_v58  ;;  %v1070_v43 = vadd.f32 %v1038_v47, %v970_v60  ;;  %v1439_v6 = vmul.f32 %v5186_v32, %v5923_v4  ;;  %v5932_v47 = vld [vmem:[#allocation2 + $0x188] sm:$0xff] }
  0xa1   : > { %7754 = vst [vmem:[#allocation27_spill] sm:$0xff] %v5903_v40  ;;  %1803 = vrot.lane.b32.xlu1 %v5903_v40, %s5013_s23  ;;  %v4333_v38 = vmul.f32 -1.442695, %v5911_v36  ;;  %v771_v3 = vadd.f32 %v739_v33, %v639_v27  ;;  %v939_v59 = vmul.f32 %v5863_v35, %v5171_v26  ;;  %7757 = vst [vmem:[#allocation30_spill] sm:$0xff] %v5932_v47 }
  0xa2   : > { %4791 = vrcp.f32 %v1633_v10  ;;  %v1470_v45 = vadd.f32 %v1438_v39, %v1370_v34  ;;  %v1170_v23 = vadd.f32 %v1138_v20, %v1070_v43  ;;  %v1039_v7 = vmul.f32 %v5932_v47, %v5153_v16  ;;  %v5950_v43 = vld [vmem:[#allocation2 + $0x1a8] sm:$0xff] }
  0xa3   : > { %v4784_v58 = vpop.eup %4783  ;;  %4793 = vpow2.f32 %v4333_v38  ;;  %v871_v60 = vadd.f32 %v839_v48, %v771_v3  ;;  %v1139_v46 = vmul.f32 %v5888_v19, %v5180_v30  ;;  %v1240_v27 = vmul.f32 %v5183_v31, %v5936_v21  ;;  %7759 = vst [vmem:[#allocation32_spill] sm:$0xff] %v5950_v43  ;;  %v5954_v38 = vld [vmem:[#allocation2 + $0x1a9] sm:$0xff] }
  0xa4   : > { %v5943_v33 = vmul.f32 %v4784_v58, %v5723_v49  ;;  %v5946_v39 = vadd.f32 %v5908_v42, %v1470_v45  ;;  %v1271_v20 = vadd.f32 %v1239_v8, %v1170_v23  ;;  %v640_v10 = vmul.f32 %v5824_v52, %v5138_v12  ;;  %v5956_v3 = vld [vmem:[#allocation2 + $0x170] sm:$0xff] }
  0xa5   : > { %v971_v34 = vadd.f32 %v939_v59, %v871_v60  ;;  %v1340_v48 = vmul.f32 %v5950_v43, %v5156_v17  ;;  %7760 = vst [vmem:[#allocation33_spill] sm:$0xff] %v5956_v3  ;;  %v740_v49 = vmul.f32 %v5956_v3, %v5141_v13  ;;  %v840_v45 = vmul.f32 %v5851_v24, %v5144_v14  ;;  %v4786_v8 = vpop.eup %4785  ;;  %v5971_v24 = vld [vmem:[#allocation2 + $0x1af] sm:$0xff] }
  0xa6   : > { %7758 = vst [vmem:[#allocation31_spill] sm:$0xff] %v5943_v33  ;;  %1805 = vrot.lane.b32.xlu0 %v5943_v33, %s5013_s23  ;;  %v4334_v52 = vmul.f32 -1.442695, %v5946_v39  ;;  %v1371_v59 = vadd.f32 %v1339_v55, %v1271_v20  ;;  %v1440_v23 = vmul.f32 %v5186_v32, %v5954_v38  ;;  %v940_v58 = vmul.f32 %v5896_v61, %v5171_v26 }
  0xa7   : > { %v1634_v60 = vadd.f32 1.0, %v4786_v8  ;;  %v1071_v28 = vadd.f32 %v1039_v7, %v971_v34  ;;  %v772_v0 = vadd.f32 %v740_v49, %v640_v10  ;;  %v1040_v3 = vmul.f32 %v5919_v44, %v5153_v16 }
  0xa8   : > { %4795 = vpow2.f32 %v4334_v52  ;;  %v1471_v1 = vadd.f32 %v1439_v6, %v1371_v59  ;;  %v1140_v18 = vmul.f32 %v5923_v4, %v5180_v30  ;;  %v1241_v55 = vmul.f32 %v5183_v31, %v5971_v24 }
  0xa9   : > { %v4788_v20 = vpop.eup %4787  ;;  %4797 = vrcp.f32 %v1634_v60  ;;  %v1171_v15 = vadd.f32 %v1139_v46, %v1071_v28  ;;  %v872_v33 = vadd.f32 %v840_v45, %v772_v0  ;;  %v641_v7 = vmul.f32 %v5863_v35, %v5138_v12  ;;  %v5989_v0 = vld [vmem:[#allocation2 + $0x1b0] sm:$0xff] }
  0xaa   : > { %v4790_v10 = vpop.eup %4789  ;;  %v5980_v34 = vmul.f32 %v4788_v20, %v5758_v22  ;;  %v5983_v49 = vadd.f32 %v5908_v42, %v1471_v1  ;;  %v741_v6 = vmul.f32 %v5932_v47, %v5141_v13  ;;  %v841_v8 = vmul.f32 %v5888_v19, %v5144_v14  ;;  %7762 = vst [vmem:[#allocation35_spill] sm:$0xff] %v5989_v0  ;;  %v5993_v46 = vld [vmem:[#allocation2 + $0x1b1] sm:$0xff] }
  0xab   : > { %v1635_v52 = vadd.f32 1.0, %v4790_v10  ;;  %v1272_v59 = vadd.f32 %v1240_v27, %v1171_v15  ;;  %v972_v28 = vadd.f32 %v940_v58, %v872_v33  ;;  %v1341_v35 = vmul.f32 %v5989_v0, %v5156_v17  ;;  %v6004_v58 = vld [vmem:[#allocation2 + $0x1c7] sm:$0xff] }
  0xac   : > { %7761 = vst [vmem:[#allocation34_spill] sm:$0xff] %v5980_v34  ;;  %1807 = vrot.lane.b32.xlu1 %v5980_v34, %s5013_s23  ;;  %v4335_v22 = vmul.f32 -1.442695, %v5983_v49  ;;  %v1441_v1 = vmul.f32 %v5186_v32, %v5993_v46  ;;  %v773_v45 = vadd.f32 %v741_v6, %v641_v7  ;;  %v941_v15 = vmul.f32 %v5936_v21, %v5171_v26  ;;  %v1410_v34 = vld [vmem:[#allocation2 + $0x209] sm:$0xff] }
  0xad   : > { %4799 = vrcp.f32 %v1635_v52  ;;  %v1372_v19 = vadd.f32 %v1340_v48, %v1272_v59  ;;  %v1072_v27 = vadd.f32 %v1040_v3, %v972_v28  ;;  %v1041_v33 = vmul.f32 %v5950_v43, %v5153_v16 }
  0xae   : > { %4801 = vpow2.f32 %v4335_v22  ;;  %v873_v60 = vadd.f32 %v841_v8, %v773_v45  ;;  %v1141_v20 = vmul.f32 %v5954_v38, %v5180_v30  ;;  %v1242_v10 = vmul.f32 %v5183_v31, %v6004_v58 }
  0xaf   : > { %v4792_v7 = vpop.eup %4791  ;;  %v1472_v6 = vadd.f32 %v1440_v23, %v1372_v19  ;;  %v1172_v47 = vadd.f32 %v1140_v18, %v1072_v27  ;;  %v642_v48 = vmul.f32 %v5896_v61, %v5138_v12  ;;  %v742_v3 = vmul.f32 %v5919_v44, %v5141_v13  ;;  %v6024_v61 = vld [vmem:[#allocation2 + $0x1c9] sm:$0xff] }
  0xb0   : > { %v4794_v52 = vpop.eup %4793  ;;  %v6015_v59 = vmul.f32 %v4792_v7, %v5799_v57  ;;  %v973_v8 = vadd.f32 %v941_v15, %v873_v60  ;;  %v842_v28 = vmul.f32 %v5923_v4, %v5144_v14  ;;  %v942_v22 = vmul.f32 %v5971_v24, %v5171_v26  ;;  %v6028_v27 = vld [vmem:[#allocation2 + $0x1c8] sm:$0xff] }
  0xb1   : > { %v1636_v45 = vadd.f32 1.0, %v4794_v52  ;;  %v6022_v18 = vadd.f32 %v5908_v42, %v1472_v6  ;;  %v1273_v23 = vadd.f32 %v1241_v55, %v1172_v47  ;;  %v774_v19 = vadd.f32 %v742_v3, %v642_v48  ;;  %7764 = vst [vmem:[#allocation37_spill] sm:$0xff] %v6028_v27  ;;  %v6037_v6 = vld [vmem:[#allocation2 + $0x1cf] sm:$0xff] }
  0xb2   : > { %7763 = vst [vmem:[#allocation36_spill] sm:$0xff] %v6015_v59  ;;  %1809 = vrot.lane.b32.xlu0 %v6015_v59, %s5013_s23  ;;  %v1073_v57 = vadd.f32 %v1041_v33, %v973_v8  ;;  %v1342_v4 = vmul.f32 %v6028_v27, %v5156_v17  ;;  %v1442_v15 = vmul.f32 %v5186_v32, %v6024_v61 }
  0xb3   : > { %v1042_v60 = vmul.f32 %v5989_v0, %v5153_v16  ;;  %4803 = vrcp.f32 %v1636_v45  ;;  %v4336_v47 = vmul.f32 -1.442695, %v6022_v18  ;;  %v1373_v55 = vadd.f32 %v1341_v35, %v1273_v23 }
  0xb4   : > { %v874_v7 = vadd.f32 %v842_v28, %v774_v19  ;;  %v1173_v48 = vadd.f32 %v1141_v20, %v1073_v57  ;;  %v1142_v33 = vmul.f32 %v5993_v46, %v5180_v30  ;;  %v1243_v3 = vmul.f32 %v5183_v31, %v6037_v6 }
  0xb5   : > { %v643_v52 = vmul.f32 %v5936_v21, %v5138_v12  ;;  %v4796_v8 = vpop.eup %4795  ;;  %4805 = vpow2.f32 %v4336_v47  ;;  %v1473_v44 = vadd.f32 %v1441_v1, %v1373_v55  ;;  %v743_v35 = vmul.f32 %v5950_v43, %v5141_v13 }
  0xb6   : > { %v974_v45 = vadd.f32 %v942_v22, %v874_v7  ;;  %v4798_v28 = vpop.eup %4797  ;;  %v1637_v23 = vadd.f32 1.0, %v4796_v8  ;;  %v1274_v19 = vadd.f32 %v1242_v10, %v1173_v48  ;;  %v843_v20 = vmul.f32 %v5954_v38, %v5144_v14  ;;  %v6057_v22 = vld [vmem:[#allocation2 + $0x1d1] sm:$0xff] }
  0xb7   : > { %v943_v57 = vmul.f32 %v6004_v58, %v5171_v26  ;;  %v6052_v59 = vmul.f32 %v4798_v28, %v5847_v2  ;;  %v6055_v21 = vadd.f32 %v5908_v42, %v1473_v44  ;;  %v775_v47 = vadd.f32 %v743_v35, %v643_v52  ;;  %v6059_v7 = vld [vmem:[#allocation2 + $0x1d0] sm:$0xff]  ;;  %v6070_v52 = vld [vmem:[#allocation2 + $0x1e7] sm:$0xff] }
  0xb8   : > { %v1074_v1 = vadd.f32 %v1042_v60, %v974_v45  ;;  %4807 = vrcp.f32 %v1637_v23  ;;  %v1374_v55 = vadd.f32 %v1342_v4, %v1274_v19  ;;  %7766 = vst [vmem:[#allocation39_spill] sm:$0xff] %v6059_v7  ;;  %v1343_v38 = vmul.f32 %v6059_v7, %v5156_v17 }
  0xb9   : > { %7765 = vst [vmem:[#allocation38_spill] sm:$0xff] %v6052_v59  ;;  %v1443_v10 = vmul.f32 %v5186_v32, %v6057_v22  ;;  %1811 = vrot.lane.b32.xlu1 %v6052_v59, %s5013_s23  ;;  %v4337_v2 = vmul.f32 -1.442695, %v6055_v21  ;;  %v875_v60 = vadd.f32 %v843_v20, %v775_v47  ;;  %v1043_v48 = vmul.f32 %v6028_v27, %v5153_v16 }
  0xba   : > { %v1174_v44 = vadd.f32 %v1142_v33, %v1074_v1  ;;  %v4800_v4 = vpop.eup %4799  ;;  %v1474_v8 = vadd.f32 %v1442_v15, %v1374_v55  ;;  %v1143_v45 = vmul.f32 %v6024_v61, %v5180_v30  ;;  %v1244_v35 = vmul.f32 %v5183_v31, %v6070_v52  ;;  %v6084_v15 = vld [vmem:[#allocation2 + $0x1e9] sm:$0xff] }
  0xbb   : > { %v644_v28 = vmul.f32 %v5971_v24, %v5138_v12  ;;  %v4802_v23 = vpop.eup %4801  ;;  %v6079_v33 = vmul.f32 %v4800_v4, %v5877_v9  ;;  %4809 = vpow2.f32 %v4337_v2  ;;  %v975_v20 = vadd.f32 %v943_v57, %v875_v60  ;;  %v6092_v2 = vld [vmem:[#allocation2 + $0x1e8] sm:$0xff] }
  0xbc   : > { %v1275_v19 = vadd.f32 %v1243_v3, %v1174_v44  ;;  %v1638_v1 = vadd.f32 1.0, %v4802_v23  ;;  %v6082_v47 = vadd.f32 %v5908_v42, %v1474_v8  ;;  %v744_v55 = vmul.f32 %v5989_v0, %v5141_v13  ;;  %7768 = vst [vmem:[#allocation41_spill] sm:$0xff] %v6092_v2  ;;  %v6105_v23 = vld [vmem:[#allocation2 + $0x1ef] sm:$0xff] }
  0xbd   : > { %7767 = vst [vmem:[#allocation40_spill] sm:$0xff] %v6079_v33  ;;  %v844_v43 = vmul.f32 %v5993_v46, %v5144_v14  ;;  %1813 = vrot.lane.b32.xlu0 %v6079_v33, %s5013_s23  ;;  %v1075_v24 = vadd.f32 %v1043_v48, %v975_v20  ;;  %v1344_v3 = vmul.f32 %v6092_v2, %v5156_v17  ;;  %v1210_v33 = vld [vmem:[#allocation2 + $0x207] sm:$0xff] }
  0xbe   : > { %v1375_v9 = vadd.f32 %v1343_v38, %v1275_v19  ;;  %v1444_v57 = vmul.f32 %v5186_v32, %v6084_v15  ;;  %4811 = vrcp.f32 %v1638_v1  ;;  %v4338_v44 = vmul.f32 -1.442695, %v6082_v47 }
  0xbf   : > { %v776_v60 = vadd.f32 %v744_v55, %v644_v28  ;;  %v944_v46 = vmul.f32 %v6037_v6, %v5171_v26  ;;  %v1175_v8 = vadd.f32 %v1143_v45, %v1075_v24  ;;  %v1044_v38 = vmul.f32 %v6059_v7, %v5153_v16 }
  0xc0   : > { %v1475_v4 = vadd.f32 %v1443_v10, %v1375_v9  ;;  %v1144_v48 = vmul.f32 %v6057_v22, %v5180_v30  ;;  %v4804_v19 = vpop.eup %4803  ;;  %4813 = vpow2.f32 %v4338_v44  ;;  %v1245_v1 = vmul.f32 %v5183_v31, %v6105_v23  ;;  %v6119_v44 = vld [vmem:[#allocation2 + $0x1f0] sm:$0xff] }
  0xc1   : > { %v876_v20 = vadd.f32 %v844_v43, %v776_v60  ;;  %v645_v28 = vmul.f32 %v6004_v58, %v5138_v12  ;;  %v6112_v10 = vmul.f32 %v4804_v19, %v5911_v36  ;;  %v1276_v55 = vadd.f32 %v1244_v35, %v1175_v8  ;;  %7770 = vst [vmem:[#allocation43_spill] sm:$0xff] %v6119_v44  ;;  %v6130_v8 = vld [vmem:[#allocation2 + $0x1f1] sm:$0xff] }
  0xc2   : > { %v6115_v45 = vadd.f32 %v5908_v42, %v1475_v4  ;;  %v745_v9 = vmul.f32 %v6028_v27, %v5141_v13  ;;  %v4806_v24 = vpop.eup %4805  ;;  %v1345_v43 = vmul.f32 %v6119_v44, %v5156_v17  ;;  %v845_v58 = vmul.f32 %v6024_v61, %v5144_v14 }
  0xc3   : > { %7769 = vst [vmem:[#allocation42_spill] sm:$0xff] %v6112_v10  ;;  %v976_v0 = vadd.f32 %v944_v46, %v876_v20  ;;  %v945_v36 = vmul.f32 %v6070_v52, %v5171_v26  ;;  %1815 = vrot.lane.b32.xlu1 %v6112_v10, %s5013_s23  ;;  %v1639_v35 = vadd.f32 1.0, %v4806_v24  ;;  %v1376_v4 = vadd.f32 %v1344_v3, %v1276_v55 }
  0xc4   : > { %v4339_v60 = vmul.f32 -1.442695, %v6115_v45  ;;  %v777_v46 = vadd.f32 %v745_v9, %v645_v28  ;;  %v1445_v20 = vmul.f32 %v5186_v32, %v6130_v8  ;;  %v1045_v61 = vmul.f32 %v6092_v2, %v5153_v16 }
  0xc5   : > { %v1076_v19 = vadd.f32 %v1044_v38, %v976_v0  ;;  %v1145_v27 = vmul.f32 %v6084_v15, %v5180_v30  ;;  %v4808_v59 = vpop.eup %4807  ;;  %4815 = vrcp.f32 %v1639_v35  ;;  %v1476_v24 = vadd.f32 %v1444_v57, %v1376_v4 }
  0xc6   : > { %v877_v10 = vadd.f32 %v845_v58, %v777_v46  ;;  %v1246_v3 = vmul.f32 %v5183_v31, %v1210_v33  ;;  %v6140_v55 = vmul.f32 %v4808_v59, %v5946_v39  ;;  %4817 = vpow2.f32 %v4339_v60  ;;  %v6153_v59 = vld [vmem:[#allocation2 + $0x208] sm:$0xff] }
  0xc7   : > { %v1176_v0 = vadd.f32 %v1144_v48, %v1076_v19  ;;  %v646_v38 = vmul.f32 %v6037_v6, %v5138_v12  ;;  %v6145_v28 = vadd.f32 %v5908_v42, %v1476_v24  ;;  %v746_v35 = vmul.f32 %v6059_v7, %v5141_v13  ;;  %7772 = vst [vmem:[#allocation45_spill] sm:$0xff] %v6153_v59  ;;  %v1211_v46 = vld [vmem:[#allocation2 + $0x20f] sm:$0xff] }
  0xc8   : > { %7771 = vst [vmem:[#allocation44_spill] sm:$0xff] %v6140_v55  ;;  %v977_v9 = vadd.f32 %v945_v36, %v877_v10  ;;  %v846_v57 = vmul.f32 %v6057_v22, %v5144_v14  ;;  %v4810_v58 = vpop.eup %4809  ;;  %1817 = vrot.lane.b32.xlu0 %v6140_v55, %s5013_s23  ;;  %v1346_v6 = vmul.f32 %v6153_v59, %v5156_v17 }
  0xc9   : > { %v1277_v39 = vadd.f32 %v1245_v1, %v1176_v0  ;;  %v1446_v48 = vmul.f32 %v5186_v32, %v1410_v34  ;;  %v946_v10 = vmul.f32 %v6105_v23, %v5171_v26  ;;  %v1640_v36 = vadd.f32 1.0, %v4810_v58 }
  0xca   : > { %v4340_v60 = vmul.f32 -1.442695, %v6145_v28  ;;  %v1077_v4 = vadd.f32 %v1045_v61, %v977_v9  ;;  %v778_v22 = vadd.f32 %v746_v35, %v646_v38  ;;  %v1046_v1 = vmul.f32 %v6119_v44, %v5153_v16 }
  0xcb   : > { %v1377_v19 = vadd.f32 %v1345_v43, %v1277_v39  ;;  %v1146_v24 = vmul.f32 %v6130_v8, %v5180_v30  ;;  %v1247_v0 = vmul.f32 %v5183_v31, %v1211_v46  ;;  %v4812_v7 = vpop.eup %4811  ;;  %4819 = vrcp.f32 %v1640_v36 }
  0xcc   : > { %v1177_v55 = vadd.f32 %v1145_v27, %v1077_v4  ;;  %v878_v40 = vadd.f32 %v846_v57, %v778_v22  ;;  %v647_v58 = vmul.f32 %v6070_v52, %v5138_v12  ;;  %v6169_v61 = vmul.f32 %v4812_v7, %v5983_v49  ;;  %v1411_v52 = vld [vmem:[#allocation2 + $0x211] sm:$0xff] }
  0xcd   : > { %4821 = vpow2.f32 %v4340_v60  ;;  %v1477_v43 = vadd.f32 %v1445_v20, %v1377_v19  ;;  %v747_v38 = vmul.f32 %v6092_v2, %v5141_v13  ;;  %v4814_v9 = vpop.eup %4813  ;;  %v1347_v27 = vmul.f32 %v6173_v25, %v5156_v17 }
  0xce   : > { %v1278_v35 = vadd.f32 %v1246_v3, %v1177_v55  ;;  %v978_v39 = vadd.f32 %v946_v10, %v878_v40  ;;  %v847_v57 = vmul.f32 %v6084_v15, %v5144_v14  ;;  %1819 = vrot.lane.b32.xlu1 %v6169_v61, %s5013_s23  ;;  %v1641_v49 = vadd.f32 1.0, %v4814_v9  ;;  %v1212_v40 = vld [vmem:[#allocation2 + $0x227] sm:$0xff] }
  0xcf   : > { %v6182_v7 = vadd.f32 %v5908_v42, %v1477_v43  ;;  %v779_v20 = vadd.f32 %v747_v38, %v647_v58  ;;  %v947_v3 = vmul.f32 %v1210_v33, %v5171_v26  ;;  %v1447_v36 = vmul.f32 %v5186_v32, %v1411_v52  ;;  %v1412_v38 = vld [vmem:[#allocation2 + $0x229] sm:$0xff] }
  0xd0   : > { %v1378_v55 = vadd.f32 %v1346_v6, %v1278_v35  ;;  %v1078_v10 = vadd.f32 %v1046_v1, %v978_v39  ;;  %v1047_v60 = vmul.f32 %v6153_v59, %v5153_v16  ;;  %4823 = vrcp.f32 %v1641_v49 }
  0xd1   : > { %v4341_v15 = vmul.f32 -1.442695, %v6182_v7  ;;  %v879_v4 = vadd.f32 %v847_v57, %v779_v20  ;;  %v1147_v22 = vmul.f32 %v1410_v34, %v5180_v30  ;;  %v1248_v58 = vmul.f32 %v5183_v31, %v1212_v40  ;;  %v6203_v57 = vld [vmem:[#allocation2] sm:$0xff] }
  0xd2   : > { %v1478_v19 = vadd.f32 %v1446_v48, %v1378_v55  ;;  %v1178_v43 = vadd.f32 %v1146_v24, %v1078_v10  ;;  %v648_v33 = vmul.f32 %v6105_v23, %v5138_v12  ;;  %v4816_v6 = vpop.eup %4815  ;;  %v748_v9 = vmul.f32 %v6119_v44, %v5141_v13 }
  0xd3   : > { %4825 = vpow2.f32 %v4341_v15  ;;  %v979_v1 = vadd.f32 %v947_v3, %v879_v4  ;;  %v848_v35 = vmul.f32 %v6130_v8, %v5144_v14  ;;  %v4818_v39 = vpop.eup %4817  ;;  %v6198_v34 = vmul.f32 %v4816_v6, %v6022_v18 }
  0xd4   : > { %v6201_v48 = vadd.f32 %v5908_v42, %v1478_v19  ;;  %v1279_v24 = vadd.f32 %v1247_v0, %v1178_v43  ;;  %v1348_v12 = vmul.f32 %v6203_v57, %v5156_v17  ;;  %v1642_v49 = vadd.f32 1.0, %v4818_v39 }
  0xd5   : > { %v1778_v23 = vpop.permute.xlu0 %1777  ;;  %v1079_v20 = vadd.f32 %v1047_v60, %v979_v1  ;;  %v780_v13 = vadd.f32 %v748_v9, %v648_v33  ;;  %v948_v3 = vmul.f32 %v1211_v46, %v5171_v26  ;;  %1821 = vrot.lane.b32.xlu0 %v6198_v34, %s5013_s23  ;;  %v1448_v8 = vmul.f32 %v5186_v32, %v1412_v38  ;;  %v1213_v60 = vld [vmem:[#allocation2 + $0x22f] sm:$0xff] }
  0xd6   : > { %v4342_v14 = vmul.f32 -1.442695, %v6201_v48  ;;  %v1379_v18 = vadd.f32 %v1347_v27, %v1279_v24  ;;  %v1048_v0 = vmul.f32 %v6173_v25, %v5153_v16  ;;  %4827 = vrcp.f32 %v1642_v49 }
  0xd7   : > { %v1179_v40 = vadd.f32 %v1147_v22, %v1079_v20  ;;  %v880_v17 = vadd.f32 %v848_v35, %v780_v13  ;;  %v1148_v55 = vmul.f32 %v1411_v52, %v5180_v30  ;;  %v1873_v26 = vadd.f32 %v1778_v23, %v5524_v11  ;;  %v1782_v15 = vpop.permute.xlu1 %1781 }
  0xd8   : > { %4829 = vpow2.f32 %v4342_v14  ;;  %v1479_v10 = vadd.f32 %v1447_v36, %v1379_v18  ;;  %v4820_v4 = vpop.eup %4819  ;;  %v1875_v16 = vadd.f32 %v1782_v15, %v5550_v51  ;;  %v1249_v6 = vmul.f32 %v5183_v31, %v1213_v60  ;;  %v1413_v51 = vld [vmem:[#allocation2 + $0x231] sm:$0xff] }
  0xd9   : > { %v1780_v46 = vpop.permute.xlu0 %1779  ;;  %v1280_v27 = vadd.f32 %v1248_v58, %v1179_v40  ;;  %v980_v19 = vadd.f32 %v948_v3, %v880_v17  ;;  %v6219_v22 = vmul.f32 %v4820_v4, %v6055_v21  ;;  %4564 = vmatprep.mubr.msk.f32.mxu0 %vm1920_vm0, %v1873_v26  ;;  %v1449_v24 = vmul.f32 %v5186_v32, %v1413_v51 }
  0xda   : > { %v1874_v43 = vadd.f32 %v1780_v46, %v5532_v63  ;;  %v4822_v33 = vpop.eup %4821  ;;  %v6222_v30 = vadd.f32 %v5908_v42, %v1479_v10 }
  0xdb   : > { %v1643_v11 = vadd.f32 1.0, %v4822_v33  ;;  %v1380_v52 = vadd.f32 %v1348_v12, %v1280_v27  ;;  %v1080_v36 = vadd.f32 %v1048_v0, %v980_v19  ;;  %1823 = vrot.lane.b32.xlu1 %v6219_v22, %s5013_s23  ;;  %v1784_v21 = vpop.permute.xlu1 %1783 }
  0xdc   : > { %4565 = vmatmul.mubr.msk.f32.vlgmr.msra.gmra.mxu0 %vm1920_vm0, %v1874_v43  ;;  %v4343_v63 = vmul.f32 -1.442695, %v6222_v30  ;;  %v1876_v38 = vadd.f32 %v1784_v21, %v5577_v5 }
  0xdd   : > { %4567 = vmatprep.mubr.msk.f32.mxu0 %vm1920_vm0, %v1875_v16  ;;  %4831 = vrcp.f32 %v1643_v11  ;;  %v1480_v58 = vadd.f32 %v1448_v8, %v1380_v52  ;;  %v1180_v1 = vadd.f32 %v1148_v55, %v1080_v36  ;;  %v4824_v9 = vpop.eup %4823 }
  0xde   : > { %4833 = vpow2.f32 %v4343_v63  ;;  %v6233_v31 = vmul.f32 %v4824_v9, %v6082_v47  ;;  %v1786_v23 = vpop.permute.xlu0 %1785  ;;  %v7775_v9 = vld [vmem:[#allocation27_spill] sm:$0xff] }
  0xdf   : > { %v6236_v35 = vadd.f32 %v5908_v42, %v1480_v58  ;;  %v1281_v39 = vadd.f32 %v1249_v6, %v1180_v1  ;;  %v1877_v20 = vadd.f32 %v1786_v23, %v5592_v53  ;;  %v7774_v1 = vld [vmem:[#allocation26_spill] sm:$0xff] }
  0xe0   : > { %4568 = vmatmul.mubr.msk.f32.gmra.mxu0 %vm1920_vm0, %v1876_v38  ;;  %v4826_v49 = vpop.eup %4825  ;;  %1825 = vrot.lane.b32.xlu0 %v6233_v31, %s5013_s23 }
  0xe1   : > { %v1644_v5 = vadd.f32 1.0, %v4826_v49  ;;  %v4344_v13 = vmul.f32 -1.442695, %v6236_v35  ;;  %v1381_v47 = vadd.f32 %v1348_v12, %v1281_v39  ;;  %4570 = vmatprep.mubr.msk.f32.mxu0 %vm1920_vm0, %v1877_v20  ;;  %v2243_v49 = vld [vmem:[%s7629_s5 + $0x8] sm:$0xff] }
  0xe2   : > { %v1788_v14 = vpop.permute.xlu1 %1787 }
  0xe3   : > { %4835 = vrcp.f32 %v1644_v5  ;;  %v1481_v3 = vadd.f32 %v1449_v24, %v1381_v47  ;;  %v4828_v18 = vpop.eup %4827  ;;  %v1878_v32 = vadd.f32 %v1788_v14, %v5615_v54  ;;  %v7776_v24 = vld [vmem:[#allocation31_spill] sm:$0xff]  ;;  %v7777_v5 = vld [vmem:[#allocation34_spill] sm:$0xff]  ;;  %v7778_v14 = vld [vmem:[#allocation36_spill] sm:$0xff] }
  0xe4   : > { %4837 = vpow2.f32 %v4344_v13  ;;  %v6247_v0 = vmul.f32 %v4828_v18, %v6115_v45  ;;  %v2242_v47 = vld [vmem:[%s7629_s5] sm:$0xff] }
  0xe5   : > { %v4830_v8 = vpop.eup %4829  ;;  %v1520_v53 = vadd.f32 %v5908_v42, %v1481_v3  ;;  %4571 = vmatmul.mubr.msk.f32.gmra.mxu0 %vm1920_vm0, %v1878_v32 }
  0xe6   : > { %v1645_v40 = vadd.f32 1.0, %v4830_v8  ;;  %1827 = vrot.lane.b32.xlu1 %v6247_v0, %s5013_s23  ;;  %v7779_v8 = vld [vmem:[#allocation38_spill] sm:$0xff] }
  0xe7   : > { %v4345_v12 = vmul.f32 -1.442695, %v1520_v53 }
  0xe8   : > { %4839 = vrcp.f32 %v1645_v40 }
  0xe9   : > { %4841 = vpow2.f32 %v4345_v12  ;;  %v7780_v12 = vld [vmem:[#allocation40_spill] sm:$0xff] }
  0xea   : > { %v4832_v17 = vpop.eup %4831 }
  0xeb   : > { %v4834_v55 = vpop.eup %4833  ;;  %v6254_v10 = vmul.f32 %v4832_v17, %v6145_v28 }
  0xec   : > { %v1646_v54 = vadd.f32 1.0, %v4834_v55  ;;  %v1790_v45 = vpop.permute.xlu0 %1789 }
  0xed   : > { %1829 = vrot.lane.b32.xlu0 %v6254_v10, %s5013_s23  ;;  %v1879_v42 = vadd.f32 %v1790_v45, %v5667_v62 }
  0xee   : > { %4843 = vrcp.f32 %v1646_v54  ;;  %v7781_v54 = vld [vmem:[#allocation42_spill] sm:$0xff] }
  0xef   : > { %4573 = vmatprep.mubr.msk.f32.mxu0 %vm1920_vm0, %v1879_v42  ;;  %v7782_v42 = vld [vmem:[#allocation44_spill] sm:$0xff] }
  0xf0   : > { %v4836_v60 = vpop.eup %4835  ;;  %v1792_v15 = vpop.permute.xlu1 %1791 }
  0xf1   : > { %v4838_v26 = vpop.eup %4837  ;;  %v6261_v46 = vmul.f32 %v4836_v60, %v6182_v7  ;;  %v1880_v28 = vadd.f32 %v1792_v15, %v5689_v50 }
  0xf2   : > { %v1647_v4 = vadd.f32 1.0, %v4838_v26 }
  0xf3   : > { %1831 = vrot.lane.b32.xlu1 %v6261_v46, %s5013_s23  ;;  %4574 = vmatmul.mubr.msk.f32.gmra.mxu0 %vm1920_vm0, %v1880_v28 }
  0xf4   : > { %4845 = vrcp.f32 %v1647_v4 }
  0xf5   : > { %v4840_v27 = vpop.eup %4839  ;;  %v1794_v43 = vpop.permute.xlu0 %1793 }
  0xf6   : > { %v4842_v19 = vpop.eup %4841  ;;  %v6268_v62 = vmul.f32 %v4840_v27, %v6201_v48  ;;  %v1881_v7 = vadd.f32 %v1794_v43, %v5716_v56  ;;  %v2245_v56 = vld [vmem:[%s7629_s5 + $0x18] sm:$0xff] }
  0xf7   : > { %v1648_v16 = vadd.f32 1.0, %v4842_v19  ;;  %4612 = vmatprep.subr.mxu1 %v2245_v56 }
  0xf8   : > { %1833 = vrot.lane.b32.xlu0 %v6268_v62, %s5013_s23  ;;  %4576 = vmatprep.mubr.msk.f32.mxu0 %vm1920_vm0, %v1881_v7 }
  0xf9   : > { %4847 = vrcp.f32 %v1648_v16  ;;  %4613 = vmatpush3.msra.mxu1 %v2245_v56 }
  0xfa   : > { %v1796_v33 = vpop.permute.xlu1 %1795 }
  0xfb   : > { %v4844_v50 = vpop.eup %4843  ;;  %v1882_v52 = vadd.f32 %v1796_v33, %v5745_v29 }
  0xfc   : > { %v6275_v11 = vmul.f32 %v4844_v50, %v6222_v30 }
  0xfd   : > { %4577 = vmatmul.mubr.msk.f32.gmra.mxu0 %vm1920_vm0, %v1882_v52 }
  0xfe   : > { %1835 = vrot.lane.b32.xlu1 %v6275_v11, %s5013_s23 }
 0x101   : > { %v4846_v48 = vpop.eup %4845  ;;  %v1798_v6 = vpop.permute.xlu0 %1797 }
 0x102   : > { %v6285_v36 = vmul.f32 %v4846_v48, %v6236_v35  ;;  %v1883_v30 = vadd.f32 %v1798_v6, %v5794_v37 }
 0x104   : > { %1837 = vrot.lane.b32.xlu0 %v6285_v36, %s5013_s23  ;;  %4579 = vmatprep.mubr.msk.f32.mxu0 %vm1920_vm0, %v1883_v30 }
 0x106   : > { %v4848_v29 = vpop.eup %4847 }
 0x107   : > { %v6291_v63 = vmul.f32 %v4848_v29, %v1520_v53  ;;  %v1800_v51 = vpop.permute.xlu1 %1799 }
 0x108   : > { %v1884_v21 = vadd.f32 %v1800_v51, %v5835_v41  ;;  %v2244_v41 = vld [vmem:[%s7629_s5 + $0x10] sm:$0xff] }
 0x109   : > { %1839 = vrot.lane.b32.xlu1 %v6291_v63, %s5013_s23  ;;  %4614 = vmatprep.subr.mxu1 %v2244_v41 }
 0x10a   : > { %4580 = vmatmul.mubr.msk.f32.gmra.mxu0 %vm1920_vm0, %v1884_v21  ;;  %4615 = vmatpush3.msra.mxu1 %v2244_v41 }
 0x10b   : > { %4616 = vmatprep.subr.mxu1 %v2243_v49 }
 0x10c   : > { %4617 = vmatpush3.msra.mxu1 %v2243_v49 }
 0x10d   : > { %v1802_v58 = vpop.permute.xlu0 %1801  ;;  %4618 = vmatprep.subr.mxu1 %v2242_v47 }
 0x10e   : > { %v1885_v38 = vadd.f32 %v1802_v58, %v7774_v1  ;;  %4619 = vmatpush3.msra.mxu1 %v2242_v47 }
 0x10f   : > { %4668 = vmatprep.subr.mxu1 %v6203_v57 }
 0x110   : > { %4582 = vmatprep.mubr.msk.f32.mxu0 %vm1920_vm0, %v1885_v38 }
 0x113   : > { %v1804_v37 = vpop.permute.xlu1 %1803 }
 0x114   : > { %v1886_v35 = vadd.f32 %v1804_v37, %v7775_v9 }
 0x116   : > { %4583 = vmatmul.mubr.msk.f32.gmra.mxu0 %vm1920_vm0, %v1886_v35 }
 0x118   : > { %v1806_v39 = vpop.permute.xlu0 %1805 }
 0x119   : > { %v1887_v23 = vadd.f32 %v1806_v39, %v7776_v24 }
 0x11b   : > { %4585 = vmatprep.mubr.msk.f32.mxu0 %vm1920_vm0, %v1887_v23 }
 0x11e   : > { %v1808_v20 = vpop.permute.xlu1 %1807 }
 0x11f   : > { %v1888_v13 = vadd.f32 %v1808_v20, %v7777_v5 }
 0x121   : > { %4586 = vmatmul.mubr.msk.f32.gmra.mxu0 %vm1920_vm0, %v1888_v13 }
 0x124   : > { %v1810_v3 = vpop.permute.xlu0 %1809 }
 0x125   : > { %v1889_v18 = vadd.f32 %v1810_v3, %v7778_v14 }
 0x127   : > { %4588 = vmatprep.mubr.msk.f32.mxu0 %vm1920_vm0, %v1889_v18 }
 0x12b   : > { %v1812_v32 = vpop.permute.xlu1 %1811 }
 0x12c   : > { %v1890_v53 = vadd.f32 %v1812_v32, %v7779_v8 }
 0x12e   : > { %4589 = vmatmul.mubr.msk.f32.gmra.mxu0 %vm1920_vm0, %v1890_v53 }
 0x12f   : > { %v1814_v40 = vpop.permute.xlu0 %1813 }
 0x130   : > { %v1891_v17 = vadd.f32 %v1814_v40, %v7780_v12 }
 0x132   : > { %4591 = vmatprep.mubr.msk.f32.mxu0 %vm1920_vm0, %v1891_v17 }
 0x135   : > { %v1816_v55 = vpop.permute.xlu1 %1815 }
 0x136   : > { %v1892_v45 = vadd.f32 %v1816_v55, %v7781_v54 }
 0x138   : > { %4592 = vmatmul.mubr.msk.f32.gmra.mxu0 %vm1920_vm0, %v1892_v45 }
 0x13a   : > { %v1818_v57 = vpop.permute.xlu0 %1817 }
 0x13b   : > { %v1893_v60 = vadd.f32 %v1818_v57, %v7782_v42 }
 0x13d   : > { %4594 = vmatprep.mubr.msk.f32.mxu0 %vm1920_vm0, %v1893_v60 }
 0x140   : > { %v1820_v26 = vpop.permute.xlu1 %1819 }
 0x141   : > { %v1894_v15 = vadd.f32 %v1820_v26, %v6169_v61 }
 0x143   : > { %4595 = vmatmul.mubr.msk.f32.gmra.mxu0 %vm1920_vm0, %v1894_v15 }
 0x147   : > { %v1822_v4 = vpop.permute.xlu0 %1821 }
 0x148   : > { %v1895_v28 = vadd.f32 %v1822_v4, %v6198_v34 }
 0x14a   : > { %4597 = vmatprep.mubr.msk.f32.mxu0 %vm1920_vm0, %v1895_v28 }
 0x14d   : > { %v1824_v27 = vpop.permute.xlu1 %1823 }
 0x14e   : > { %v1896_v19 = vadd.f32 %v1824_v27, %v6219_v22 }
 0x150   : > { %4598 = vmatmul.mubr.msk.f32.gmra.mxu0 %vm1920_vm0, %v1896_v19 }
 0x152   : > { %v1826_v43 = vpop.permute.xlu0 %1825 }
 0x153   : > { %v1897_v16 = vadd.f32 %v1826_v43, %v6233_v31 }
 0x155   : > { %4600 = vmatprep.mubr.msk.f32.mxu0 %vm1920_vm0, %v1897_v16 }
 0x158   : > { %v1828_v7 = vpop.permute.xlu1 %1827 }
 0x159   : > { %v1898_v61 = vadd.f32 %v1828_v7, %v6247_v0 }
 0x15b   : > { %4601 = vmatmul.mubr.msk.f32.gmra.mxu0 %vm1920_vm0, %v1898_v61 }
 0x15f   : > { %v1830_v50 = vpop.permute.xlu0 %1829 }
 0x160   : > { %v1899_v34 = vadd.f32 %v1830_v50, %v6254_v10 }
 0x162   : > { %4603 = vmatprep.mubr.msk.f32.mxu0 %vm1920_vm0, %v1899_v34 }
 0x165   : > { %v1832_v33 = vpop.permute.xlu1 %1831 }
 0x166   : > { %v1900_v22 = vadd.f32 %v1832_v33, %v6261_v46 }
 0x168   : > { %4604 = vmatmul.mubr.msk.f32.gmra.mxu0 %vm1920_vm0, %v1900_v22 }
 0x16a   : > { %v1834_v52 = vpop.permute.xlu0 %1833 }
 0x16b   : > { %v1901_v31 = vadd.f32 %v1834_v52, %v6268_v62  ;;  %v6350_v62 = vld [vmem:[%s7628_s4] ss:$0 sm:$0xff] }
 0x16d   : > { %4606 = vmatprep.mubr.msk.f32.mxu0 %vm1920_vm0, %v1901_v31 }
 0x170   : > { %v1836_v56 = vpop.permute.xlu1 %1835 }
 0x171   : > { %v1902_v0 = vadd.f32 %v1836_v56, %v6275_v11 }
 0x173   : > { %4607 = vmatmul.mubr.msk.f32.gmra.mxu0 %vm1920_vm0, %v1902_v0 }
 0x176   : > { %v1838_v48 = vpop.permute.xlu0 %1837 }
 0x177   : > { %v1903_v10 = vadd.f32 %v1838_v48, %v6285_v36 }
 0x179   : > { %4609 = vmatprep.mubr.msk.f32.mxu0 %vm1920_vm0, %v1903_v10 }
 0x17b   : > { %v1840_v6 = vpop.permute.xlu1 %1839 }
 0x17c   : > { %v1904_v46 = vadd.f32 %v1840_v6, %v6291_v63 }
 0x17e   : > { %4610 = vmatmul.mubr.msk.f32.gmra.mxu0 %vm1920_vm0, %v1904_v46 }
 0x19c   : > { %v4566_v30 = vpop.f32.mrf.mxu0 }
 0x19d   : > { %v2089_v51 = vadd.f32 %v4566_v30, %v6350_v62 }
 0x19e   : > { %v2083_v29 = vpop.f32.mrf.mxu0 }
 0x19f   : > { %v2084_v11 = vadd.f32 %v6350_v62, %v2083_v29 }
 0x1a0   : > { %v4569_v36 = vpop.f32.mrf.mxu0 }
 0x1a1   : > { %4620 = vmatprep.mubr.msk.f32.mxu1 %vm2253_vm1, %v2084_v11  ;;  %v2099_v58 = vadd.f32 %v4569_v36, %v6350_v62 }
 0x1a2   : > { %v2093_v21 = vpop.f32.mrf.mxu0  ;;  %4621 = vmatmul.mubr.msk.f32.vlgmr.msra.gmra.mxu1 %vm2253_vm1, %v2089_v51 }
 0x1a3   : > { %v2094_v63 = vadd.f32 %v6350_v62, %v2093_v21  ;;  %v6419_v21 = vld [vmem:[%s7630_s6] ss:$0 sm:$0xff] }
 0x1a5   : > { %4623 = vmatprep.mubr.msk.f32.mxu1 %vm2253_vm1, %v2094_v63  ;;  %v4572_v1 = vpop.f32.mrf.mxu0 }
 0x1a6   : > { %4624 = vmatmul.mubr.msk.f32.gmra.mxu1 %vm2253_vm1, %v2099_v58  ;;  %v2109_v9 = vadd.f32 %v4572_v1, %v6350_v62 }
 0x1a7   : > { %v2103_v38 = vpop.f32.mrf.mxu0 }
 0x1a8   : > { %v2104_v37 = vadd.f32 %v6350_v62, %v2103_v38 }
 0x1aa   : > { %4626 = vmatprep.mubr.msk.f32.mxu1 %vm2253_vm1, %v2104_v37 }
 0x1ab   : > { %4627 = vmatmul.mubr.msk.f32.gmra.mxu1 %vm2253_vm1, %v2109_v9 }
 0x1b3   : > { %v4575_v35 = vpop.f32.mrf.mxu0 }
 0x1b4   : > { %v2119_v23 = vadd.f32 %v4575_v35, %v6350_v62 }
 0x1b5   : > { %v2113_v39 = vpop.f32.mrf.mxu0 }
 0x1b6   : > { %v2114_v24 = vadd.f32 %v6350_v62, %v2113_v39 }
 0x1b8   : > { %4629 = vmatprep.mubr.msk.f32.mxu1 %vm2253_vm1, %v2114_v24 }
 0x1b9   : > { %4630 = vmatmul.mubr.msk.f32.gmra.mxu1 %vm2253_vm1, %v2119_v23 }
 0x1bd   : > { %v4578_v41 = vpop.f32.mrf.mxu0 }
 0x1be   : > { %v2129_v5 = vadd.f32 %v4578_v41, %v6350_v62 }
 0x1bf   : > { %v2123_v49 = vpop.f32.mrf.mxu0 }
 0x1c0   : > { %v2124_v20 = vadd.f32 %v6350_v62, %v2123_v49 }
 0x1c2   : > { %4632 = vmatprep.mubr.msk.f32.mxu1 %vm2253_vm1, %v2124_v20 }
 0x1c3   : > { %4633 = vmatmul.mubr.msk.f32.gmra.mxu1 %vm2253_vm1, %v2129_v5 }
 0x1ca   : > { %v4581_v13 = vpop.f32.mrf.mxu0 }
 0x1cb   : > { %v2139_v14 = vadd.f32 %v4581_v13, %v6350_v62 }
 0x1cc   : > { %v2133_v47 = vpop.f32.mrf.mxu0 }
 0x1cd   : > { %v2134_v3 = vadd.f32 %v6350_v62, %v2133_v47 }
 0x1cf   : > { %4635 = vmatprep.mubr.msk.f32.mxu1 %vm2253_vm1, %v2134_v3 }
 0x1d0   : > { %4636 = vmatmul.mubr.msk.f32.gmra.mxu1 %vm2253_vm1, %v2139_v14 }
 0x1d6   : > { %v4584_v18 = vpop.f32.mrf.mxu0 }
 0x1d7   : > { %v2149_v53 = vadd.f32 %v4584_v18, %v6350_v62 }
 0x1d8   : > { %v2143_v32 = vpop.f32.mrf.mxu0 }
 0x1d9   : > { %v2144_v8 = vadd.f32 %v6350_v62, %v2143_v32 }
 0x1db   : > { %4638 = vmatprep.mubr.msk.f32.mxu1 %vm2253_vm1, %v2144_v8 }
 0x1dc   : > { %4639 = vmatmul.mubr.msk.f32.gmra.mxu1 %vm2253_vm1, %v2149_v53 }
 0x1e1   : > { %v4587_v40 = vpop.f32.mrf.mxu0 }
 0x1e2   : > { %v2159_v55 = vadd.f32 %v4587_v40, %v6350_v62 }
 0x1e3   : > { %v2153_v12 = vpop.f32.mrf.mxu0 }
 0x1e4   : > { %v2154_v17 = vadd.f32 %v6350_v62, %v2153_v12 }
 0x1e6   : > { %4641 = vmatprep.mubr.msk.f32.mxu1 %vm2253_vm1, %v2154_v17 }
 0x1e7   : > { %4642 = vmatmul.mubr.msk.f32.gmra.mxu1 %vm2253_vm1, %v2159_v55 }
 0x1ee   : > { %v4590_v54 = vpop.f32.mrf.mxu0 }
 0x1ef   : > { %v2169_v42 = vadd.f32 %v4590_v54, %v6350_v62 }
 0x1f0   : > { %v2163_v45 = vpop.f32.mrf.mxu0 }
 0x1f1   : > { %v2164_v57 = vadd.f32 %v6350_v62, %v2163_v45 }
 0x1f3   : > { %4644 = vmatprep.mubr.msk.f32.mxu1 %vm2253_vm1, %v2164_v57 }
 0x1f4   : > { %4645 = vmatmul.mubr.msk.f32.gmra.mxu1 %vm2253_vm1, %v2169_v42 }
 0x1f8   : > { %v4593_v60 = vpop.f32.mrf.mxu0 }
 0x1f9   : > { %v2179_v4 = vadd.f32 %v4593_v60, %v6350_v62 }
 0x1fa   : > { %v2173_v26 = vpop.f32.mrf.mxu0 }
 0x1fb   : > { %v2174_v15 = vadd.f32 %v6350_v62, %v2173_v26 }
 0x1fd   : > { %4647 = vmatprep.mubr.msk.f32.mxu1 %vm2253_vm1, %v2174_v15 }
 0x1fe   : > { %4648 = vmatmul.mubr.msk.f32.gmra.mxu1 %vm2253_vm1, %v2179_v4 }
 0x203   : > { %v4596_v28 = vpop.f32.mrf.mxu0 }
 0x204   : > { %v2189_v43 = vadd.f32 %v4596_v28, %v6350_v62 }
 0x205   : > { %v2183_v27 = vpop.f32.mrf.mxu0 }
 0x206   : > { %v2184_v19 = vadd.f32 %v6350_v62, %v2183_v27 }
 0x208   : > { %4650 = vmatprep.mubr.msk.f32.mxu1 %vm2253_vm1, %v2184_v19 }
 0x209   : > { %4651 = vmatmul.mubr.msk.f32.gmra.mxu1 %vm2253_vm1, %v2189_v43 }
 0x210   : > { %v4599_v16 = vpop.f32.mrf.mxu0 }
 0x211   : > { %v2199_v50 = vadd.f32 %v4599_v16, %v6350_v62 }
 0x212   : > { %v2193_v7 = vpop.f32.mrf.mxu0 }
 0x213   : > { %v2194_v61 = vadd.f32 %v6350_v62, %v2193_v7 }
 0x215   : > { %4653 = vmatprep.mubr.msk.f32.mxu1 %vm2253_vm1, %v2194_v61 }
 0x216   : > { %4654 = vmatmul.mubr.msk.f32.gmra.mxu1 %vm2253_vm1, %v2199_v50 }
 0x21b   : > { %v4602_v34 = vpop.f32.mrf.mxu0 }
 0x21c   : > { %v2209_v52 = vadd.f32 %v4602_v34, %v6350_v62 }
 0x21d   : > { %v2203_v33 = vpop.f32.mrf.mxu0 }
 0x21e   : > { %v2204_v22 = vadd.f32 %v6350_v62, %v2203_v33 }
 0x220   : > { %4656 = vmatprep.mubr.msk.f32.mxu1 %vm2253_vm1, %v2204_v22 }
 0x221   : > { %4657 = vmatmul.mubr.msk.f32.gmra.mxu1 %vm2253_vm1, %v2209_v52 }
 0x228   : > { %v4605_v31 = vpop.f32.mrf.mxu0 }
 0x229   : > { %v2219_v48 = vadd.f32 %v4605_v31, %v6350_v62 }
 0x22a   : > { %v2213_v56 = vpop.f32.mrf.mxu0 }
 0x22b   : > { %v2214_v0 = vadd.f32 %v6350_v62, %v2213_v56 }
 0x22d   : > { %4659 = vmatprep.mubr.msk.f32.mxu1 %vm2253_vm1, %v2214_v0 }
 0x22e   : > { %4660 = vmatmul.mubr.msk.f32.gmra.mxu1 %vm2253_vm1, %v2219_v48 }
 0x233   : > { %v4608_v10 = vpop.f32.mrf.mxu0 }
 0x234   : > { %v2229_v30 = vadd.f32 %v4608_v10, %v6350_v62 }
 0x235   : > { %v2223_v6 = vpop.f32.mrf.mxu0 }
 0x236   : > { %v2224_v46 = vadd.f32 %v6350_v62, %v2223_v6 }
 0x238   : > { %4662 = vmatprep.mubr.msk.f32.mxu1 %vm2253_vm1, %v2224_v46 }
 0x239   : > { %4663 = vmatmul.mubr.msk.f32.gmra.mxu1 %vm2253_vm1, %v2229_v30 }
 0x23e   : > { %v4611_v29 = vpop.f32.mrf.mxu0 }
 0x23f   : > { %v2239_v36 = vadd.f32 %v4611_v29, %v6350_v62 }
 0x240   : > { %v2233_v11 = vpop.f32.mrf.mxu0 }
 0x241   : > { %v2234_v51 = vadd.f32 %v6350_v62, %v2233_v11 }
 0x243   : > { %4665 = vmatprep.mubr.msk.f32.mxu1 %vm2253_vm1, %v2234_v51 }
 0x244   : > { %4666 = vmatmul.mubr.msk.f32.gmra.mxu1 %vm2253_vm1, %v2239_v36 }
 0x262   : > { %v4622_v63 = vpop.f32.mrf.mxu1 }
 0x263   : > { %v2422_v58 = vadd.f32 %v4622_v63, %v6419_v21 }
 0x264   : > { %v2416_v1 = vpop.f32.mrf.mxu1 }
 0x265   : > { %v4413_v38 = vmul.f32 -1.442695, %v2422_v58  ;;  %v2417_v37 = vadd.f32 %v6419_v21, %v2416_v1 }
 0x266   : > { %v4625_v9 = vpop.f32.mrf.mxu1 }
 0x267   : > { %4849 = vpow2.f32 %v4413_v38  ;;  %v4412_v35 = vmul.f32 -1.442695, %v2417_v37  ;;  %v2432_v62 = vadd.f32 %v4625_v9, %v6419_v21 }
 0x268   : > { %v2426_v39 = vpop.f32.mrf.mxu1 }
 0x269   : > { %4851 = vpow2.f32 %v4412_v35  ;;  %v4415_v24 = vmul.f32 -1.442695, %v2432_v62  ;;  %v2427_v23 = vadd.f32 %v6419_v21, %v2426_v39 }
 0x26b   : > { %4853 = vpow2.f32 %v4415_v24  ;;  %v4414_v41 = vmul.f32 -1.442695, %v2427_v23  ;;  %v4628_v49 = vpop.f32.mrf.mxu1 }
 0x26c   : > { %v2442_v20 = vadd.f32 %v4628_v49, %v6419_v21 }
 0x26d   : > { %4855 = vpow2.f32 %v4414_v41  ;;  %v2436_v5 = vpop.f32.mrf.mxu1 }
 0x26e   : > { %v4417_v13 = vmul.f32 -1.442695, %v2442_v20  ;;  %v2437_v47 = vadd.f32 %v6419_v21, %v2436_v5 }
 0x270   : > { %4857 = vpow2.f32 %v4417_v13  ;;  %v4416_v3 = vmul.f32 -1.442695, %v2437_v47 }
 0x272   : > { %4859 = vpow2.f32 %v4416_v3 }
 0x274   : > { %v4850_v14 = vpop.eup %4849 }
 0x275   : > { %v2672_v18 = vadd.f32 1.0, %v4850_v14 }
 0x276   : > { %v4852_v32 = vpop.eup %4851 }
 0x277   : > { %4861 = vrcp.f32 %v2672_v18  ;;  %v2671_v8 = vadd.f32 1.0, %v4852_v32 }
 0x278   : > { %v4854_v53 = vpop.eup %4853 }
 0x279   : > { %4863 = vrcp.f32 %v2671_v8  ;;  %v2674_v40 = vadd.f32 1.0, %v4854_v53  ;;  %v4631_v55 = vpop.f32.mrf.mxu1 }
 0x27a   : > { %v4856_v12 = vpop.eup %4855  ;;  %v2452_v54 = vadd.f32 %v4631_v55, %v6419_v21 }
 0x27b   : > { %4865 = vrcp.f32 %v2674_v40  ;;  %v2673_v17 = vadd.f32 1.0, %v4856_v12  ;;  %v2446_v45 = vpop.f32.mrf.mxu1 }
 0x27c   : > { %v4419_v57 = vmul.f32 -1.442695, %v2452_v54  ;;  %v6429_v42 = vadd.f32 %v6419_v21, %v2446_v45 }
 0x27d   : > { %4867 = vrcp.f32 %v2673_v17  ;;  %v4858_v60 = vpop.eup %4857 }
 0x27e   : > { %v2676_v26 = vadd.f32 1.0, %v4858_v60  ;;  %4869 = vpow2.f32 %v4419_v57  ;;  %v4418_v15 = vmul.f32 -1.442695, %v6429_v42 }
 0x27f   : > { %v4860_v4 = vpop.eup %4859 }
 0x280   : > { %4871 = vrcp.f32 %v2676_v26  ;;  %v2675_v28 = vadd.f32 1.0, %v4860_v4 }
 0x281   : > { %4873 = vpow2.f32 %v4418_v15 }
 0x282   : > { %4875 = vrcp.f32 %v2675_v28 }
 0x283   : > { %v4634_v43 = vpop.f32.mrf.mxu1 }
 0x284   : > { %v4862_v27 = vpop.eup %4861  ;;  %v2462_v7 = vadd.f32 %v4634_v43, %v6419_v21 }
 0x285   : > { %v6432_v19 = vmul.f32 %v4862_v27, %v2422_v58  ;;  %v2456_v50 = vpop.f32.mrf.mxu1 }
 0x286   : > { %v4864_v16 = vpop.eup %4863  ;;  %v4421_v33 = vmul.f32 -1.442695, %v2462_v7  ;;  %v2457_v22 = vadd.f32 %v6419_v21, %v2456_v50 }
 0x287   : > { %v6435_v61 = vmul.f32 %v4864_v16, %v2417_v37  ;;  %2833 = vrot.lane.b32.xlu1 %v6432_v19, %s5013_s23 }
 0x288   : > { %v4866_v34 = vpop.eup %4865  ;;  %4877 = vpow2.f32 %v4421_v33  ;;  %v4420_v56 = vmul.f32 -1.442695, %v2457_v22 }
 0x289   : > { %v6440_v52 = vmul.f32 %v4866_v34, %v2432_v62  ;;  %2831 = vrot.lane.b32.xlu0 %v6435_v61, %s5013_s23 }
 0x28a   : > { %v4868_v31 = vpop.eup %4867  ;;  %4879 = vpow2.f32 %v4420_v56 }
 0x28b   : > { %v6444_v0 = vmul.f32 %v4868_v31, %v2427_v23  ;;  %2837 = vrot.lane.b32.xlu1 %v6440_v52, %s5013_s23  ;;  %v4870_v48 = vpop.eup %4869 }
 0x28c   : > { %v2678_v10 = vadd.f32 1.0, %v4870_v48 }
 0x28d   : > { %2835 = vrot.lane.b32.xlu0 %v6444_v0, %s5013_s23  ;;  %v4872_v6 = vpop.eup %4871 }
 0x28e   : > { %v4874_v46 = vpop.eup %4873  ;;  %v6450_v30 = vmul.f32 %v4872_v6, %v2442_v20  ;;  %4881 = vrcp.f32 %v2678_v10 }
 0x28f   : > { %v4876_v29 = vpop.eup %4875  ;;  %v2677_v11 = vadd.f32 1.0, %v4874_v46 }
 0x290   : > { %v6452_v51 = vmul.f32 %v4876_v29, %v2437_v47  ;;  %v4637_v36 = vpop.f32.mrf.mxu1  ;;  %2841 = vrot.lane.b32.xlu1 %v6450_v30, %s5013_s23 }
 0x291   : > { %4883 = vrcp.f32 %v2677_v11  ;;  %v2472_v63 = vadd.f32 %v4637_v36, %v6419_v21 }
 0x292   : > { %v2466_v58 = vpop.f32.mrf.mxu1  ;;  %2839 = vrot.lane.b32.xlu0 %v6452_v51, %s5013_s23 }
 0x293   : > { %v4423_v1 = vmul.f32 -1.442695, %v2472_v63  ;;  %v2467_v38 = vadd.f32 %v6419_v21, %v2466_v58 }
 0x295   : > { %v4878_v37 = vpop.eup %4877  ;;  %4885 = vpow2.f32 %v4423_v1  ;;  %v4422_v9 = vmul.f32 -1.442695, %v2467_v38 }
 0x296   : > { %v2680_v35 = vadd.f32 1.0, %v4878_v37 }
 0x297   : > { %v4880_v62 = vpop.eup %4879  ;;  %4887 = vpow2.f32 %v4422_v9 }
 0x298   : > { %4889 = vrcp.f32 %v2680_v35  ;;  %v2679_v39 = vadd.f32 1.0, %v4880_v62 }
 0x29a   : > { %4891 = vrcp.f32 %v2679_v39 }
 0x29b   : > { %v4882_v24 = vpop.eup %4881 }
 0x29c   : > { %v6460_v23 = vmul.f32 %v4882_v24, %v2452_v54  ;;  %v4640_v41 = vpop.f32.mrf.mxu1 }
 0x29d   : > { %v2482_v49 = vadd.f32 %v4640_v41, %v6419_v21 }
 0x29e   : > { %v4884_v20 = vpop.eup %4883  ;;  %v2476_v5 = vpop.f32.mrf.mxu1  ;;  %2845 = vrot.lane.b32.xlu1 %v6460_v23, %s5013_s23 }
 0x29f   : > { %v6466_v13 = vmul.f32 %v4884_v20, %v6429_v42  ;;  %v4425_v47 = vmul.f32 -1.442695, %v2482_v49  ;;  %v2477_v3 = vadd.f32 %v6419_v21, %v2476_v5 }
 0x2a1   : > { %4893 = vpow2.f32 %v4425_v47  ;;  %v4424_v14 = vmul.f32 -1.442695, %v2477_v3  ;;  %2843 = vrot.lane.b32.xlu0 %v6466_v13, %s5013_s23 }
 0x2a2   : > { %v4886_v18 = vpop.eup %4885 }
 0x2a3   : > { %v2682_v32 = vadd.f32 1.0, %v4886_v18  ;;  %4895 = vpow2.f32 %v4424_v14 }
 0x2a4   : > { %v4888_v8 = vpop.eup %4887 }
 0x2a5   : > { %v4890_v53 = vpop.eup %4889  ;;  %4897 = vrcp.f32 %v2682_v32  ;;  %v2681_v40 = vadd.f32 1.0, %v4888_v8 }
 0x2a6   : > { %v6471_v12 = vmul.f32 %v4890_v53, %v2462_v7 }
 0x2a7   : > { %v4892_v17 = vpop.eup %4891  ;;  %4899 = vrcp.f32 %v2681_v40  ;;  %v4643_v55 = vpop.f32.mrf.mxu1 }
 0x2a8   : > { %v6473_v54 = vmul.f32 %v4892_v17, %v2457_v22  ;;  %v2492_v45 = vadd.f32 %v4643_v55, %v6419_v21  ;;  %2849 = vrot.lane.b32.xlu1 %v6471_v12, %s5013_s23 }
 0x2a9   : > { %v2486_v57 = vpop.f32.mrf.mxu1 }
 0x2aa   : > { %v4427_v42 = vmul.f32 -1.442695, %v2492_v45  ;;  %v2487_v60 = vadd.f32 %v6419_v21, %v2486_v57  ;;  %2847 = vrot.lane.b32.xlu0 %v6473_v54, %s5013_s23 }
 0x2ac   : > { %4901 = vpow2.f32 %v4427_v42  ;;  %v4426_v26 = vmul.f32 -1.442695, %v2487_v60 }
 0x2ae   : > { %v4894_v15 = vpop.eup %4893  ;;  %4903 = vpow2.f32 %v4426_v26 }
 0x2af   : > { %v2684_v4 = vadd.f32 1.0, %v4894_v15 }
 0x2b0   : > { %v4896_v28 = vpop.eup %4895 }
 0x2b1   : > { %4905 = vrcp.f32 %v2684_v4  ;;  %v2683_v27 = vadd.f32 1.0, %v4896_v28 }
 0x2b2   : > { %v4898_v43 = vpop.eup %4897 }
 0x2b3   : > { %v6481_v16 = vmul.f32 %v4898_v43, %v2472_v63  ;;  %4907 = vrcp.f32 %v2683_v27 }
 0x2b4   : > { %v4900_v7 = vpop.eup %4899  ;;  %v4646_v50 = vpop.f32.mrf.mxu1 }
 0x2b5   : > { %v6483_v34 = vmul.f32 %v4900_v7, %v2467_v38  ;;  %v2502_v33 = vadd.f32 %v4646_v50, %v6419_v21  ;;  %2853 = vrot.lane.b32.xlu1 %v6481_v16, %s5013_s23 }
 0x2b6   : > { %v2496_v22 = vpop.f32.mrf.mxu1 }
 0x2b7   : > { %v4429_v31 = vmul.f32 -1.442695, %v2502_v33  ;;  %v2497_v56 = vadd.f32 %v6419_v21, %v2496_v22  ;;  %2851 = vrot.lane.b32.xlu0 %v6483_v34, %s5013_s23 }
 0x2b9   : > { %v4902_v48 = vpop.eup %4901  ;;  %4909 = vpow2.f32 %v4429_v31  ;;  %v4428_v10 = vmul.f32 -1.442695, %v2497_v56 }
 0x2ba   : > { %v2686_v6 = vadd.f32 1.0, %v4902_v48 }
 0x2bb   : > { %v4904_v46 = vpop.eup %4903  ;;  %4911 = vpow2.f32 %v4428_v10 }
 0x2bc   : > { %4913 = vrcp.f32 %v2686_v6  ;;  %v2685_v29 = vadd.f32 1.0, %v4904_v46 }
 0x2be   : > { %v4906_v11 = vpop.eup %4905  ;;  %4915 = vrcp.f32 %v2685_v29  ;;  %v4649_v36 = vpop.f32.mrf.mxu1 }
 0x2bf   : > { %v6491_v63 = vmul.f32 %v4906_v11, %v2482_v49  ;;  %v2512_v58 = vadd.f32 %v4649_v36, %v6419_v21  ;;  %v3987_v11 = vld [vmem:[%s7633_s9 + $0x78] sm:$0xff] }
 0x2c0   : > { %v4908_v1 = vpop.eup %4907  ;;  %v2506_v38 = vpop.f32.mrf.mxu1  ;;  %4669 = vmatpush3.msra.mxu1 %v3987_v11 }
 0x2c1   : > { %v6494_v37 = vmul.f32 %v4908_v1, %v2477_v3  ;;  %v4431_v9 = vmul.f32 -1.442695, %v2512_v58  ;;  %v2507_v35 = vadd.f32 %v6419_v21, %v2506_v38  ;;  %2857 = vrot.lane.b32.xlu1 %v6491_v63, %s5013_s23 }
 0x2c3   : > { %4917 = vpow2.f32 %v4431_v9  ;;  %v4430_v62 = vmul.f32 -1.442695, %v2507_v35  ;;  %2855 = vrot.lane.b32.xlu0 %v6494_v37, %s5013_s23  ;;  %v6543_v9 = vld [vmem:[#allocation2] sm:$0xff] }
 0x2c4   : > { %4670 = vmatprep.subr.mxu1 %v6543_v9  ;;  %4700 = vmatprep.mubr.msk.f32.mxu1 %vm5014_vm2, %v6543_v9 }
 0x2c5   : > { %4919 = vpow2.f32 %v4430_v62 }
 0x2c6   : > { %v4910_v39 = vpop.eup %4909 }
 0x2c7   : > { %v2688_v24 = vadd.f32 1.0, %v4910_v39 }
 0x2c8   : > { %v4912_v41 = vpop.eup %4911 }
 0x2c9   : > { %v4914_v49 = vpop.eup %4913  ;;  %4921 = vrcp.f32 %v2688_v24  ;;  %v2687_v20 = vadd.f32 1.0, %v4912_v41  ;;  %v4652_v5 = vpop.f32.mrf.mxu1 }
 0x2ca   : > { %v6501_v47 = vmul.f32 %v4914_v49, %v2492_v45  ;;  %v2522_v3 = vadd.f32 %v4652_v5, %v6419_v21 }
 0x2cb   : > { %v4916_v14 = vpop.eup %4915  ;;  %4923 = vrcp.f32 %v2687_v20  ;;  %v2516_v18 = vpop.f32.mrf.mxu1 }
 0x2cc   : > { %v6504_v32 = vmul.f32 %v4916_v14, %v2487_v60  ;;  %v4433_v8 = vmul.f32 -1.442695, %v2522_v3  ;;  %v2517_v53 = vadd.f32 %v6419_v21, %v2516_v18  ;;  %2861 = vrot.lane.b32.xlu1 %v6501_v47, %s5013_s23 }
 0x2ce   : > { %4925 = vpow2.f32 %v4433_v8  ;;  %v4432_v40 = vmul.f32 -1.442695, %v2517_v53  ;;  %2859 = vrot.lane.b32.xlu0 %v6504_v32, %s5013_s23 }
 0x2d0   : > { %v4918_v17 = vpop.eup %4917  ;;  %4927 = vpow2.f32 %v4432_v40 }
 0x2d1   : > { %v2690_v55 = vadd.f32 1.0, %v4918_v17  ;;  %v3986_v17 = vld [vmem:[%s7633_s9 + $0x70] sm:$0xff] }
 0x2d2   : > { %v4920_v45 = vpop.eup %4919  ;;  %4671 = vmatpush3.msra.mxu1 %v3986_v17  ;;  %v2992_v17 = vld [vmem:[%s7631_s7 + $0x4] sm:$0x7] }
 0x2d3   : > { %4929 = vrcp.f32 %v2690_v55  ;;  %v2689_v57 = vadd.f32 1.0, %v4920_v45  ;;  %4672 = vmatprep.subr.mxu1 %v6543_v9 }
 0x2d5   : > { %4931 = vrcp.f32 %v2689_v57  ;;  %v2991_v57 = vld [vmem:[%s7631_s7] sm:$0x7] }
 0x2d6   : > { %v4922_v42 = vpop.eup %4921  ;;  %v4655_v60 = vpop.f32.mrf.mxu1 }
 0x2d7   : > { %v6511_v26 = vmul.f32 %v4922_v42, %v2502_v33  ;;  %v6514_v15 = vadd.f32 %v4655_v60, %v6419_v21 }
 0x2d8   : > { %v4924_v4 = vpop.eup %4923  ;;  %v2526_v28 = vpop.f32.mrf.mxu1 }
 0x2d9   : > { %v6516_v27 = vmul.f32 %v4924_v4, %v2497_v56  ;;  %v4435_v43 = vmul.f32 -1.442695, %v6514_v15  ;;  %v6520_v7 = vadd.f32 %v6419_v21, %v2526_v28  ;;  %2865 = vrot.lane.b32.xlu1 %v6511_v26, %s5013_s23  ;;  %v7787_v4 = vld [vmem:[#allocation3_spill] sm:$0xff] }
 0x2da   : > { %v6573_v28 = vrot.slane %v2991_v57, %v7787_v4 }
 0x2db   : > { %v4926_v50 = vpop.eup %4925  ;;  %4933 = vpow2.f32 %v4435_v43  ;;  %v4434_v33 = vmul.f32 -1.442695, %v6520_v7  ;;  %2863 = vrot.lane.b32.xlu0 %v6516_v27, %s5013_s23  ;;  %v7788_v43 = vld [vmem:[#allocation4_spill] sm:$0xff] }
 0x2dc   : > { %v2692_v22 = vadd.f32 1.0, %v4926_v50  ;;  %v6576_v50 = vrot.slane %v2991_v57, %v7788_v43 }
 0x2dd   : > { %v4928_v31 = vpop.eup %4927  ;;  %4935 = vpow2.f32 %v4434_v33 }
 0x2de   : > { %4937 = vrcp.f32 %v2692_v22  ;;  %v2691_v56 = vadd.f32 1.0, %v4928_v31  ;;  %v2994_v22 = vld [vmem:[#allocation2 + $0x7] sm:$0xff]  ;;  %v2995_v31 = vld [vmem:[#allocation2 + $0xf] sm:$0xff] }
 0x2e0   : > { %v4930_v48 = vpop.eup %4929  ;;  %4939 = vrcp.f32 %v2691_v56 }
 0x2e1   : > { %v6527_v10 = vmul.f32 %v4930_v48, %v2512_v58  ;;  %v4658_v6 = vpop.f32.mrf.mxu1 }
 0x2e2   : > { %v4932_v46 = vpop.eup %4931  ;;  %v6530_v29 = vadd.f32 %v4658_v6, %v6419_v21  ;;  %v7789_v6 = vld [vmem:[#allocation5_spill] sm:$0xff] }
 0x2e3   : > { %7783 = vst [vmem:[#allocation26_spill] sm:$0xff] %v6527_v10  ;;  %v6535_v36 = vmul.f32 %v4932_v46, %v2507_v35  ;;  %v2536_v1 = vpop.f32.mrf.mxu1  ;;  %2869 = vrot.lane.b32.xlu1 %v6527_v10, %s5013_s23  ;;  %v6579_v46 = vrot.slane %v2991_v57, %v7789_v6 }
 0x2e4   : > { %v4437_v38 = vmul.f32 -1.442695, %v6530_v29  ;;  %v6541_v58 = vadd.f32 %v6419_v21, %v2536_v1 }
 0x2e5   : > { %7784 = vst [vmem:[#allocation27_spill] sm:$0xff] %v6535_v36  ;;  %2867 = vrot.lane.b32.xlu0 %v6535_v36, %s5013_s23 }
 0x2e6   : > { %4941 = vpow2.f32 %v4437_v38  ;;  %v4436_v35 = vmul.f32 -1.442695, %v6541_v58  ;;  %v3130_v38 = vmul.f32 %v6543_v9, %v6576_v50 }
 0x2e8   : > { %v4934_v62 = vpop.eup %4933  ;;  %4943 = vpow2.f32 %v4436_v35 }
 0x2e9   : > { %v2694_v39 = vadd.f32 1.0, %v4934_v62 }
 0x2ea   : > { %v4936_v24 = vpop.eup %4935 }
 0x2eb   : > { %v4938_v41 = vpop.eup %4937  ;;  %4945 = vrcp.f32 %v2694_v39  ;;  %v2693_v49 = vadd.f32 1.0, %v4936_v24  ;;  %v3030_v39 = vmul.f32 %v6573_v28, %v2994_v22  ;;  %v3031_v24 = vmul.f32 %v6573_v28, %v2995_v31 }
 0x2ec   : > { %v6549_v20 = vmul.f32 %v4938_v41, %v2522_v3  ;;  %v3194_v41 = vld [vmem:[#allocation2 + $0x9] sm:$0xff] }
 0x2ed   : > { %v4940_v5 = vpop.eup %4939  ;;  %4947 = vrcp.f32 %v2693_v49  ;;  %v3195_v49 = vld [vmem:[#allocation2 + $0x11] sm:$0xff]  ;;  %v3230_v57 = vmul.f32 %v6579_v46, %v3194_v41  ;;  %v3163_v22 = vadd.f32 %v3130_v38, %v3031_v24 }
 0x2ee   : > { %7785 = vst [vmem:[#allocation31_spill] sm:$0xff] %v6549_v20  ;;  %v4661_v14 = vpop.f32.mrf.mxu1  ;;  %v6551_v18 = vmul.f32 %v4940_v5, %v2517_v53  ;;  %2873 = vrot.lane.b32.xlu1 %v6549_v20, %s5013_s23 }
 0x2ef   : > { %v6554_v8 = vadd.f32 %v4661_v14, %v6419_v21 }
 0x2f0   : > { %7786 = vst [vmem:[#allocation34_spill] sm:$0xff] %v6551_v18  ;;  %v2546_v40 = vpop.f32.mrf.mxu1  ;;  %2871 = vrot.lane.b32.xlu0 %v6551_v18, %s5013_s23 }
 0x2f1   : > { %v4439_v55 = vmul.f32 -1.442695, %v6554_v8  ;;  %v6563_v3 = vadd.f32 %v6419_v21, %v2546_v40 }
 0x2f3   : > { %4949 = vpow2.f32 %v4439_v55  ;;  %v4438_v53 = vmul.f32 -1.442695, %v6563_v3  ;;  %v4942_v45 = vpop.eup %4941 }
 0x2f4   : > { %v2696_v42 = vadd.f32 1.0, %v4942_v45 }
 0x2f5   : > { %4951 = vpow2.f32 %v4438_v53  ;;  %v4944_v60 = vpop.eup %4943 }
 0x2f6   : > { %4953 = vrcp.f32 %v2696_v42  ;;  %v2695_v33 = vadd.f32 1.0, %v4944_v60  ;;  %v3231_v42 = vmul.f32 %v6579_v46, %v3195_v49 }
 0x2f8   : > { %v4946_v48 = vpop.eup %4945  ;;  %4955 = vrcp.f32 %v2695_v33  ;;  %v3162_v33 = vadd.f32 %v3130_v38, %v3030_v39  ;;  %v6633_v38 = vrot.slane %v2992_v17, %v7789_v6 }
 0x2f9   : > { %v2834_v56 = vpop.permute.xlu1 %2833  ;;  %v4664_v11 = vpop.f32.mrf.mxu1  ;;  %v6586_v35 = vmul.f32 %v4946_v48, %v6514_v15  ;;  %v3985_v15 = vld [vmem:[%s7633_s9 + $0x68] sm:$0xff] }
 0x2fa   : > { %v2928_v1 = vsel %vm1920_vm0, %v6432_v19, %v2834_v56  ;;  %v6589_v62 = vadd.f32 %v4664_v11, %v6419_v21  ;;  %v4948_v14 = vpop.eup %4947  ;;  %4673 = vmatpush3.msra.mxu1 %v3985_v15  ;;  %v6622_v56 = vrot.slane %v2992_v17, %v7788_v43  ;;  %v6629_v11 = vrot.slane %v2992_v17, %v7787_v4 }
 0x2fb   : > { %7790 = vst [vmem:[#allocation36_spill] sm:$0xff] %v6586_v35  ;;  %2960 = vst [vmem:[#allocation2 + $0x30] sm:$0xff] %v2928_v1  ;;  %v2832_v5 = vpop.permute.xlu0 %2831  ;;  %v2556_v40 = vpop.f32.mrf.mxu1  ;;  %v6602_v55 = vmul.f32 %v4948_v14, %v6520_v7  ;;  %2877 = vrot.lane.b32.xlu1 %v6586_v35, %s5013_s23  ;;  %4674 = vmatprep.subr.mxu1 %v6543_v9  ;;  %v3133_v24 = vmul.f32 %v6576_v50, %v2928_v1 }
 0x2fc   : > { %v2927_v19 = vsel %vm1920_vm0, %v6435_v61, %v2832_v5  ;;  %v4441_v53 = vmul.f32 -1.442695, %v6589_v62  ;;  %v6606_v45 = vadd.f32 %v6419_v21, %v2556_v40  ;;  %v3262_v49 = vadd.f32 %v3230_v57, %v3162_v33 }
 0x2fd   : > { %7791 = vst [vmem:[#allocation38_spill] sm:$0xff] %v6602_v55  ;;  %2959 = vst [vmem:[#allocation2 + $0x28] sm:$0xff] %v2927_v19  ;;  %v2838_v61 = vpop.permute.xlu1 %2837  ;;  %2875 = vrot.lane.b32.xlu0 %v6602_v55, %s5013_s23  ;;  %v3263_v5 = vadd.f32 %v3231_v42, %v3163_v22  ;;  %v3430_v57 = vmul.f32 %v6622_v56, %v2927_v19 }
 0x2fe   : > { %v6614_v60 = vsel %vm1920_vm0, %v6440_v52, %v2838_v61  ;;  %4957 = vpow2.f32 %v4441_v53  ;;  %v4440_v7 = vmul.f32 -1.442695, %v6606_v45  ;;  %v3132_v53 = vmul.f32 %v6576_v50, %v2927_v19 }
 0x2ff   : > { %2962 = vst [vmem:[#allocation2 + $0x50] sm:$0xff] %v6614_v60  ;;  %v2836_v31 = vpop.permute.xlu0 %2835 }
 0x300   : > { %v6626_v52 = vsel %vm1920_vm0, %v6444_v0, %v2836_v31  ;;  %v4950_v48 = vpop.eup %4949  ;;  %4959 = vpow2.f32 %v4440_v7  ;;  %v3431_v0 = vmul.f32 %v6622_v56, %v2928_v1 }
 0x301   : > { %2961 = vst [vmem:[#allocation2 + $0x48] sm:$0xff] %v6626_v52  ;;  %v2698_v41 = vadd.f32 1.0, %v4950_v48 }
 0x302   : > { %v4952_v39 = vpop.eup %4951  ;;  %v3197_v33 = vld [vmem:[#allocation2 + $0x31] sm:$0xff] }
 0x303   : > { %4961 = vrcp.f32 %v2698_v41  ;;  %v2697_v14 = vadd.f32 1.0, %v4952_v39  ;;  %v4954_v7 = vpop.eup %4953 }
 0x304   : > { %v2996_v40 = vld [vmem:[#allocation2 + $0x27] sm:$0xff]  ;;  %v2997_v15 = vld [vmem:[#allocation2 + $0x2f] sm:$0xff]  ;;  %v4667_v31 = vpop.f32.mrf.mxu1  ;;  %v6643_v42 = vmul.f32 %v4954_v7, %v6530_v29 }
 0x305   : > { %v3196_v61 = vld [vmem:[#allocation2 + $0x29] sm:$0xff]  ;;  %v3032_v48 = vmul.f32 %v6573_v28, %v2996_v40  ;;  %v3033_v17 = vmul.f32 %v6573_v28, %v2997_v15  ;;  %v3330_v25 = vmul.f32 %v6629_v11, %v2996_v40  ;;  %4963 = vrcp.f32 %v2697_v14  ;;  %v4956_v41 = vpop.eup %4955 }
 0x306   : > { %7792 = vst [vmem:[#allocation40_spill] sm:$0xff] %v6643_v42  ;;  %v6646_v1 = vadd.f32 %v4667_v31, %v6419_v21  ;;  %v3331_v22 = vmul.f32 %v6629_v11, %v2997_v15  ;;  %v2566_v39 = vpop.f32.mrf.mxu1  ;;  %v3232_v2 = vmul.f32 %v6579_v46, %v3196_v61  ;;  %v6651_v40 = vmul.f32 %v4956_v41, %v6541_v58  ;;  %v6662_v15 = vld [vmem:[%s7631_s7 + $0x8] sm:$0x7]  ;;  %v2842_v41 = vpop.permute.xlu1 %2841 }
 0x307   : > { %v3164_v59 = vadd.f32 %v3132_v53, %v3032_v48  ;;  %v3165_v44 = vadd.f32 %v3133_v24, %v3033_v17  ;;  %v3362_v55 = vadd.f32 %v3330_v25, %v3262_v49  ;;  %v6655_v19 = vadd.f32 %v6419_v21, %v2566_v39  ;;  %2881 = vrot.lane.b32.xlu1 %v6643_v42, %s5013_s23  ;;  %v3984_v53 = vld [vmem:[%s7633_s9 + $0x60] sm:$0xff] }
 0x308   : > { %7793 = vst [vmem:[#allocation42_spill] sm:$0xff] %v6651_v40  ;;  %v4443_v29 = vmul.f32 -1.442695, %v6646_v1  ;;  %v3363_v14 = vadd.f32 %v3331_v22, %v3263_v5  ;;  %v3233_v24 = vmul.f32 %v6579_v46, %v3197_v33  ;;  %v3530_v58 = vmul.f32 %v6633_v38, %v3196_v61  ;;  %v2998_v21 = vld [vmem:[#allocation2 + $0x47] sm:$0xff]  ;;  %2879 = vrot.lane.b32.xlu0 %v6651_v40, %s5013_s23 }
 0x309   : > { %v3462_v25 = vadd.f32 %v3430_v57, %v3362_v55  ;;  %v6668_v49 = vrot.slane %v6662_v15, %v7787_v4  ;;  %v4442_v5 = vmul.f32 -1.442695, %v6655_v19  ;;  %v3264_v7 = vadd.f32 %v3232_v2, %v3164_v59  ;;  %v2999_v55 = vld [vmem:[#allocation2 + $0x4f] sm:$0xff]  ;;  %4675 = vmatpush3.msra.mxu1 %v3984_v53 }
 0x30a   : > { %4965 = vpow2.f32 %v4443_v29  ;;  %v3463_v31 = vadd.f32 %v3431_v0, %v3363_v14  ;;  %v3531_v61 = vmul.f32 %v6633_v38, %v3197_v33  ;;  %4676 = vmatprep.subr.mxu1 %v6543_v9  ;;  %v3265_v17 = vadd.f32 %v3233_v24, %v3165_v44  ;;  %v2840_v44 = vpop.permute.xlu0 %2839 }
 0x30b   : > { %v4958_v48 = vpop.eup %4957  ;;  %4967 = vpow2.f32 %v4442_v5  ;;  %v3562_v57 = vadd.f32 %v3530_v58, %v3462_v25  ;;  %v3332_v22 = vmul.f32 %v6629_v11, %v2998_v21  ;;  %v3333_v4 = vmul.f32 %v6629_v11, %v2999_v55 }
 0x30c   : > { %v2700_v39 = vadd.f32 1.0, %v4958_v48  ;;  %v3563_v29 = vadd.f32 %v3531_v61, %v3463_v31  ;;  %v6682_v2 = vrot.slane %v6662_v15, %v7788_v43  ;;  %v3432_v0 = vmul.f32 %v6622_v56, %v6626_v52 }
 0x30d   : > { %v4960_v40 = vpop.eup %4959  ;;  %v3364_v59 = vadd.f32 %v3332_v22, %v3264_v7  ;;  %v3630_v33 = vmul.f32 %v6668_v49, %v2998_v21  ;;  %v3631_v24 = vmul.f32 %v6668_v49, %v2999_v55  ;;  %v3365_v25 = vadd.f32 %v3333_v4, %v3265_v17  ;;  %v3983_v22 = vld [vmem:[%s7633_s9 + $0x58] sm:$0xff] }
 0x30e   : > { %4969 = vrcp.f32 %v2700_v39  ;;  %v2699_v14 = vadd.f32 1.0, %v4960_v40  ;;  %v6692_v43 = vsel %vm1920_vm0, %v6450_v30, %v2842_v41  ;;  %v6696_v7 = vsel %vm1920_vm0, %v6452_v51, %v2840_v44  ;;  %4677 = vmatpush3.msra.mxu1 %v3983_v22 }
 0x30f   : > { %v6688_v58 = vadd.f32 %v3432_v0, %v3364_v59  ;;  %v3662_v53 = vadd.f32 %v3630_v33, %v3562_v57  ;;  %v3663_v31 = vadd.f32 %v3631_v24, %v3563_v29  ;;  %v3433_v4 = vmul.f32 %v6622_v56, %v6614_v60  ;;  %2964 = vst [vmem:[#allocation2 + $0x70] sm:$0xff] %v6692_v43  ;;  %v6737_v59 = vld [vmem:[#allocation2 + $0x51] sm:$0xff] }
 0x310   : > { %v4962_v5 = vpop.eup %4961  ;;  %4971 = vrcp.f32 %v2699_v14  ;;  %v3731_v40 = vmul.f32 %v6682_v2, %v6614_v60  ;;  %2963 = vst [vmem:[#allocation2 + $0x68] sm:$0xff] %v6696_v7  ;;  %v2846_v48 = vpop.permute.xlu1 %2845  ;;  %v3034_v17 = vmul.f32 %v6573_v28, %v2998_v21  ;;  %v3035_v51 = vmul.f32 %v6573_v28, %v2999_v55  ;;  %4678 = vmatprep.subr.mxu1 %v6543_v9 }
 0x311   : > { %v6699_v61 = vmul.f32 %v4962_v5, %v6554_v8  ;;  %v3730_v8 = vmul.f32 %v6682_v2, %v6626_v52  ;;  %v6713_v57 = vsel %vm1920_vm0, %v6460_v23, %v2846_v48  ;;  %v3135_v21 = vmul.f32 %v6576_v50, %v6614_v60  ;;  %v6739_v60 = vld [vmem:[#allocation2 + $0x49] sm:$0xff] }
 0x312   : > { %v4964_v30 = vpop.eup %4963  ;;  %2966 = vst [vmem:[#allocation2 + $0x90] sm:$0xff] %v6713_v57  ;;  %v3134_v23 = vmul.f32 %v6576_v50, %v6626_v52  ;;  %v6729_v39 = vadd.f32 %v3433_v4, %v3365_v25  ;;  %v3235_v25 = vmul.f32 %v6579_v46, %v6737_v59  ;;  %v3437_v20 = vmul.f32 %v6622_v56, %v6713_v57 }
 0x313   : > { %7794 = vst [vmem:[#allocation44_spill] sm:$0xff] %v6699_v61  ;;  %v6719_v41 = vmul.f32 %v4964_v30, %v6563_v3  ;;  %2885 = vrot.lane.b32.xlu1 %v6699_v61, %s5013_s23  ;;  %v2844_v55 = vpop.permute.xlu0 %2843  ;;  %v6731_v29 = vadd.f32 %v3730_v8, %v3662_v53  ;;  %v6733_v3 = vadd.f32 %v3731_v40, %v3663_v31 }
 0x314   : > { %v6743_v0 = vsel %vm1920_vm0, %v6466_v13, %v2844_v55  ;;  %v3166_v33 = vadd.f32 %v3134_v23, %v3034_v17  ;;  %v3167_v44 = vadd.f32 %v3135_v21, %v3035_v51  ;;  %v3234_v53 = vmul.f32 %v6579_v46, %v6739_v60 }
 0x315   : > { %7795 = vst [vmem:[#allocation4_spill] sm:$0xff] %v6719_v41  ;;  %2883 = vrot.lane.b32.xlu0 %v6719_v41, %s5013_s23  ;;  %2965 = vst [vmem:[#allocation2 + $0x88] sm:$0xff] %v6743_v0  ;;  %v3136_v40 = vmul.f32 %v6576_v50, %v6696_v7  ;;  %v3137_v17 = vmul.f32 %v6576_v50, %v6692_v43  ;;  %v3436_v18 = vmul.f32 %v6622_v56, %v6743_v0 }
 0x316   : > { %v3266_v30 = vadd.f32 %v3234_v53, %v3166_v33  ;;  %v6762_v51 = vld [vmem:[#allocation2 + $0x71] sm:$0xff]  ;;  %v3267_v22 = vadd.f32 %v3235_v25, %v3167_v44  ;;  %v3434_v53 = vmul.f32 %v6622_v56, %v6696_v7 }
 0x317   : > { %v4966_v52 = vpop.eup %4965  ;;  %v6750_v5 = vld [vmem:[#allocation2 + $0x67] sm:$0xff]  ;;  %v6752_v31 = vld [vmem:[#allocation2 + $0x6f] sm:$0xff] }
 0x318   : > { %v2702_v14 = vadd.f32 1.0, %v4966_v52  ;;  %v4968_v24 = vpop.eup %4967  ;;  %v3036_v4 = vmul.f32 %v6573_v28, %v6750_v5  ;;  %v6758_v48 = vld [vmem:[#allocation2 + $0x69] sm:$0xff]  ;;  %v3037_v8 = vmul.f32 %v6573_v28, %v6752_v31  ;;  %v3334_v52 = vmul.f32 %v6629_v11, %v6750_v5 }
 0x319   : > { %v2701_v13 = vadd.f32 1.0, %v4968_v24  ;;  %v3236_v55 = vmul.f32 %v6579_v46, %v6758_v48  ;;  %v3435_v24 = vmul.f32 %v6622_v56, %v6692_v43 }
 0x31a   : > { %4973 = vrcp.f32 %v2702_v14  ;;  %v3168_v23 = vadd.f32 %v3136_v40, %v3036_v4  ;;  %v2850_v14 = vpop.permute.xlu1 %2849  ;;  %v3335_v4 = vmul.f32 %v6629_v11, %v6752_v31  ;;  %v3169_v41 = vadd.f32 %v3137_v17, %v3037_v8  ;;  %v3982_v17 = vld [vmem:[%s7633_s9 + $0x50] sm:$0xff] }
 0x31b   : > { %v4970_v21 = vpop.eup %4969  ;;  %4975 = vrcp.f32 %v2701_v13  ;;  %v6779_v44 = vsel %vm1920_vm0, %v6471_v12, %v2850_v14  ;;  %v3237_v13 = vmul.f32 %v6579_v46, %v6762_v51  ;;  %v3366_v8 = vadd.f32 %v3334_v52, %v3266_v30  ;;  %4679 = vmatpush3.msra.mxu1 %v3982_v17  ;;  %v3980_v30 = vld [vmem:[%s7633_s9 + $0x40] sm:$0xff]  ;;  %v6824_v17 = vld [vmem:[#allocation2 + $0x91] sm:$0xff] }
 0x31c   : > { %v6771_v33 = vmul.f32 %v4970_v21, %v6589_v62  ;;  %v6785_v40 = vld [vmem:[#allocation2 + $0x87] sm:$0xff]  ;;  %v3003_v62 = vld [vmem:[#allocation2 + $0x8f] sm:$0xff]  ;;  %2968 = vst [vmem:[#allocation2 + $0xb0] sm:$0xff] %v6779_v44  ;;  %v2848_v21 = vpop.permute.xlu0 %2847  ;;  %v3268_v61 = vadd.f32 %v3236_v55, %v3168_v23  ;;  %v3139_v55 = vmul.f32 %v6576_v50, %v6713_v57  ;;  %4680 = vmatprep.subr.mxu1 %v6543_v9 }
 0x31d   : > { %v4972_v25 = vpop.eup %4971  ;;  %v3038_v12 = vmul.f32 %v6573_v28, %v6785_v40  ;;  %v3336_v14 = vmul.f32 %v6629_v11, %v6785_v40  ;;  %v6799_v35 = vsel %vm1920_vm0, %v6473_v54, %v2848_v21  ;;  %v3039_v23 = vmul.f32 %v6573_v28, %v3003_v62  ;;  %v6820_v21 = vld [vmem:[#allocation2 + $0x89] sm:$0xff] }
 0x31e   : > { %7796 = vst [vmem:[#allocation5_spill] sm:$0xff] %v6771_v33  ;;  %v6789_v42 = vmul.f32 %v4972_v25, %v6606_v45  ;;  %2889 = vrot.lane.b32.xlu1 %v6771_v33, %s5013_s23  ;;  %2967 = vst [vmem:[#allocation2 + $0xa8] sm:$0xff] %v6799_v35  ;;  %v3981_v45 = vld [vmem:[%s7633_s9 + $0x48] sm:$0xff]  ;;  %v3138_v54 = vmul.f32 %v6576_v50, %v6743_v0  ;;  %v3269_v52 = vadd.f32 %v3237_v13, %v3169_v41  ;;  %v3979_v41 = vld [vmem:[%s7633_s9 + $0x38] sm:$0xff] }
 0x31f   : > { %v3337_v25 = vmul.f32 %v6629_v11, %v3003_v62  ;;  %4681 = vmatpush3.msra.mxu1 %v3981_v45  ;;  %v3368_v33 = vadd.f32 %v3336_v14, %v3268_v61  ;;  %v3171_v62 = vadd.f32 %v3139_v55, %v3039_v23  ;;  %v6834_v36 = vadd.f32 %v3434_v53, %v3366_v8  ;;  %v3978_v0 = vld [vmem:[%s7633_s9 + $0x30] sm:$0xff] }
 0x320   : > { %7797 = vst [vmem:[#allocation47_spill] sm:$0xff] %v6789_v42  ;;  %2887 = vrot.lane.b32.xlu0 %v6789_v42, %s5013_s23  ;;  %v3367_v42 = vadd.f32 %v3335_v4, %v3267_v22  ;;  %4682 = vmatprep.subr.mxu1 %v6543_v9  ;;  %v3170_v13 = vadd.f32 %v3138_v54, %v3038_v12 }
 0x321   : > { %v3369_v45 = vadd.f32 %v3337_v25, %v3269_v52  ;;  %4683 = vmatpush3.msra.mxu1 %v3980_v30  ;;  %v6838_v61 = vadd.f32 %v3436_v18, %v3368_v33  ;;  %v3238_v4 = vmul.f32 %v6579_v46, %v6820_v21  ;;  %v3239_v12 = vmul.f32 %v6579_v46, %v6824_v17  ;;  %v3976_v52 = vld [vmem:[%s7633_s9 + $0x20] sm:$0xff] }
 0x322   : > { %v6836_v22 = vadd.f32 %v3435_v24, %v3367_v42  ;;  %4684 = vmatprep.subr.mxu1 %v6543_v9  ;;  %v3532_v18 = vmul.f32 %v6633_v38, %v6739_v60  ;;  %v3977_v42 = vld [vmem:[%s7633_s9 + $0x28] sm:$0xff]  ;;  %v3533_v23 = vmul.f32 %v6633_v38, %v6737_v59 }
 0x323   : > { %v6848_v57 = vadd.f32 %v3437_v20, %v3369_v45  ;;  %4685 = vmatpush3.msra.mxu1 %v3979_v41  ;;  %v3270_v14 = vadd.f32 %v3238_v4, %v3170_v13  ;;  %v3271_v8 = vadd.f32 %v3239_v12, %v3171_v62 }
 0x324   : > { %4686 = vmatprep.subr.mxu1 %v6543_v9  ;;  %v3564_v54 = vadd.f32 %v3532_v18, %v6688_v58  ;;  %v3565_v13 = vadd.f32 %v3533_v23, %v6729_v39  ;;  %v3632_v18 = vmul.f32 %v6668_v49, %v6750_v5  ;;  %v3141_v23 = vmul.f32 %v6576_v50, %v6779_v44 }
 0x325   : > { %v6856_v33 = vld [vmem:[#allocation2 + $0xa7] sm:$0xff]  ;;  %v6858_v24 = vld [vmem:[#allocation2 + $0xaf] sm:$0xff]  ;;  %4687 = vmatpush3.msra.mxu1 %v3978_v0 }
 0x326   : > { %4688 = vmatprep.subr.mxu1 %v6543_v9  ;;  %v3338_v25 = vmul.f32 %v6629_v11, %v6856_v33  ;;  %v3040_v45 = vmul.f32 %v6573_v28, %v6856_v33  ;;  %v3041_v12 = vmul.f32 %v6573_v28, %v6858_v24  ;;  %v6915_v5 = vld [vmem:[#allocation2 + $0xa9] sm:$0xff] }
 0x327   : > { %v4974_v53 = vpop.eup %4973  ;;  %v2854_v30 = vpop.permute.xlu1 %2853  ;;  %4689 = vmatpush3.msra.mxu1 %v3977_v42  ;;  %v3633_v42 = vmul.f32 %v6668_v49, %v6752_v31  ;;  %v3973_v31 = vld [vmem:[%s7633_s9 + $0x8] sm:$0xff] }
 0x328   : > { %v6861_v20 = vmul.f32 %v4974_v53, %v6646_v1  ;;  %v4976_v55 = vpop.eup %4975  ;;  %v3339_v1 = vmul.f32 %v6629_v11, %v6858_v24  ;;  %v6881_v58 = vsel %vm1920_vm0, %v6481_v16, %v2854_v30  ;;  %4690 = vmatprep.subr.mxu1 %v6543_v9  ;;  %v3370_v0 = vadd.f32 %v3338_v25, %v3270_v14 }
 0x329   : > { %v6875_v41 = vmul.f32 %v4976_v55, %v6655_v19  ;;  %2970 = vst [vmem:[#allocation2 + $0xd0] sm:$0xff] %v6881_v58  ;;  %v2852_v62 = vpop.permute.xlu0 %2851  ;;  %v3975_v19 = vld [vmem:[%s7633_s9 + $0x18] sm:$0xff]  ;;  %v3438_v16 = vmul.f32 %v6622_v56, %v6799_v35  ;;  %4691 = vmatpush3.msra.mxu1 %v3976_v52  ;;  %v3439_v53 = vmul.f32 %v6622_v56, %v6779_v44 }
 0x32a   : > { %7798 = vst [vmem:[#allocation48_spill] sm:$0xff] %v6861_v20  ;;  %2893 = vrot.lane.b32.xlu1 %v6861_v20, %s5013_s23  ;;  %v3371_v4 = vadd.f32 %v3339_v1, %v3271_v8  ;;  %v2937_v39 = vsel %vm1920_vm0, %v6483_v34, %v2852_v62  ;;  %4692 = vmatprep.subr.mxu1 %v6543_v9  ;;  %v3974_v34 = vld [vmem:[%s7633_s9 + $0x10] sm:$0xff] }
 0x32b   : > { %7799 = vst [vmem:[#allocation49_spill] sm:$0xff] %v6875_v41  ;;  %2891 = vrot.lane.b32.xlu0 %v6875_v41, %s5013_s23  ;;  %2969 = vst [vmem:[#allocation2 + $0xc8] sm:$0xff] %v2937_v39  ;;  %v3140_v14 = vmul.f32 %v6576_v50, %v6799_v35  ;;  %v6911_v8 = vadd.f32 %v3438_v16, %v3370_v0  ;;  %4693 = vmatpush3.msra.mxu1 %v3975_v19  ;;  %v6923_v52 = vld [vmem:[#allocation2 + $0xb1] sm:$0xff]  ;;  %v3972_v19 = vld [vmem:[%s7633_s9] sm:$0xff] }
 0x32c   : > { %v6917_v55 = vadd.f32 %v3439_v53, %v3371_v4  ;;  %4694 = vmatprep.subr.mxu1 %v6543_v9  ;;  %v3664_v35 = vadd.f32 %v3632_v18, %v3564_v54  ;;  %v3665_v25 = vadd.f32 %v3633_v42, %v3565_v13  ;;  %v3732_v1 = vmul.f32 %v6682_v2, %v6696_v7 }
 0x32d   : > { %v3172_v30 = vadd.f32 %v3140_v14, %v3040_v45  ;;  %4695 = vmatpush3.msra.mxu1 %v3974_v34  ;;  %v3173_v44 = vadd.f32 %v3141_v23, %v3041_v12  ;;  %v3733_v62 = vmul.f32 %v6682_v2, %v6692_v43  ;;  %v3240_v45 = vmul.f32 %v6579_v46, %v6915_v5 }
 0x32e   : > { %4696 = vmatprep.subr.mxu1 %v6543_v9  ;;  %v6937_v54 = vrot.slane %v6662_v15, %v7789_v6  ;;  %v3241_v7 = vmul.f32 %v6579_v46, %v6923_v52  ;;  %v6941_v13 = vadd.f32 %v3732_v1, %v3664_v35  ;;  %v3440_v23 = vmul.f32 %v6622_v56, %v2937_v39 }
 0x32f   : > { %4697 = vmatpush3.msra.mxu1 %v3973_v31  ;;  %v6943_v43 = vadd.f32 %v3733_v62, %v3665_v25  ;;  %v3272_v0 = vadd.f32 %v3240_v45, %v3172_v30  ;;  %v3441_v31 = vmul.f32 %v6622_v56, %v6881_v58  ;;  %v6979_v25 = vld [vmem:[%s7632_s8] ss:$0 sm:$0xff]  ;;  %v3534_v1 = vmul.f32 %v6633_v38, %v6758_v48 }
 0x330   : > { %4698 = vmatprep.subr.mxu1 %v6543_v9  ;;  %v3273_v12 = vadd.f32 %v3241_v7, %v3173_v44  ;;  %v3830_v6 = vmul.f32 %v6937_v54, %v6739_v60  ;;  %v3831_v18 = vmul.f32 %v6937_v54, %v6737_v59  ;;  %v3143_v44 = vmul.f32 %v6576_v50, %v6881_v58  ;;  %v6996_v7 = vld [vmem:[#allocation2 + $0xd1] sm:$0xff] }
 0x331   : > { %4699 = vmatpush3.msra.mxu1 %v3972_v19 }
 0x332   : > { %v6946_v4 = vld [vmem:[#allocation2 + $0xc7] sm:$0xff]  ;;  %v6948_v16 = vld [vmem:[#allocation2 + $0xcf] sm:$0xff]  ;;  %4703 = vmatprep.subr.mxu1 %v6543_v9  ;;  %v3862_v9 = vadd.f32 %v3830_v6, %v6731_v29  ;;  %v3142_v29 = vmul.f32 %v6576_v50, %v2937_v39  ;;  %v3537_v39 = vmul.f32 %v6633_v38, %v6824_v17 }
 0x333   : > { %v2858_v15 = vpop.permute.xlu1 %2857  ;;  %v3340_v53 = vmul.f32 %v6629_v11, %v6946_v4  ;;  %v3341_v34 = vmul.f32 %v6629_v11, %v6948_v16  ;;  %v3043_v30 = vmul.f32 %v6573_v28, %v6948_v16  ;;  %v6994_v45 = vld [vmem:[#allocation2 + $0xc9] sm:$0xff] }
 0x334   : > { %v6959_v42 = vsel %vm1920_vm0, %v6491_v63, %v2858_v15  ;;  %v3042_v63 = vmul.f32 %v6573_v28, %v6946_v4  ;;  %v7005_v58 = vadd.f32 %v6979_v25, %v3862_v9  ;;  %v3243_v9 = vmul.f32 %v6579_v46, %v6996_v7 }
 0x335   : > { %2972 = vst [vmem:[#allocation2 + $0xf0] sm:$0xff] %v6959_v42  ;;  %v2856_v14 = vpop.permute.xlu0 %2855  ;;  %v3372_v60 = vadd.f32 %v3340_v53, %v3272_v0  ;;  %v3373_v35 = vadd.f32 %v3341_v34, %v3273_v12  ;;  %v3535_v0 = vmul.f32 %v6633_v38, %v6762_v51  ;;  %v3599_v12 = vld [vmem:[#allocation2 + $0x8f] sm:$0xff]  ;;  %v3175_v15 = vadd.f32 %v3143_v44, %v3043_v30  ;;  %v3624_v34 = vld [vmem:[#allocation2 + $0x227] sm:$0xff] }
 0x336   : > { %v6970_v59 = vsel %vm1920_vm0, %v6494_v37, %v2856_v14  ;;  %v6985_v37 = vadd.f32 %v3831_v18, %v6733_v3  ;;  %v3536_v3 = vmul.f32 %v6633_v38, %v6820_v21  ;;  %7800 = vst [vmem:[#allocation50_spill] sm:$0xff] %v7005_v58  ;;  %v3174_v6 = vadd.f32 %v3142_v29, %v3042_v63  ;;  %v3625_v14 = vld [vmem:[#allocation2 + $0x22f] sm:$0xff] }
 0x337   : > { %2971 = vst [vmem:[#allocation2 + $0xe8] sm:$0xff] %v6970_v59  ;;  %v6990_v62 = vadd.f32 %v3440_v23, %v3372_v60  ;;  %v6992_v19 = vadd.f32 %v3441_v31, %v3373_v35  ;;  %v3539_v53 = vmul.f32 %v6633_v38, %v6923_v52  ;;  %v3566_v18 = vadd.f32 %v3534_v1, %v6834_v36 }
 0x338   : > { %v3567_v51 = vadd.f32 %v3535_v0, %v6836_v22  ;;  %v3568_v21 = vadd.f32 %v3536_v3, %v6838_v61  ;;  %v3569_v60 = vadd.f32 %v3537_v39, %v6848_v57  ;;  %v3634_v23 = vmul.f32 %v6668_v49, %v6785_v40 }
 0x339   : > { %v3242_v31 = vmul.f32 %v6579_v46, %v6994_v45  ;;  %v3538_v36 = vmul.f32 %v6633_v38, %v6915_v5  ;;  %v3635_v63 = vmul.f32 %v6668_v49, %v3599_v12  ;;  %v3636_v22 = vmul.f32 %v6668_v49, %v6856_v33  ;;  %v3698_v33 = vld [vmem:[#allocation2 + $0x88] sm:$0xff] }
 0x33a   : > { %v3637_v61 = vmul.f32 %v6668_v49, %v6858_v24  ;;  %v7027_v57 = vmul.f32 %v6668_v49, %v3624_v34  ;;  %v7030_v40 = vmul.f32 %v6668_v49, %v3625_v14  ;;  %v3275_v44 = vadd.f32 %v3243_v9, %v3175_v15 }
 0x33b   : > { %v3274_v29 = vadd.f32 %v3242_v31, %v3174_v6  ;;  %v3570_v0 = vadd.f32 %v3538_v36, %v6911_v8  ;;  %v3666_v3 = vadd.f32 %v3634_v23, %v3566_v18  ;;  %v3571_v39 = vadd.f32 %v3539_v53, %v6917_v55  ;;  %v3699_v18 = vld [vmem:[#allocation2 + $0x90] sm:$0xff] }
 0x33c   : > { %7801 = vst [vmem:[#allocation51_spill] sm:$0xff] %v7027_v57  ;;  %7802 = vst [vmem:[#allocation52_spill] sm:$0xff] %v7030_v40  ;;  %v3667_v12 = vadd.f32 %v3635_v63, %v3567_v51  ;;  %v3668_v34 = vadd.f32 %v3636_v22, %v3568_v21  ;;  %v3669_v15 = vadd.f32 %v3637_v61, %v3569_v60  ;;  %v3701_v23 = vld [vmem:[#allocation2 + $0xb0] sm:$0xff] }
 0x33d   : > { %v3443_v51 = vmul.f32 %v6622_v56, %v6959_v42  ;;  %v3734_v21 = vmul.f32 %v6682_v2, %v3698_v33  ;;  %v3144_v60 = vmul.f32 %v6576_v50, %v6970_v59  ;;  %v3442_v36 = vmul.f32 %v6622_v56, %v6970_v59  ;;  %v3703_v22 = vld [vmem:[#allocation2 + $0xd0] sm:$0xff] }
 0x33e   : > { %v2862_v30 = vpop.permute.xlu1 %2861  ;;  %v7032_v35 = vld [vmem:[#allocation2 + $0xe7] sm:$0xff]  ;;  %v7034_v1 = vld [vmem:[#allocation2 + $0xef] sm:$0xff]  ;;  %v3735_v61 = vmul.f32 %v6682_v2, %v3699_v18  ;;  %v3737_v33 = vmul.f32 %v6682_v2, %v3701_v23  ;;  %v3832_v59 = vmul.f32 %v6937_v54, %v6758_v48  ;;  %v3739_v23 = vmul.f32 %v6682_v2, %v3703_v22 }
 0x33f   : > { %v7039_v24 = vsel %vm1920_vm0, %v6501_v47, %v2862_v30  ;;  %v3044_v40 = vmul.f32 %v6573_v28, %v7032_v35  ;;  %v3342_v6 = vmul.f32 %v6629_v11, %v7032_v35  ;;  %v3343_v8 = vmul.f32 %v6629_v11, %v7034_v1  ;;  %v3700_v47 = vld [vmem:[#allocation2 + $0xa8] sm:$0xff]  ;;  %v3209_v57 = vld [vmem:[#allocation2 + $0xf1] sm:$0xff] }
 0x340   : > { %2974 = vst [vmem:[#allocation2 + $0x110] sm:$0xff] %v7039_v24  ;;  %v2860_v14 = vpop.permute.xlu0 %2859  ;;  %v3045_v53 = vmul.f32 %v6573_v28, %v7034_v1  ;;  %v7065_v63 = vld [vmem:[#allocation2 + $0xe9] sm:$0xff]  ;;  %v3736_v30 = vmul.f32 %v6682_v2, %v3700_v47  ;;  %v3797_v18 = vld [vmem:[#allocation2 + $0x71] sm:$0xff] }
 0x341   : > { %v7051_v55 = vsel %vm1920_vm0, %v6504_v32, %v2860_v14  ;;  %v3374_v31 = vadd.f32 %v3342_v6, %v3274_v29  ;;  %v3375_v9 = vadd.f32 %v3343_v8, %v3275_v44  ;;  %v3145_v32 = vmul.f32 %v6576_v50, %v6959_v42  ;;  %v3702_v47 = vld [vmem:[#allocation2 + $0xc8] sm:$0xff] }
 0x342   : > { %2973 = vst [vmem:[#allocation2 + $0x108] sm:$0xff] %v7051_v55  ;;  %v3176_v14 = vadd.f32 %v3144_v60, %v3044_v40  ;;  %v3541_v42 = vmul.f32 %v6633_v38, %v6996_v7  ;;  %v3638_v6 = vmul.f32 %v6668_v49, %v6946_v4  ;;  %v3639_v8 = vmul.f32 %v6668_v49, %v6948_v16  ;;  %v3798_v48 = vld [vmem:[#allocation2 + $0x89] sm:$0xff] }
 0x343   : > { %v7070_v41 = vadd.f32 %v3442_v36, %v3374_v31  ;;  %v7072_v29 = vadd.f32 %v3443_v51, %v3375_v9  ;;  %v3177_v44 = vadd.f32 %v3145_v32, %v3045_v53  ;;  %v3244_v40 = vmul.f32 %v6579_v46, %v7065_v63 }
 0x344   : > { %v3766_v51 = vadd.f32 %v3734_v21, %v3666_v3  ;;  %v3767_v60 = vadd.f32 %v3735_v61, %v3667_v12  ;;  %v3245_v53 = vmul.f32 %v6579_v46, %v3209_v57  ;;  %v3670_v31 = vadd.f32 %v3638_v6, %v3570_v0 }
 0x345   : > { %v3671_v9 = vadd.f32 %v3639_v8, %v3571_v39  ;;  %v3768_v36 = vadd.f32 %v3736_v30, %v3668_v34  ;;  %v3276_v32 = vadd.f32 %v3244_v40, %v3176_v14  ;;  %v3540_v4 = vmul.f32 %v6633_v38, %v6994_v45 }
 0x346   : > { %v3769_v16 = vadd.f32 %v3737_v33, %v3669_v15  ;;  %v3833_v20 = vmul.f32 %v6937_v54, %v3797_v18  ;;  %v3277_v22 = vadd.f32 %v3245_v53, %v3177_v44  ;;  %v3738_v3 = vmul.f32 %v6682_v2, %v3702_v47  ;;  %v3705_v18 = vld [vmem:[#allocation2 + $0xf0] sm:$0xff] }
 0x347   : > { %v3834_v12 = vmul.f32 %v6937_v54, %v3798_v48  ;;  %v3835_v0 = vmul.f32 %v6937_v54, %v6824_v17  ;;  %v3572_v34 = vadd.f32 %v3540_v4, %v6990_v62  ;;  %v3573_v15 = vadd.f32 %v3541_v42, %v6992_v19 }
 0x348   : > { %v3836_v21 = vmul.f32 %v6937_v54, %v6915_v5  ;;  %v3770_v33 = vadd.f32 %v3738_v3, %v3670_v31  ;;  %v3771_v14 = vadd.f32 %v3739_v23, %v3671_v9  ;;  %v3837_v44 = vmul.f32 %v6937_v54, %v6923_v52  ;;  %v3704_v31 = vld [vmem:[#allocation2 + $0xe8] sm:$0xff] }
 0x349   : > { %v7089_v58 = vld [vmem:[#allocation2 + $0x107] sm:$0xff]  ;;  %v7091_v10 = vld [vmem:[#allocation2 + $0x10f] sm:$0xff]  ;;  %v3444_v62 = vmul.f32 %v6622_v56, %v7051_v55  ;;  %v3838_v5 = vmul.f32 %v6937_v54, %v6994_v45  ;;  %v3445_v8 = vmul.f32 %v6622_v56, %v7039_v24  ;;  %v3839_v52 = vmul.f32 %v6937_v54, %v6996_v7 }
 0x34a   : > { %v3344_v39 = vmul.f32 %v6629_v11, %v7089_v58  ;;  %v3345_v30 = vmul.f32 %v6629_v11, %v7091_v10  ;;  %v3047_v45 = vmul.f32 %v6573_v28, %v7091_v10  ;;  %v3865_v23 = vadd.f32 %v3833_v20, %v6943_v43  ;;  %v3211_v43 = vld [vmem:[#allocation2 + $0x111] sm:$0xff] }
 0x34b   : > { %v2866_v61 = vpop.permute.xlu1 %2865  ;;  %v3543_v53 = vmul.f32 %v6633_v38, %v3209_v57  ;;  %v3866_v7 = vadd.f32 %v3834_v12, %v3766_v51  ;;  %v3741_v9 = vmul.f32 %v6682_v2, %v3705_v18  ;;  %v3841_v20 = vmul.f32 %v6937_v54, %v3209_v57 }
 0x34c   : > { %v7109_v17 = vsel %vm1920_vm0, %v6511_v26, %v2866_v61  ;;  %v3376_v6 = vadd.f32 %v3344_v39, %v3276_v32  ;;  %v3377_v42 = vadd.f32 %v3345_v30, %v3277_v22  ;;  %v3864_v26 = vadd.f32 %v3832_v59, %v6941_v13 }
 0x34d   : > { %2976 = vst [vmem:[#allocation2 + $0x130] sm:$0xff] %v7109_v17  ;;  %v2864_v19 = vpop.permute.xlu0 %2863  ;;  %v3640_v13 = vmul.f32 %v6668_v49, %v7032_v35  ;;  %v3641_v59 = vmul.f32 %v6668_v49, %v7034_v1  ;;  %v3867_v4 = vadd.f32 %v3835_v0, %v3767_v60  ;;  %v3868_v22 = vadd.f32 %v3836_v21, %v3768_v36  ;;  %v3707_v0 = vld [vmem:[#allocation2 + $0x110] sm:$0xff] }
 0x34e   : > { %v7123_v40 = vsel %vm1920_vm0, %v6516_v27, %v2864_v19  ;;  %v7127_v47 = vadd.f32 %v3444_v62, %v3376_v6  ;;  %v7131_v48 = vadd.f32 %v3445_v8, %v3377_v42  ;;  %v3147_v27 = vmul.f32 %v6576_v50, %v7039_v24  ;;  %v7804_v8 = vld [vmem:[#allocation27_spill] sm:$0xff] }
 0x34f   : > { %2975 = vst [vmem:[#allocation2 + $0x128] sm:$0xff] %v7123_v40  ;;  %v3672_v32 = vadd.f32 %v3640_v13, %v3572_v34  ;;  %v3869_v3 = vadd.f32 %v3837_v44, %v3769_v16  ;;  %v3542_v35 = vmul.f32 %v6633_v38, %v7065_v63  ;;  %v3673_v51 = vadd.f32 %v3641_v59, %v3573_v15  ;;  %v7805_v59 = vld [vmem:[#allocation50_spill] sm:$0xff] }
 0x350   : > { %v3179_v39 = vadd.f32 %v3147_v27, %v3047_v45  ;;  %v3870_v12 = vadd.f32 %v3838_v5, %v3770_v33  ;;  %v3146_v24 = vmul.f32 %v6576_v50, %v7051_v55  ;;  %v3740_v1 = vmul.f32 %v6682_v2, %v3704_v31  ;;  %v7803_v33 = vld [vmem:[#allocation26_spill] sm:$0xff] }
 0x351   : > { %v3840_v61 = vmul.f32 %v6937_v54, %v7065_v63  ;;  %v7149_v57 = vadd.f32 %v3839_v52, %v3771_v14  ;;  %v3247_v60 = vmul.f32 %v6579_v46, %v3211_v43  ;;  %v3574_v36 = vadd.f32 %v3542_v35, %v7070_v41  ;;  %v3210_v52 = vld [vmem:[#allocation2 + $0x109] sm:$0xff] }
 0x352   : > { %v3575_v16 = vadd.f32 %v3543_v53, %v7072_v29  ;;  %v7156_v34 = vadd.f32 %v6979_v25, %v6985_v37  ;;  %v3046_v55 = vmul.f32 %v6573_v28, %v7089_v58  ;;  %v3772_v21 = vadd.f32 %v3740_v1, %v3672_v32 }
 0x353   : > { %v7161_v63 = vadd.f32 %v6979_v25, %v3864_v26  ;;  %v7164_v30 = vadd.f32 %v6979_v25, %v3865_v23  ;;  %v3279_v14 = vadd.f32 %v3247_v60, %v3179_v39  ;;  %v3773_v37 = vadd.f32 %v3741_v9, %v3673_v51 }
 0x354   : > { %v7173_v44 = vadd.f32 %v6979_v25, %v3866_v7  ;;  %v3545_v62 = vmul.f32 %v6633_v38, %v3211_v43  ;;  %v3643_v5 = vmul.f32 %v6668_v49, %v7091_v10  ;;  %v3743_v19 = vmul.f32 %v6682_v2, %v3707_v0  ;;  %v3706_v7 = vld [vmem:[#allocation2 + $0x108] sm:$0xff] }
 0x355   : > { %v2870_v15 = vpop.permute.xlu1 %2869  ;;  %v7181_v42 = vadd.f32 %v6979_v25, %v3867_v4  ;;  %v3642_v45 = vmul.f32 %v6668_v49, %v7089_v58  ;;  %v3843_v23 = vmul.f32 %v6937_v54, %v3211_v43  ;;  %v3178_v53 = vadd.f32 %v3146_v24, %v3046_v55 }
 0x356   : > { %v7168_v41 = vsel %vm1920_vm0, %v7803_v33, %v2870_v15  ;;  %v7170_v29 = vld [vmem:[#allocation2 + $0x12f] sm:$0xff]  ;;  %v3012_v10 = vld [vmem:[#allocation2 + $0x127] sm:$0xff]  ;;  %v3675_v13 = vadd.f32 %v3643_v5, %v3575_v16  ;;  %v3872_v27 = vadd.f32 %v3840_v61, %v3772_v21  ;;  %v3933_v31 = vadd.f32 %v7156_v34, %v7805_v59 }
 0x357   : > { %2978 = vst [vmem:[#allocation2 + $0x150] sm:$0xff] %v7168_v41  ;;  %v2868_v6 = vpop.permute.xlu0 %2867  ;;  %v3347_v26 = vmul.f32 %v6629_v11, %v7170_v29  ;;  %v3447_v32 = vmul.f32 %v6622_v56, %v7109_v17  ;;  %v3674_v4 = vadd.f32 %v3642_v45, %v3574_v36  ;;  %v3873_v39 = vadd.f32 %v3841_v20, %v3773_v37  ;;  %v3212_v21 = vld [vmem:[#allocation2 + $0x129] sm:$0xff] }
 0x358   : > { %v7185_v18 = vsel %vm1920_vm0, %v7804_v8, %v2868_v6  ;;  %v3246_v58 = vmul.f32 %v6579_v46, %v3210_v52  ;;  %v7199_v43 = vadd.f32 %v6979_v25, %v3868_v22  ;;  %v7202_v35 = vadd.f32 %v6979_v25, %v3869_v3 }
 0x359   : > { %2977 = vst [vmem:[#allocation2 + $0x148] sm:$0xff] %v7185_v18  ;;  %v3379_v9 = vadd.f32 %v3347_v26, %v3279_v14  ;;  %v3934_v51 = vadd.f32 %v3933_v31, %v7161_v63  ;;  %v3048_v24 = vmul.f32 %v6573_v28, %v3012_v10  ;;  %v3544_v61 = vmul.f32 %v6633_v38, %v3210_v52 }
 0x35a   : > { %7806 = vst [vmem:[#allocation26_spill] sm:$0xff] %v7199_v43  ;;  %7807 = vst [vmem:[#allocation27_spill] sm:$0xff] %v7202_v35  ;;  %v3742_v60 = vmul.f32 %v6682_v2, %v3706_v7  ;;  %v3049_v20 = vmul.f32 %v6573_v28, %v7170_v29  ;;  %v3149_v22 = vmul.f32 %v6576_v50, %v7109_v17 }
 0x35b   : > { %v7206_v1 = vadd.f32 %v3447_v32, %v3379_v9  ;;  %v3278_v36 = vadd.f32 %v3246_v58, %v3178_v53  ;;  %v3775_v16 = vadd.f32 %v3743_v19, %v3675_v13  ;;  %v3148_v3 = vmul.f32 %v6576_v50, %v7123_v40  ;;  %v3213_v19 = vld [vmem:[#allocation2 + $0x131] sm:$0xff] }
 0x35c   : > { %v3346_v0 = vmul.f32 %v6629_v11, %v3012_v10  ;;  %v3446_v15 = vmul.f32 %v6622_v56, %v7123_v40  ;;  %v3774_v55 = vadd.f32 %v3742_v60, %v3674_v4  ;;  %v3576_v33 = vadd.f32 %v3544_v61, %v7127_v47  ;;  %v7810_v47 = vld [vmem:[#allocation31_spill] sm:$0xff]  ;;  %v3709_v53 = vld [vmem:[#allocation2 + $0x130] sm:$0xff]  ;;  %v7812_v32 = vld [vmem:[#allocation34_spill] sm:$0xff] }
 0x35d   : > { %v3842_v14 = vmul.f32 %v6937_v54, %v3210_v52  ;;  %v7222_v37 = vadd.f32 %v6979_v25, %v3870_v12  ;;  %v3935_v17 = vadd.f32 %v3934_v51, %v7164_v30  ;;  %v3180_v5 = vadd.f32 %v3148_v3, %v3048_v24  ;;  %v3708_v51 = vld [vmem:[#allocation2 + $0x128] sm:$0xff] }
 0x35e   : > { %v3577_v8 = vadd.f32 %v3545_v62, %v7131_v48  ;;  %v7228_v26 = vadd.f32 %v6979_v25, %v7149_v57  ;;  %v7231_v40 = vadd.f32 %v6979_v25, %v3872_v27  ;;  %v3181_v45 = vadd.f32 %v3149_v22, %v3049_v20 }
 0x35f   : > { %v3875_v13 = vadd.f32 %v3843_v23, %v3775_v16  ;;  %v7240_v7 = vadd.f32 %v6979_v25, %v3873_v39  ;;  %v3248_v62 = vmul.f32 %v6579_v46, %v3212_v21  ;;  %v3378_v27 = vadd.f32 %v3346_v0, %v3278_v36 }
 0x360   : > { %v2874_v6 = vpop.permute.xlu1 %2873  ;;  %7808 = vst [vmem:[#allocation50_spill] sm:$0xff] %v7228_v26  ;;  %7809 = vst [vmem:[#allocation53_spill] sm:$0xff] %v7231_v40  ;;  %v7237_v12 = vld [vmem:[#allocation2 + $0x147] sm:$0xff]  ;;  %v3015_v57 = vld [vmem:[#allocation2 + $0x14f] sm:$0xff]  ;;  %v3644_v31 = vmul.f32 %v6668_v49, %v3012_v10  ;;  %v3874_v9 = vadd.f32 %v3842_v14, %v3774_v55  ;;  %v3249_v58 = vmul.f32 %v6579_v46, %v3213_v19 }
 0x361   : > { %v7235_v52 = vsel %vm1920_vm0, %v7810_v47, %v2874_v6  ;;  %7811 = vst [vmem:[#allocation31_spill] sm:$0xff] %v7240_v7  ;;  %v3547_v23 = vmul.f32 %v6633_v38, %v3213_v19  ;;  %v3936_v39 = vadd.f32 %v3935_v17, %v7173_v44  ;;  %v3280_v24 = vadd.f32 %v3248_v62, %v3180_v5  ;;  %v3215_v17 = vld [vmem:[#allocation2 + $0x151] sm:$0xff]  ;;  %v3214_v62 = vld [vmem:[#allocation2 + $0x149] sm:$0xff] }
 0x362   : > { %2980 = vst [vmem:[#allocation2 + $0x170] sm:$0xff] %v7235_v52  ;;  %v2872_v48 = vpop.permute.xlu0 %2871  ;;  %v3348_v61 = vmul.f32 %v6629_v11, %v7237_v12  ;;  %v3676_v60 = vadd.f32 %v3644_v31, %v3576_v33  ;;  %v3745_v20 = vmul.f32 %v6682_v2, %v3709_v53  ;;  %v3281_v10 = vadd.f32 %v3249_v58, %v3181_v45  ;;  %v3711_v45 = vld [vmem:[#allocation2 + $0x150] sm:$0xff] }
 0x363   : > { %v2947_v4 = vsel %vm1920_vm0, %v7812_v32, %v2872_v48  ;;  %v3349_v22 = vmul.f32 %v6629_v11, %v3015_v57  ;;  %v3645_v36 = vmul.f32 %v6668_v49, %v7170_v29  ;;  %v3845_v16 = vmul.f32 %v6937_v54, %v3213_v19 }
 0x364   : > { %2979 = vst [vmem:[#allocation2 + $0x168] sm:$0xff] %v2947_v4  ;;  %v3478_v3 = vadd.f32 %v3446_v15, %v3378_v27  ;;  %v3744_v0 = vmul.f32 %v6682_v2, %v3708_v51  ;;  %v7259_v55 = vadd.f32 %v6979_v25, %v3874_v9  ;;  %v7262_v14 = vadd.f32 %v6979_v25, %v3875_v13 }
 0x365   : > { %v3151_v33 = vmul.f32 %v6576_v50, %v7168_v41  ;;  %v3449_v6 = vmul.f32 %v6622_v56, %v7168_v41  ;;  %v3677_v5 = vadd.f32 %v3645_v36, %v3577_v8  ;;  %v3937_v29 = vadd.f32 %v3936_v39, %v7181_v42 }
 0x366   : > { %7813 = vst [vmem:[#allocation34_spill] sm:$0xff] %v7259_v55  ;;  %7814 = vst [vmem:[#allocation54_spill] sm:$0xff] %v7262_v14  ;;  %v3150_v15 = vmul.f32 %v6576_v50, %v7185_v18  ;;  %v3380_v19 = vadd.f32 %v3348_v61, %v3280_v24  ;;  %v3546_v47 = vmul.f32 %v6633_v38, %v3212_v21 }
 0x367   : > { %v3776_v53 = vadd.f32 %v3744_v0, %v3676_v60  ;;  %v3050_v13 = vmul.f32 %v6573_v28, %v7237_v12  ;;  %v3051_v48 = vmul.f32 %v6573_v28, %v3015_v57  ;;  %v3381_v27 = vadd.f32 %v3349_v22, %v3281_v10 }
 0x368   : > { %v3448_v41 = vmul.f32 %v6622_v56, %v7185_v18  ;;  %v3251_v8 = vmul.f32 %v6579_v46, %v3215_v17  ;;  %v3578_v31 = vadd.f32 %v3546_v47, %v3478_v3  ;;  %v3579_v9 = vadd.f32 %v3547_v23, %v7206_v1  ;;  %v7815_v3 = vld [vmem:[#allocation36_spill] sm:$0xff] }
 0x369   : > { %v3844_v32 = vmul.f32 %v6937_v54, %v3212_v21  ;;  %v3549_v58 = vmul.f32 %v6633_v38, %v3215_v17  ;;  %v3747_v51 = vmul.f32 %v6682_v2, %v3711_v45  ;;  %v3777_v39 = vadd.f32 %v3745_v20, %v3677_v5  ;;  %v3710_v45 = vld [vmem:[#allocation2 + $0x148] sm:$0xff] }
 0x36a   : > { %v3938_v24 = vadd.f32 %v3937_v29, %v7199_v43  ;;  %v3250_v61 = vmul.f32 %v6579_v46, %v3214_v62  ;;  %v3480_v60 = vadd.f32 %v3448_v41, %v3380_v19  ;;  %v3847_v10 = vmul.f32 %v6937_v54, %v3215_v17  ;;  %v3217_v43 = vld [vmem:[#allocation2 + $0x171] sm:$0xff] }
 0x36b   : > { %v3876_v18 = vadd.f32 %v3844_v32, %v3776_v53  ;;  %v3153_v36 = vmul.f32 %v6576_v50, %v7235_v52  ;;  %v3182_v1 = vadd.f32 %v3150_v15, %v3050_v13  ;;  %v3183_v23 = vadd.f32 %v3151_v33, %v3051_v48  ;;  %v3016_v19 = vld [vmem:[#allocation2 + $0x167] sm:$0xff]  ;;  %v3017_v47 = vld [vmem:[#allocation2 + $0x16f] sm:$0xff]  ;;  %v7816_v13 = vld [vmem:[#allocation38_spill] sm:$0xff] }
 0x36c   : > { %v3481_v21 = vadd.f32 %v3449_v6, %v3381_v27  ;;  %v3548_v20 = vmul.f32 %v6633_v38, %v3214_v62  ;;  %v3646_v5 = vmul.f32 %v6668_v49, %v7237_v12  ;;  %v3647_v29 = vmul.f32 %v6668_v49, %v3015_v57 }
 0x36d   : > { %v2878_v22 = vpop.permute.xlu1 %2877  ;;  %v3152_v15 = vmul.f32 %v6576_v50, %v2947_v4  ;;  %v3450_v33 = vmul.f32 %v6622_v56, %v2947_v4  ;;  %v3451_v6 = vmul.f32 %v6622_v56, %v7235_v52  ;;  %v3939_v53 = vadd.f32 %v3938_v24, %v7202_v35 }
 0x36e   : > { %v7289_v0 = vsel %vm1920_vm0, %v7815_v3, %v2878_v22  ;;  %v3580_v57 = vadd.f32 %v3548_v20, %v3480_v60  ;;  %v3678_v48 = vadd.f32 %v3646_v5, %v3578_v31  ;;  %v3679_v27 = vadd.f32 %v3647_v29, %v3579_v9  ;;  %v3712_v9 = vld [vmem:[#allocation2 + $0x168] sm:$0xff] }
 0x36f   : > { %2982 = vst [vmem:[#allocation2 + $0x190] sm:$0xff] %v7289_v0  ;;  %v2876_v17 = vpop.permute.xlu0 %2875  ;;  %v3282_v41 = vadd.f32 %v3250_v61, %v3182_v1  ;;  %v3283_v32 = vadd.f32 %v3251_v8, %v3183_v23  ;;  %v3581_v22 = vadd.f32 %v3549_v58, %v3481_v21  ;;  %v3877_v3 = vadd.f32 %v3845_v16, %v3777_v39  ;;  %v3713_v39 = vld [vmem:[#allocation2 + $0x170] sm:$0xff] }
 0x370   : > { %v7303_v12 = vsel %vm1920_vm0, %v7816_v13, %v2876_v17  ;;  %v3053_v4 = vmul.f32 %v6573_v28, %v3017_v47  ;;  %v3350_v52 = vmul.f32 %v6629_v11, %v3016_v19  ;;  %v3648_v24 = vmul.f32 %v6668_v49, %v3016_v19 }
 0x371   : > { %2981 = vst [vmem:[#allocation2 + $0x188] sm:$0xff] %v7303_v12  ;;  %v3746_v35 = vmul.f32 %v6682_v2, %v3710_v45  ;;  %v3351_v17 = vmul.f32 %v6629_v11, %v3017_v47  ;;  %v3649_v31 = vmul.f32 %v6668_v49, %v3017_v47  ;;  %v3846_v60 = vmul.f32 %v6937_v54, %v3214_v62  ;;  %v3216_v47 = vld [vmem:[#allocation2 + $0x169] sm:$0xff] }
 0x372   : > { %v3940_v8 = vadd.f32 %v3939_v53, %v7222_v37  ;;  %v3052_v16 = vmul.f32 %v6573_v28, %v3016_v19  ;;  %v3680_v58 = vadd.f32 %v3648_v24, %v3580_v57  ;;  %v3779_v1 = vadd.f32 %v3747_v51, %v3679_v27 }
 0x373   : > { %v3778_v61 = vadd.f32 %v3746_v35, %v3678_v48  ;;  %v3253_v23 = vmul.f32 %v6579_v46, %v3217_v43  ;;  %v3681_v21 = vadd.f32 %v3649_v31, %v3581_v22  ;;  %v7317_v20 = vadd.f32 %v6979_v25, %v3876_v18 }
 0x374   : > { %v7320_v5 = vadd.f32 %v6979_v25, %v3877_v3  ;;  %v3185_v29 = vadd.f32 %v3153_v36, %v3053_v4  ;;  %v3382_v62 = vadd.f32 %v3350_v52, %v3282_v41  ;;  %v3551_v45 = vmul.f32 %v6633_v38, %v3217_v43  ;;  %v7817_v36 = vld [vmem:[#allocation40_spill] sm:$0xff] }
 0x375   : > { %v3748_v19 = vmul.f32 %v6682_v2, %v3712_v9  ;;  %v3383_v53 = vadd.f32 %v3351_v17, %v3283_v32  ;;  %v3749_v35 = vmul.f32 %v6682_v2, %v3713_v39  ;;  %v3849_v51 = vmul.f32 %v6937_v54, %v3217_v43 }
 0x376   : > { %v3941_v13 = vadd.f32 %v3940_v8, %v7228_v26  ;;  %v3184_v48 = vadd.f32 %v3152_v15, %v3052_v16  ;;  %v3878_v22 = vadd.f32 %v3846_v60, %v3778_v61  ;;  %v3879_v3 = vadd.f32 %v3847_v10, %v3779_v1  ;;  %v7818_v8 = vld [vmem:[#allocation42_spill] sm:$0xff] }
 0x377   : > { %v3780_v27 = vadd.f32 %v3748_v19, %v3680_v58  ;;  %v3252_v4 = vmul.f32 %v6579_v46, %v3216_v47  ;;  %v3550_v52 = vmul.f32 %v6633_v38, %v3216_v47  ;;  %v3781_v32 = vadd.f32 %v3749_v35, %v3681_v21  ;;  %v3219_v61 = vld [vmem:[#allocation2 + $0x191] sm:$0xff] }
 0x378   : > { %v3019_v18 = vld [vmem:[#allocation2 + $0x18f] sm:$0xff]  ;;  %v3018_v17 = vld [vmem:[#allocation2 + $0x187] sm:$0xff]  ;;  %v3285_v43 = vadd.f32 %v3253_v23, %v3185_v29  ;;  %v3482_v9 = vadd.f32 %v3450_v33, %v3382_v62  ;;  %v3848_v15 = vmul.f32 %v6937_v54, %v3216_v47  ;;  %v3155_v60 = vmul.f32 %v6576_v50, %v7289_v0 }
 0x379   : > { %v2882_v57 = vpop.permute.xlu1 %2881  ;;  %v3353_v31 = vmul.f32 %v6629_v11, %v3019_v18  ;;  %v3483_v16 = vadd.f32 %v3451_v6, %v3383_v53  ;;  %v3942_v58 = vadd.f32 %v3941_v13, %v7231_v40  ;;  %v3154_v39 = vmul.f32 %v6576_v50, %v7303_v12  ;;  %v3715_v62 = vld [vmem:[#allocation2 + $0x190] sm:$0xff] }
 0x37a   : > { %v2952_v41 = vsel %vm1920_vm0, %v7817_v36, %v2882_v57  ;;  %v2880_v24 = vpop.permute.xlu0 %2879  ;;  %v3284_v1 = vadd.f32 %v3252_v4, %v3184_v48  ;;  %v3453_v33 = vmul.f32 %v6622_v56, %v7289_v0  ;;  %v3880_v23 = vadd.f32 %v3848_v15, %v3780_v27  ;;  %v3218_v57 = vld [vmem:[#allocation2 + $0x189] sm:$0xff] }
 0x37b   : > { %2984 = vst [vmem:[#allocation2 + $0x1b0] sm:$0xff] %v2952_v41  ;;  %v2951_v10 = vsel %vm1920_vm0, %v7818_v8, %v2880_v24  ;;  %v3054_v21 = vmul.f32 %v6573_v28, %v3018_v17  ;;  %v3055_v29 = vmul.f32 %v6573_v28, %v3019_v18  ;;  %v3352_v47 = vmul.f32 %v6629_v11, %v3018_v17 }
 0x37c   : > { %2983 = vst [vmem:[#allocation2 + $0x1a8] sm:$0xff] %v2951_v10  ;;  %v3881_v6 = vadd.f32 %v3849_v51, %v3781_v32  ;;  %v3385_v19 = vadd.f32 %v3353_v31, %v3285_v43  ;;  %v3452_v53 = vmul.f32 %v6622_v56, %v7303_v12  ;;  %v3582_v35 = vadd.f32 %v3550_v52, %v3482_v9 }
 0x37d   : > { %v7348_v13 = vadd.f32 %v6979_v25, %v3878_v22  ;;  %v3255_v0 = vmul.f32 %v6579_v46, %v3219_v61  ;;  %v3583_v48 = vadd.f32 %v3551_v45, %v3483_v16  ;;  %v7352_v27 = vadd.f32 %v6979_v25, %v3879_v3 }
 0x37e   : > { %v3943_v36 = vadd.f32 %v3942_v58, %v7240_v7  ;;  %v3553_v4 = vmul.f32 %v6633_v38, %v3219_v61  ;;  %v3751_v51 = vmul.f32 %v6682_v2, %v3715_v62  ;;  %v3851_v32 = vmul.f32 %v6937_v54, %v3219_v61 }
 0x37f   : > { %v7359_v12 = vadd.f32 %v6979_v25, %v3880_v23  ;;  %v3186_v22 = vadd.f32 %v3154_v39, %v3054_v21  ;;  %v3187_v52 = vadd.f32 %v3155_v60, %v3055_v29  ;;  %v3384_v24 = vadd.f32 %v3352_v47, %v3284_v1  ;;  %v3714_v60 = vld [vmem:[#allocation2 + $0x188] sm:$0xff] }
 0x380   : > { %v7362_v43 = vadd.f32 %v6979_v25, %v3881_v6  ;;  %v3254_v45 = vmul.f32 %v6579_v46, %v3218_v57  ;;  %v3485_v3 = vadd.f32 %v3453_v33, %v3385_v19  ;;  %v3650_v31 = vmul.f32 %v6668_v49, %v3018_v17  ;;  %v7820_v29 = vld [vmem:[#allocation44_spill] sm:$0xff] }
 0x381   : > { %v3651_v9 = vmul.f32 %v6668_v49, %v3019_v18  ;;  %v3157_v16 = vmul.f32 %v6576_v50, %v2952_v41  ;;  %v3455_v58 = vmul.f32 %v6622_v56, %v2952_v41  ;;  %v3552_v39 = vmul.f32 %v6633_v38, %v3218_v57 }
 0x382   : > { %7819 = vst [vmem:[#allocation36_spill] sm:$0xff] %v7362_v43  ;;  %v3944_v61 = vadd.f32 %v3943_v36, %v7259_v55  ;;  %v3156_v23 = vmul.f32 %v6576_v50, %v2951_v10  ;;  %v3454_v33 = vmul.f32 %v6622_v56, %v2951_v10  ;;  %v3682_v21 = vadd.f32 %v3650_v31, %v3582_v35  ;;  %v3221_v36 = vld [vmem:[#allocation2 + $0x1b1] sm:$0xff]  ;;  %v7821_v10 = vld [vmem:[#allocation4_spill] sm:$0xff] }
 0x383   : > { %v3020_v15 = vld [vmem:[#allocation2 + $0x1a7] sm:$0xff]  ;;  %v3021_v8 = vld [vmem:[#allocation2 + $0x1af] sm:$0xff]  ;;  %v3683_v17 = vadd.f32 %v3651_v9, %v3583_v48  ;;  %v3286_v47 = vadd.f32 %v3254_v45, %v3186_v22  ;;  %v3287_v62 = vadd.f32 %v3255_v0, %v3187_v52  ;;  %v3484_v6 = vadd.f32 %v3452_v53, %v3384_v24 }
 0x384   : > { %v3056_v19 = vmul.f32 %v6573_v28, %v3020_v15  ;;  %v3057_v7 = vmul.f32 %v6573_v28, %v3021_v8  ;;  %v3585_v55 = vadd.f32 %v3553_v4, %v3485_v3  ;;  %v3717_v40 = vld [vmem:[#allocation2 + $0x1b0] sm:$0xff]  ;;  %v3750_v26 = vmul.f32 %v6682_v2, %v3714_v60 }
 0x385   : > { %v2886_v1 = vpop.permute.xlu1 %2885  ;;  %v3354_v48 = vmul.f32 %v6629_v11, %v3020_v15  ;;  %v3355_v22 = vmul.f32 %v6629_v11, %v3021_v8  ;;  %v3945_v53 = vadd.f32 %v3944_v61, %v7262_v14  ;;  %v3653_v0 = vmul.f32 %v6668_v49, %v3021_v8  ;;  %v3220_v4 = vld [vmem:[#allocation2 + $0x1a9] sm:$0xff] }
 0x386   : > { %v2954_v18 = vsel %vm1920_vm0, %v7820_v29, %v2886_v1  ;;  %v3782_v52 = vadd.f32 %v3750_v26, %v3682_v21  ;;  %v3783_v24 = vadd.f32 %v3751_v51, %v3683_v17  ;;  %v3850_v45 = vmul.f32 %v6937_v54, %v3218_v57  ;;  %v3716_v21 = vld [vmem:[#allocation2 + $0x1a8] sm:$0xff] }
 0x387   : > { %2986 = vst [vmem:[#allocation2 + $0x1d0] sm:$0xff] %v2954_v18  ;;  %v2884_v41 = vpop.permute.xlu0 %2883  ;;  %v3257_v3 = vmul.f32 %v6579_v46, %v3221_v36  ;;  %v3555_v31 = vmul.f32 %v6633_v38, %v3221_v36  ;;  %v3584_v9 = vadd.f32 %v3552_v39, %v3484_v6  ;;  %v3753_v60 = vmul.f32 %v6682_v2, %v3717_v40 }
 0x388   : > { %v2953_v35 = vsel %vm1920_vm0, %v7821_v10, %v2884_v41  ;;  %v3188_v1 = vadd.f32 %v3156_v23, %v3056_v19  ;;  %v3189_v29 = vadd.f32 %v3157_v16, %v3057_v7  ;;  %v3685_v41 = vadd.f32 %v3653_v0, %v3585_v55  ;;  %v7822_v0 = vld [vmem:[#allocation5_spill] sm:$0xff] }
 0x389   : > { %2985 = vst [vmem:[#allocation2 + $0x1c8] sm:$0xff] %v2953_v35  ;;  %v3853_v61 = vmul.f32 %v6937_v54, %v3221_v36  ;;  %v3386_v10 = vadd.f32 %v3354_v48, %v3286_v47  ;;  %v3387_v14 = vadd.f32 %v3355_v22, %v3287_v62  ;;  %v3652_v26 = vmul.f32 %v6668_v49, %v3020_v15 }
 0x38a   : > { %v3946_v51 = vadd.f32 %v3945_v53, %v7317_v20  ;;  %v3256_v57 = vmul.f32 %v6579_v46, %v3220_v4  ;;  %v3554_v8 = vmul.f32 %v6633_v38, %v3220_v4  ;;  %v3882_v17 = vadd.f32 %v3850_v45, %v3782_v52 }
 0x38b   : > { %v3883_v39 = vadd.f32 %v3851_v32, %v3783_v24  ;;  %v3158_v40 = vmul.f32 %v6576_v50, %v2953_v35  ;;  %v3159_v7 = vmul.f32 %v6576_v50, %v2954_v18  ;;  %v3457_v55 = vmul.f32 %v6622_v56, %v2954_v18 }
 0x38c   : > { %v3684_v16 = vadd.f32 %v3652_v26, %v3584_v9  ;;  %v3288_v23 = vadd.f32 %v3256_v57, %v3188_v1  ;;  %v3289_v47 = vadd.f32 %v3257_v3, %v3189_v29  ;;  %v3785_v62 = vadd.f32 %v3753_v60, %v3685_v41  ;;  %v7823_v1 = vld [vmem:[#allocation47_spill] sm:$0xff] }
 0x38d   : > { %v3947_v15 = vadd.f32 %v3946_v51, %v7320_v5  ;;  %v3456_v48 = vmul.f32 %v6622_v56, %v2953_v35  ;;  %v3486_v22 = vadd.f32 %v3454_v33, %v3386_v10  ;;  %v3487_v53 = vadd.f32 %v3455_v58, %v3387_v14 }
 0x38e   : > { %v3752_v32 = vmul.f32 %v6682_v2, %v3716_v21  ;;  %v3852_v18 = vmul.f32 %v6937_v54, %v3220_v4  ;;  %v7403_v24 = vadd.f32 %v6979_v25, %v3882_v17  ;;  %v7406_v45 = vadd.f32 %v6979_v25, %v3883_v39  ;;  %v3223_v35 = vld [vmem:[#allocation2 + $0x1d1] sm:$0xff] }
 0x38f   : > { %v3719_v33 = vld [vmem:[#allocation2 + $0x1d0] sm:$0xff]  ;;  %v3885_v41 = vadd.f32 %v3853_v61, %v3785_v62  ;;  %v3948_v10 = vadd.f32 %v3947_v15, %v7348_v13  ;;  %v3586_v57 = vadd.f32 %v3554_v8, %v3486_v22  ;;  %v3587_v21 = vadd.f32 %v3555_v31, %v3487_v53 }
 0x390   : > { %v2890_v6 = vpop.permute.xlu1 %2889  ;;  %v3022_v19 = vld [vmem:[#allocation2 + $0x1c7] sm:$0xff]  ;;  %v3023_v36 = vld [vmem:[#allocation2 + $0x1cf] sm:$0xff]  ;;  %v3784_v60 = vadd.f32 %v3752_v32, %v3684_v16  ;;  %v3259_v39 = vmul.f32 %v6579_v46, %v3223_v35  ;;  %v3755_v16 = vmul.f32 %v6682_v2, %v3719_v33  ;;  %v3855_v32 = vmul.f32 %v6937_v54, %v3223_v35 }
 0x391   : > { %v2956_v52 = vsel %vm1920_vm0, %v7822_v0, %v2890_v6  ;;  %v3058_v9 = vmul.f32 %v6573_v28, %v3022_v19  ;;  %v3356_v14 = vmul.f32 %v6629_v11, %v3022_v19  ;;  %v3357_v58 = vmul.f32 %v6629_v11, %v3023_v36  ;;  %v3222_v17 = vld [vmem:[#allocation2 + $0x1c9] sm:$0xff] }
 0x392   : > { %2988 = vst [vmem:[#allocation2 + $0x1f0] sm:$0xff] %v2956_v52  ;;  %v2888_v3 = vpop.permute.xlu0 %2887  ;;  %v3059_v29 = vmul.f32 %v6573_v28, %v3023_v36  ;;  %v3557_v6 = vmul.f32 %v6633_v38, %v3223_v35  ;;  %v3655_v61 = vmul.f32 %v6668_v49, %v3023_v36  ;;  %v3884_v62 = vadd.f32 %v3852_v18, %v3784_v60 }
 0x393   : > { %v2955_v4 = vsel %vm1920_vm0, %v7823_v1, %v2888_v3  ;;  %v3388_v26 = vadd.f32 %v3356_v14, %v3288_v23  ;;  %v3389_v51 = vadd.f32 %v3357_v58, %v3289_v47  ;;  %v3190_v0 = vadd.f32 %v3158_v40, %v3058_v9  ;;  %v3718_v47 = vld [vmem:[#allocation2 + $0x1c8] sm:$0xff] }
 0x394   : > { %2987 = vst [vmem:[#allocation2 + $0x1e8] sm:$0xff] %v2955_v4  ;;  %v3654_v3 = vmul.f32 %v6668_v49, %v3022_v19  ;;  %v3191_v15 = vadd.f32 %v3159_v7, %v3059_v29  ;;  %v7422_v31 = vadd.f32 %v6979_v25, %v3885_v41  ;;  %v3949_v8 = vadd.f32 %v3948_v10, %v7352_v27 }
 0x395   : > { %v3488_v23 = vadd.f32 %v3456_v48, %v3388_v26  ;;  %v3258_v22 = vmul.f32 %v6579_v46, %v3222_v17  ;;  %v3489_v53 = vadd.f32 %v3457_v55, %v3389_v51  ;;  %v3687_v58 = vadd.f32 %v3655_v61, %v3587_v21 }
 0x396   : > { %v3686_v14 = vadd.f32 %v3654_v3, %v3586_v57  ;;  %v3160_v40 = vmul.f32 %v6576_v50, %v2955_v4  ;;  %v3161_v19 = vmul.f32 %v6576_v50, %v2956_v52  ;;  %v3459_v36 = vmul.f32 %v6622_v56, %v2956_v52  ;;  %v7824_v52 = vld [vmem:[#allocation48_spill] sm:$0xff] }
 0x397   : > { %v3556_v7 = vmul.f32 %v6633_v38, %v3222_v17  ;;  %v3290_v48 = vadd.f32 %v3258_v22, %v3190_v0  ;;  %v3458_v18 = vmul.f32 %v6622_v56, %v2955_v4  ;;  %v3754_v9 = vmul.f32 %v6682_v2, %v3718_v47 }
 0x398   : > { %v3950_v35 = vadd.f32 %v3949_v8, %v7359_v12  ;;  %v3291_v29 = vadd.f32 %v3259_v39, %v3191_v15  ;;  %v3854_v10 = vmul.f32 %v6937_v54, %v3222_v17  ;;  %v7435_v50 = vadd.f32 %v6979_v25, %v3884_v62  ;;  %v7825_v25 = vld [vmem:[#allocation49_spill] sm:$0xff] }
 0x399   : > { %v3225_v1 = vld [vmem:[#allocation2 + $0x1f1] sm:$0xff]  ;;  %v3588_v41 = vadd.f32 %v3556_v7, %v3488_v23  ;;  %v3589_v51 = vadd.f32 %v3557_v6, %v3489_v53  ;;  %v3786_v4 = vadd.f32 %v3754_v9, %v3686_v14  ;;  %v3787_v57 = vadd.f32 %v3755_v16, %v3687_v58 }
 0x39a   : > { %v3721_v15 = vld [vmem:[#allocation2 + $0x1f0] sm:$0xff]  ;;  %v3261_v23 = vmul.f32 %v6579_v46, %v3225_v1  ;;  %v3951_v16 = vadd.f32 %v3950_v35, %v7362_v43 }
 0x39b   : > { %v3024_v60 = vld [vmem:[#allocation2 + $0x1e7] sm:$0xff]  ;;  %v3025_v55 = vld [vmem:[#allocation2 + $0x1ef] sm:$0xff]  ;;  %v3757_v7 = vmul.f32 %v6682_v2, %v3721_v15  ;;  %v3886_v9 = vadd.f32 %v3854_v10, %v3786_v4  ;;  %v3887_v43 = vadd.f32 %v3855_v32, %v3787_v57 }
 0x39c   : > { %v2894_v33 = vpop.permute.xlu1 %2893  ;;  %v3060_v0 = vmul.f32 %v6573_v28, %v3024_v60  ;;  %v3061_v3 = vmul.f32 %v6573_v28, %v3025_v55  ;;  %v3358_v39 = vmul.f32 %v6629_v11, %v3024_v60  ;;  %v3359_v61 = vmul.f32 %v6629_v11, %v3025_v55  ;;  %v3720_v17 = vld [vmem:[#allocation2 + $0x1e8] sm:$0xff] }
 0x39d   : > { %v2958_v26 = vsel %vm1920_vm0, %v7824_v52, %v2894_v33  ;;  %v2892_v21 = vpop.permute.xlu0 %2891  ;;  %v3656_v6 = vmul.f32 %v6668_v49, %v3024_v60  ;;  %v3559_v28 = vmul.f32 %v6633_v38, %v3225_v1  ;;  %v3657_v22 = vmul.f32 %v6668_v49, %v3025_v55  ;;  %v3224_v53 = vld [vmem:[#allocation2 + $0x1e9] sm:$0xff] }
 0x39e   : > { %2990 = vst [vmem:[#allocation2 + $0x210] sm:$0xff] %v2958_v26  ;;  %v2957_v62 = vsel %vm1920_vm0, %v7825_v25, %v2892_v21  ;;  %v3390_v47 = vadd.f32 %v3358_v39, %v3290_v48  ;;  %v3391_v8 = vadd.f32 %v3359_v61, %v3291_v29  ;;  %v3756_v58 = vmul.f32 %v6682_v2, %v3720_v17 }
 0x39f   : > { %2989 = vst [vmem:[#allocation2 + $0x208] sm:$0xff] %v2957_v62  ;;  %v3688_v14 = vadd.f32 %v3656_v6, %v3588_v41  ;;  %v3192_v33 = vadd.f32 %v3160_v40, %v3060_v0  ;;  %v3193_v52 = vadd.f32 %v3161_v19, %v3061_v3  ;;  %v3689_v60 = vadd.f32 %v3657_v22, %v3589_v51 }
 0x3a0   : > { %v3490_v21 = vadd.f32 %v3458_v18, %v3390_v47  ;;  %v3491_v25 = vadd.f32 %v3459_v36, %v3391_v8  ;;  %v3952_v48 = vadd.f32 %v3951_v16, %v7403_v24  ;;  %v3260_v29 = vmul.f32 %v6579_v46, %v3224_v53  ;;  %v5002_v46 = vld [vmem:[%s7632_s8] ss:$0 sm:$0xff] }
 0x3a1   : > { %v3788_v35 = vadd.f32 %v3756_v58, %v3688_v14  ;;  %v3461_v55 = vmul.f32 %v6622_v56, %v2958_v26  ;;  %v3558_v41 = vmul.f32 %v6633_v38, %v3224_v53  ;;  %v3857_v39 = vmul.f32 %v6937_v54, %v3225_v1 }
 0x3a2   : > { %v3460_v61 = vmul.f32 %v6622_v56, %v2957_v62  ;;  %v3789_v40 = vadd.f32 %v3757_v7, %v3689_v60  ;;  %v3856_v19 = vmul.f32 %v6937_v54, %v3224_v53  ;;  %v3953_v36 = vadd.f32 %v3952_v48, %v7406_v45 }
 0x3a3   : > { %v3292_v18 = vadd.f32 %v3260_v29, %v3192_v33  ;;  %v3293_v32 = vadd.f32 %v3261_v23, %v3193_v52  ;;  %v3590_v51 = vadd.f32 %v3558_v41, %v3490_v21  ;;  %v7463_v26 = vadd.f32 %v5002_v46, %v3886_v9  ;;  %v5003_v29 = vld [vmem:[#allocation2] sm:$0xff] }
 0x3a4   : > { %v3591_v0 = vadd.f32 %v3559_v28, %v3491_v25  ;;  %v3888_v56 = vadd.f32 %v3856_v19, %v3788_v35  ;;  %v7465_v3 = vadd.f32 %v5002_v46, %v3887_v43  ;;  %v3954_v17 = vadd.f32 %v3953_v36, %v7435_v50  ;;  %v3824_v25 = vld [vmem:[#allocation2 + $0x229] sm:$0xff]  ;;  %v3825_v35 = vld [vmem:[#allocation2 + $0x231] sm:$0xff] }
 0x3a5   : > { %v3525_v10 = vld [vmem:[#allocation2 + $0x211] sm:$0xff]  ;;  %v3889_v43 = vadd.f32 %v3857_v39, %v3789_v40  ;;  %v3760_v41 = vmul.f32 %v5003_v29, %v6682_v2 }
 0x3a6   : > { %v3723_v4 = vld [vmem:[#allocation2 + $0x210] sm:$0xff]  ;;  %v3324_v57 = vld [vmem:[#allocation2 + $0x207] sm:$0xff]  ;;  %v3561_v6 = vmul.f32 %v6633_v38, %v3525_v10  ;;  %v3955_v7 = vadd.f32 %v3954_v17, %v7422_v31  ;;  %v7478_v52 = vadd.f32 %v5002_v46, %v3888_v56  ;;  %v3859_v40 = vmul.f32 %v6937_v54, %v3525_v10 }
 0x3a7   : > { %v3325_v1 = vld [vmem:[#allocation2 + $0x20f] sm:$0xff]  ;;  %v3360_v15 = vmul.f32 %v6629_v11, %v3324_v57  ;;  %v3658_v16 = vmul.f32 %v6668_v49, %v3324_v57  ;;  %v3759_v28 = vmul.f32 %v6682_v2, %v3723_v4  ;;  %v7826_v4 = vld [vmem:[#allocation51_spill] sm:$0xff] }
 0x3a8   : > { %v3361_v62 = vmul.f32 %v6629_v11, %v3325_v1  ;;  %v3524_v23 = vld [vmem:[#allocation2 + $0x209] sm:$0xff]  ;;  %v3659_v8 = vmul.f32 %v6668_v49, %v3325_v1  ;;  %v3956_v48 = vadd.f32 %v3955_v7, %v7463_v26 }
 0x3a9   : > { %v3722_v47 = vld [vmem:[#allocation2 + $0x208] sm:$0xff]  ;;  %v3392_v53 = vadd.f32 %v3360_v15, %v3292_v18  ;;  %v3690_v58 = vadd.f32 %v3658_v16, %v3590_v51  ;;  %v3560_v11 = vmul.f32 %v6633_v38, %v3524_v23  ;;  %v3858_v33 = vmul.f32 %v6937_v54, %v3524_v23 }
 0x3aa   : > { %v3758_v22 = vmul.f32 %v6682_v2, %v3722_v47  ;;  %v3393_v14 = vadd.f32 %v3361_v62, %v3293_v32  ;;  %v3691_v9 = vadd.f32 %v3659_v8, %v3591_v0  ;;  %v3957_v18 = vadd.f32 %v3956_v48, %v7465_v3  ;;  %v7827_v1 = vld [vmem:[#allocation52_spill] sm:$0xff] }
 0x3ab   : > { %v3492_v21 = vadd.f32 %v3460_v61, %v3392_v53  ;;  %v3860_v32 = vmul.f32 %v6937_v54, %v3824_v25  ;;  %v7486_v51 = vadd.f32 %v5002_v46, %v3889_v43 }
 0x3ac   : > { %v3493_v60 = vadd.f32 %v3461_v55, %v3393_v14  ;;  %v3790_v49 = vadd.f32 %v3758_v22, %v3690_v58  ;;  %v3791_v39 = vadd.f32 %v3759_v28, %v3691_v9  ;;  %v3861_v55 = vmul.f32 %v6937_v54, %v3825_v35 }
 0x3ad   : > { %v3592_v19 = vadd.f32 %v3560_v11, %v3492_v21  ;;  %v3958_v10 = vadd.f32 %v3957_v18, %v7478_v52  ;;  %v3988_v21 = vld [vmem:[%s7634_s10] sm:$0x1] }
 0x3ae   : > { %v3593_v38 = vadd.f32 %v3561_v6, %v3493_v60  ;;  %v3890_v36 = vadd.f32 %v3858_v33, %v3790_v49  ;;  %v3891_v61 = vadd.f32 %v3859_v40, %v3791_v39  ;;  %v4067_v33 = vld [vmem:[%s7635_s11 + $0x8] sm:$0xff] }
 0x3af   : > { %v3692_v57 = vadd.f32 %v7826_v4, %v3592_v19  ;;  %v3959_v15 = vadd.f32 %v3958_v10, %v7486_v51  ;;  %v7828_v4 = vld [vmem:[#allocation3_spill] sm:$0xff] }
 0x3b0   : > { %v3693_v0 = vadd.f32 %v7827_v1, %v3593_v38  ;;  %v7490_v2 = vadd.f32 %v5002_v46, %v3890_v36  ;;  %v7494_v6 = vadd.f32 %v5002_v46, %v3891_v61 }
 0x3b1   : > { %v3792_v56 = vadd.f32 %v3760_v41, %v3692_v57 }
 0x3b2   : > { %v3793_v17 = vadd.f32 %v3760_v41, %v3693_v0  ;;  %v3960_v54 = vadd.f32 %v3959_v15, %v7490_v2 }
 0x3b3   : > { %v3892_v62 = vadd.f32 %v3860_v32, %v3792_v56 }
 0x3b4   : > { %v3893_v23 = vadd.f32 %v3861_v55, %v3793_v17  ;;  %v3961_v47 = vadd.f32 %v3960_v54, %v7494_v6  ;;  %v7830_v54 = vld [vmem:[#allocation27_spill] sm:$0xff] }
 0x3b5   : > { %v7497_v16 = vadd.f32 %v5002_v46, %v3892_v62  ;;  %v7829_v62 = vld [vmem:[#allocation26_spill] sm:$0xff] }
 0x3b6   : > { %v7500_v8 = vadd.f32 %v5002_v46, %v3893_v23  ;;  %v4066_v46 = vld [vmem:[%s7635_s11] sm:$0xff] }
 0x3b7   : > { %v3962_v22 = vadd.f32 %v3961_v47, %v7497_v16 }
 0x3b9   : > { %v3963_v28 = vadd.f32 %v3962_v22, %v7500_v8 }
 0x3bb   : > { %v3964_v43 = vrot.slane %v3963_v28, 4 }
 0x3bd   : > { %v3965_v53 = vadd.f32 %v3964_v43, %v3963_v28  ;;  %v7831_v28 = vld [vmem:[#allocation50_spill] sm:$0xff] }
 0x3bf   : > { %v3966_v14 = vrot.slane %v3965_v53, 2 }
 0x3c1   : > { %v3967_v58 = vadd.f32 %v3966_v14, %v3965_v53  ;;  %v7832_v53 = vld [vmem:[#allocation53_spill] sm:$0xff]  ;;  %v7833_v14 = vld [vmem:[#allocation31_spill] sm:$0xff] }
 0x3c3   : > { %v3968_v7 = vrot.slane %v3967_v58, 1 }
 0x3c5   : > { %v3969_v11 = vadd.f32 %v3968_v7, %v3967_v58  ;;  %v7834_v58 = vld [vmem:[#allocation34_spill] sm:$0xff] }
 0x3c6   : > { %v7835_v7 = vld [vmem:[#allocation54_spill] sm:$0xff] }
 0x3c7   : > { %v3971_v9 = vmul.f32 0.00390625, %v3969_v11 }
 0x3c9   : > { %4701 = vmatmul.mubr.f32.vlgmr.msra.gmra.mxu1 %v3971_v9 }
 0x3ca   : > { %4707 = vmatprep.mubr.msk.f32.mxu1 %vm5014_vm2, %v5003_v29  ;;  %4704 = vmatpush3.msra.mxu1 %v4067_v33  ;;  %v7836_v33 = vld [vmem:[#allocation36_spill] sm:$0xff] }
 0x3cb   : > { %4705 = vmatprep.subr.mxu1 %v5003_v29  ;;  %v4068_v29 = vld [vmem:[%s7636_s12] sm:$0x1] }
 0x3cc   : > { %4706 = vmatpush3.msra.mxu1 %v4066_v46 }
 0x489   : > { %v4055_v60 = vpop.f32.mrf.mxu1 }
 0x48a   : > { %v4056_v49 = vadd.f32 %v4055_v60, %v3988_v21 }
 0x48b   : > { %v4702_v25 = vpop.f32.mrf.mxu1 }
 0x48c   : > { %v4445_v35 = vmul.f32 -1.442695, %v4056_v49 }
 0x48e   : > { %4977 = vpow2.f32 %v4445_v35 }
 0x49b   : > { %v4978_v48 = vpop.eup %4977 }
 0x49c   : > { %v4062_v41 = vadd.f32 1.0, %v4978_v48  ;;  %v7840_v48 = vld [vmem:[#allocation9_spill] sm:$0xff] }
 0x49e   : > { %4979 = vrcp.f32 %v4062_v41 }
 0x4ab   : > { %v4980_v39 = vpop.eup %4979 }
 0x4ac   : > { %v4065_v40 = vmul.f32 %v4980_v39, %v4056_v49  ;;  %v7841_v39 = vld [vmem:[#allocation10_spill] sm:$0xff] }
 0x4ae   : > { %4708 = vmatmul.mubr.msk.f32.vlgmr.msra.gmra.mxu1 %vm4069_vm3, %v4065_v40  ;;  %v7842_v40 = vld [vmem:[#allocation11_spill] sm:$0xff] }
 0x56e   : > { %v4139_v19 = vpop.f32.mrf.mxu1 }
 0x56f   : > { %v4140_v38 = vadd.f32 %v4139_v19, %v4068_v29  ;;  %v7843_v29 = vld [vmem:[#allocation12_spill] sm:$0xff]  ;;  %v7844_v19 = vld [vmem:[#allocation13_spill] sm:$0xff] }
 0x570   : > { %v4709_v36 = vpop.f32.mrf.mxu1 }
 0x571   : > { %v4447_v18 = vmul.f32 -1.442695, %v4140_v38  ;;  %v7845_v38 = vld [vmem:[#allocation14_spill] sm:$0xff] }
 0x573   : > { %4981 = vpow2.f32 %v4447_v18  ;;  %v7846_v18 = vld [vmem:[#allocation15_spill] sm:$0xff] }
 0x580   : > { %v4982_v32 = vpop.eup %4981 }
 0x581   : > { %v4146_v55 = vadd.f32 1.0, %v4982_v32 }
 0x583   : > { %4983 = vrcp.f32 %v4146_v55  ;;  %v7847_v55 = vld [vmem:[#allocation16_spill] sm:$0xff] }
 0x590   : > { %v4984_v61 = vpop.eup %4983 }
 0x591   : > { %v4152_v57 = vrot.slane %v4984_v61, %v7828_v4  ;;  %v7848_v4 = vld [vmem:[#allocation17_spill] sm:$0xff] }
 0x593   : > { %v4153_v1 = vmul.f32 %v4152_v57, %v7805_v59  ;;  %v4154_v0 = vmul.f32 %v4152_v57, %v7156_v34  ;;  %v4155_v10 = vmul.f32 %v4152_v57, %v7161_v63  ;;  %v4156_v56 = vmul.f32 %v4152_v57, %v7164_v30 }
 0x594   : > { %v4157_v17 = vmul.f32 %v4152_v57, %v7173_v44  ;;  %v4158_v15 = vmul.f32 %v4152_v57, %v7181_v42  ;;  %v4159_v23 = vmul.f32 %v4152_v57, %v7829_v62  ;;  %v4160_v47 = vmul.f32 %v4152_v57, %v7830_v54  ;;  %v7852_v62 = vld [vmem:[#allocation21_spill] sm:$0xff]  ;;  %v7853_v54 = vld [vmem:[#allocation22_spill] sm:$0xff] }
 0x595   : > { %v4161_v22 = vmul.f32 %v4152_v57, %v7222_v37  ;;  %v4162_v43 = vmul.f32 %v4152_v57, %v7831_v28  ;;  %v4163_v59 = vmul.f32 %v4152_v57, %v7832_v53  ;;  %v4164_v34 = vmul.f32 %v4152_v57, %v7833_v14 }
 0x596   : > { %v4165_v63 = vmul.f32 %v4152_v57, %v7834_v58  ;;  %v4166_v30 = vmul.f32 %v4152_v57, %v7835_v7  ;;  %v4167_v44 = vmul.f32 %v4152_v57, %v7317_v20  ;;  %v4168_v42 = vmul.f32 %v4152_v57, %v7320_v5 }
 0x597   : > { %v4169_v11 = vmul.f32 %v4152_v57, %v7348_v13  ;;  %v4170_v9 = vmul.f32 %v4152_v57, %v7352_v27  ;;  %v4171_v37 = vmul.f32 %v4152_v57, %v7359_v12  ;;  %v4172_v46 = vmul.f32 %v4152_v57, %v7836_v33  ;;  %v7862_v33 = vld [vmem:[#allocation35_spill] sm:$0xff] }
 0x598   : > { %v4173_v21 = vmul.f32 %v4152_v57, %v7403_v24  ;;  %v4174_v60 = vmul.f32 %v4152_v57, %v7406_v45  ;;  %v4175_v49 = vmul.f32 %v4152_v57, %v7435_v50  ;;  %v4176_v25 = vmul.f32 %v4152_v57, %v7422_v31  ;;  %v7837_v50 = vld [vmem:[#allocation6_spill] sm:$0xff] }
 0x599   : > { %v4177_v20 = vmul.f32 %v4152_v57, %v7463_v26  ;;  %v4178_v5 = vmul.f32 %v4152_v57, %v7465_v3  ;;  %v4179_v13 = vmul.f32 %v4152_v57, %v7478_v52  ;;  %v4180_v27 = vmul.f32 %v4152_v57, %v7486_v51  ;;  %v7838_v3 = vld [vmem:[#allocation7_spill] sm:$0xff]  ;;  %v7839_v51 = vld [vmem:[#allocation8_spill] sm:$0xff] }
 0x59a   : > { %v4181_v12 = vmul.f32 %v4152_v57, %v7490_v2  ;;  %v4182_v24 = vmul.f32 %v4152_v57, %v7494_v6  ;;  %v4183_v45 = vmul.f32 %v4152_v57, %v7497_v16  ;;  %v4184_v31 = vmul.f32 %v4152_v57, %v7500_v8 }
 0x59b   : > { %v4185_v26 = vadd.f32 %v4153_v1, %v7837_v50  ;;  %v4186_v52 = vadd.f32 %v4154_v0, %v7838_v3  ;;  %v4187_v35 = vadd.f32 %v4155_v10, %v7839_v51  ;;  %v4188_v41 = vadd.f32 %v4156_v56, %v7840_v48  ;;  %v7849_v1 = vld [vmem:[#allocation18_spill] sm:$0xff]  ;;  %v7850_v10 = vld [vmem:[#allocation19_spill] sm:$0xff] }
 0x59c   : > { %v4189_v2 = vadd.f32 %v4157_v17, %v7841_v39  ;;  %v4190_v6 = vadd.f32 %v4158_v15, %v7842_v40  ;;  %v4191_v16 = vadd.f32 %v4159_v23, %v7843_v29  ;;  %v4192_v8 = vadd.f32 %v4160_v47, %v7844_v19  ;;  %v7851_v17 = vld [vmem:[#allocation20_spill] sm:$0xff]  ;;  %v7864_v50 = vld [vmem:[#allocation39_spill] sm:$0xff]  ;;  %v7868_v51 = vld [vmem:[#allocation46_spill] sm:$0xff] }
 0x59d   : > { %v4193_v36 = vadd.f32 %v4161_v22, %v7845_v38  ;;  %v4194_v32 = vadd.f32 %v4162_v43, %v7846_v18  ;;  %v4195_v61 = vadd.f32 %v4163_v59, %v7847_v55  ;;  %v4196_v57 = vadd.f32 %v4164_v34, %v7848_v4  ;;  %4217 = vst [vmem:[%s7551_s28] sm:$0xff] %v4185_v26  ;;  %v7854_v22 = vld [vmem:[#allocation23_spill] sm:$0xff]  ;;  %v7855_v43 = vld [vmem:[#allocation24_spill] sm:$0xff]  ;;  %v7856_v59 = vld [vmem:[#allocation25_spill] sm:$0xff] }
 0x59e   : > { %4218 = vst [vmem:[%s7551_s28 + $0x8] sm:$0xff] %v4186_v52  ;;  %4219 = vst [vmem:[%s7551_s28 + $0x10] sm:$0xff] %v4187_v35  ;;  %v4197_v0 = vadd.f32 %v4165_v63, %v7849_v1  ;;  %v4198_v56 = vadd.f32 %v4166_v30, %v7850_v10  ;;  %v4199_v15 = vadd.f32 %v4167_v44, %v7851_v17  ;;  %v7857_v34 = vld [vmem:[#allocation28_spill] sm:$0xff]  ;;  %v7858_v63 = vld [vmem:[#allocation33_spill] sm:$0xff] }
 0x59f   : > { %4220 = vst [vmem:[%s7551_s28 + $0x18] sm:$0xff] %v4188_v41  ;;  %v4200_v23 = vadd.f32 %v4168_v42, %v7852_v62  ;;  %4221 = vst [vmem:[%s7551_s28 + $0x20] sm:$0xff] %v4189_v2  ;;  %v4201_v47 = vadd.f32 %v4169_v11, %v7853_v54  ;;  %v4202_v28 = vadd.f32 %v4170_v9, %v7854_v22  ;;  %v7859_v30 = vld [vmem:[#allocation30_spill] sm:$0xff]  ;;  %v7860_v42 = vld [vmem:[#allocation29_spill] sm:$0xff] }
 0x5a0   : > { %4222 = vst [vmem:[%s7551_s28 + $0x28] sm:$0xff] %v4190_v6  ;;  %4223 = vst [vmem:[%s7551_s28 + $0x30] sm:$0xff] %v4191_v16  ;;  %v4203_v53 = vadd.f32 %v7855_v43, %v4171_v37  ;;  %v4204_v14 = vadd.f32 %v7856_v59, %v4172_v46  ;;  %v4205_v58 = vadd.f32 %v7857_v34, %v4173_v21  ;;  %v7861_v9 = vld [vmem:[#allocation32_spill] sm:$0xff]  ;;  %v7863_v21 = vld [vmem:[#allocation37_spill] sm:$0xff] }
 0x5a1   : > { %4224 = vst [vmem:[%s7551_s28 + $0x38] sm:$0xff] %v4192_v8  ;;  %4225 = vst [vmem:[%s7551_s28 + $0x40] sm:$0xff] %v4193_v36  ;;  %v4206_v7 = vadd.f32 %v7858_v63, %v4174_v60  ;;  %v4207_v44 = vadd.f32 %v7859_v30, %v4175_v49  ;;  %v4208_v11 = vadd.f32 %v7860_v42, %v4176_v25  ;;  %v7865_v25 = vld [vmem:[#allocation41_spill] sm:$0xff]  ;;  %v7866_v26 = vld [vmem:[#allocation43_spill] sm:$0xff] }
 0x5a2   : > { %4226 = vst [vmem:[%s7551_s28 + $0x48] sm:$0xff] %v4194_v32  ;;  %4227 = vst [vmem:[%s7551_s28 + $0x50] sm:$0xff] %v4195_v61  ;;  %v4209_v37 = vadd.f32 %v7861_v9, %v4177_v20  ;;  %v4210_v46 = vadd.f32 %v7862_v33, %v4178_v5  ;;  %v4211_v60 = vadd.f32 %v7863_v21, %v4179_v13  ;;  %v7867_v5 = vld [vmem:[#allocation45_spill] sm:$0xff] }
 0x5a3   : > { %4228 = vst [vmem:[%s7551_s28 + $0x58] sm:$0xff] %v4196_v57  ;;  %4229 = vst [vmem:[%s7551_s28 + $0x60] sm:$0xff] %v4197_v0  ;;  %v4212_v49 = vadd.f32 %v7864_v50, %v4180_v27  ;;  %v4213_v20 = vadd.f32 %v7865_v25, %v4181_v12  ;;  %v4214_v3 = vadd.f32 %v7866_v26, %v4182_v24 }
 0x5a4   : > { %4230 = vst [vmem:[%s7551_s28 + $0x68] sm:$0xff] %v4198_v56  ;;  %4231 = vst [vmem:[%s7551_s28 + $0x70] sm:$0xff] %v4199_v15  ;;  %v4215_v52 = vadd.f32 %v7867_v5, %v4183_v45  ;;  %v4216_v13 = vadd.f32 %v7868_v51, %v4184_v31 }
 0x5a5   : > { %4232 = vst [vmem:[%s7551_s28 + $0x78] sm:$0xff] %v4200_v23  ;;  %4233 = vst [vmem:[%s7551_s28 + $0x80] sm:$0xff] %v4201_v47 }
 0x5a6   : > { %4234 = vst [vmem:[%s7551_s28 + $0x88] sm:$0xff] %v4202_v28  ;;  %4235 = vst [vmem:[%s7551_s28 + $0x90] sm:$0xff] %v4203_v53 }
 0x5a7   : > { %4236 = vst [vmem:[%s7551_s28 + $0x98] sm:$0xff] %v4204_v14  ;;  %4237 = vst [vmem:[%s7551_s28 + $0xa0] sm:$0xff] %v4205_v58 }
 0x5a8   : > { %4238 = vst [vmem:[%s7551_s28 + $0xa8] sm:$0xff] %v4206_v7  ;;  %4239 = vst [vmem:[%s7551_s28 + $0xb0] sm:$0xff] %v4207_v44 }
 0x5a9   : > { %4240 = vst [vmem:[%s7551_s28 + $0xb8] sm:$0xff] %v4208_v11  ;;  %4241 = vst [vmem:[%s7551_s28 + $0xc0] sm:$0xff] %v4209_v37 }
 0x5aa   : > { %4242 = vst [vmem:[%s7551_s28 + $0xc8] sm:$0xff] %v4210_v46  ;;  %4243 = vst [vmem:[%s7551_s28 + $0xd0] sm:$0xff] %v4211_v60 }
 0x5ab   : > { %4244 = vst [vmem:[%s7551_s28 + $0xd8] sm:$0xff] %v4212_v49  ;;  %4245 = vst [vmem:[%s7551_s28 + $0xe0] sm:$0xff] %v4213_v20 }
 0x5ac   : > { %4246 = vst [vmem:[%s7551_s28 + $0xe8] sm:$0xff] %v4214_v3  ;;  %4247 = vst [vmem:[%s7551_s28 + $0xf0] sm:$0xff] %v4215_v52 }
 0x5ad   : > { %4248 = vst [vmem:[%s7551_s28 + $0xf8] sm:$0xff] %v4216_v13 }
 0x5ae PF: > { %s23_s25 = sadd.s32 1, %s5010_s25  }
 0x5af   : > { %p20_p4 = scmp.ge.s32.totalorder %s23_s25, 4  }
 0x5b1   :  { %22 = sbr.rel (!%p20_p4) target bundleno = 1 (0x1), region = 104 }

</bundles_post_ra>
